<compile_context>
chip_gen: v7x
topology: tpu7x:2x2x1
jax: 0.10.0
libtpu: 0.0.40
codegen_flags: <defaults>
</compile_context>

<pallas_src>
import jax
import jax.numpy as jnp
from jax import lax
from jax.experimental import pallas as pl
from jax.experimental.pallas import tpu as pltpu


# ---------------------------------------------------------------------------
# Stage A: edge-tiled message computation + scatter-accumulation into per-split slabs
# ---------------------------------------------------------------------------
def _edge_accum_kernel(
    fcol_ref, tcol_ref, frow_ref, trow_ref, node_ref, ef_ref,
    w1_ref, b1_ref, w2f_ref, b2f_ref, w2r_ref, b2r_ref,
    agg_ref,
):
    f32 = jnp.float32
    sel_dt = node_ref.dtype                       # selection (one-hot) matmul dtype
    i = pl.program_id(1)                          # edge-tile index within this split

    @pl.when(i == 0)
    def _init():
        agg_ref[...] = jnp.zeros(agg_ref.shape, dtype=agg_ref.dtype)

    node = node_ref[...]                          # [N, D]  (resident, single-buffered)
    ef = ef_ref[...]                              # [TE, F]
    fcol = fcol_ref[...]                          # [TE, 1] int32
    tcol = tcol_ref[...]                          # [TE, 1] int32
    te = fcol.shape[0]
    n_nodes = node.shape[0]
    eh0 = w2f_ref.shape[0]

    # ---- fused gather: [from_states; to_states] = one_hot([from; to]) @ node ----
    idx_col = jnp.concatenate([fcol, tcol], axis=0)                  # [2TE, 1]
    iota_g = lax.broadcasted_iota(jnp.int32, (2 * te, n_nodes), 1)
    oh_gather = (idx_col == iota_g).astype(sel_dt)                   # [2TE, N]
    states = jnp.dot(oh_gather, node, preferred_element_type=f32)    # [2TE, D] f32
    from_states = states[:te]
    to_states = states[te:]

    # ---- fused first layer: forward + reverse message nets in one matmul ----
    x_cat = jnp.concatenate([from_states, to_states, ef], axis=-1)   # [TE, 2D+F]
    h_both = jnp.dot(x_cat, w1_ref[...], preferred_element_type=f32) + b1_ref[...]
    h_both = jnp.maximum(h_both, 0.0)                                # [TE, 2*eh0]
    msg_f = jnp.dot(h_both[:, :eh0], w2f_ref[...],
                    preferred_element_type=f32) + b2f_ref[...]       # [TE, M]
    msg_r = jnp.dot(h_both[:, eh0:], w2r_ref[...],
                    preferred_element_type=f32) + b2r_ref[...]       # [TE, M]

    # ---- fused scatter: transposed one-hot, single MXU contraction, f32 accumulate ----
    # columns 0..TE-1   -> to_idx   (forward messages)
    # columns TE..2TE-1 -> from_idx (reverse messages)
    idx_row = jnp.concatenate([trow_ref[...], frow_ref[...]], axis=1)   # [1, 2TE]
    iota_s = lax.broadcasted_iota(jnp.int32, (n_nodes, 2 * te), 0)
    ohT = (idx_row == iota_s).astype(sel_dt)                            # [N, 2TE]
    msg_cat = jnp.concatenate([msg_f, msg_r], axis=0).astype(sel_dt)    # [2TE, M]
    delta = jnp.dot(ohT, msg_cat, preferred_element_type=f32)           # [N, M] f32
    agg_ref[...] += delta[None]                                         # slab block (1,N,M)


# ---------------------------------------------------------------------------
# Stage B: sum per-split slabs + node-update MLP + residual (tiny, full-VMEM kernel)
# ---------------------------------------------------------------------------
def _node_update_kernel(agg_ref, node_ref, wn1a_ref, wn1n_ref, bn1_ref,
                        wn2_ref, bn2_ref, out_ref):
    f32 = jnp.float32
    agg = jnp.sum(agg_ref[...], axis=0)                               # [N, M]
    node = node_ref[...]                                              # [N, D]
    h = jnp.dot(agg, wn1a_ref[...], preferred_element_type=f32)
    h = h + jnp.dot(node, wn1n_ref[...], preferred_element_type=f32)
    h = jnp.maximum(h + bn1_ref[...], 0.0)
    out_ref[...] = (node
                    + jnp.dot(h, wn2_ref[...], preferred_element_type=f32)
                    + bn2_ref[...])


# ---------------------------------------------------------------------------
# Host wrapper
# ---------------------------------------------------------------------------
def _round_up(x, m):
    return ((x + m - 1) // m) * m


def _vmem_bytes_estimate(te, n_nodes, d, f, eh0, msg_dim, sel_bytes, resident_bytes):
    """Rough per-call VMEM footprint of stage A for edge tile `te`."""
    edge_blocks = 2 * (2 * te * 4 + 2 * te * 4 + te * f * 4)      # double-buffered idx + ef tiles
    out_block = n_nodes * msg_dim * 4                              # per-split slab (single buffer)
    onehots = 2 * (2 * te * n_nodes * sel_bytes)                   # gather + scatter one-hots
    acts = (2 * te * d * 4 + te * (2 * d + f) * 4                  # states, x_cat
            + 2 * te * eh0 * 4 + 2 * (2 * te * msg_dim) * 4)       # h_both, msgs (+ cast copy)
    return resident_bytes + edge_blocks + out_block + onehots + acts


def graph_prop_layer(node_states, from_idx, to_idx, edge_features, kernel_params, *,
                     edge_tile=None, n_core_splits=2, selection_dtype=jnp.float32):
    """One GraphPropLayer forward pass (residual update, both directions).

    kernel_params: output of prepare_kernel_params() (fused W1, split node-MLP W1).
    edge_tile:     edge block size (multiple of 128); None -> auto-pick from a VMEM budget.
    n_core_splits: leading 'parallel' grid axis size (2 lets both v7x TensorCores work).
    selection_dtype: dtype of the one-hot gather/scatter matmul operands (f32 or bf16);
                     accumulation is always f32.
    """
    f32 = jnp.float32
    n_nodes, d = node_states.shape
    n_edges = int(from_idx.shape[0])
    f = int(edge_features.shape[1])
    n_split = max(1, int(n_core_splits))

    kp = tuple(jnp.asarray(p, f32) for p in kernel_params)
    (w1_big, b1_big, w2f, b2f, w2r, b2r, wn1a, wn1n, bn1, wn2, bn2) = kp
    eh0 = int(w2f.shape[0])
    msg_dim = int(w2f.shape[1])

    node_f32 = node_states.astype(f32)
    node_sel = node_f32.astype(selection_dtype)
    sel_bytes = jnp.dtype(selection_dtype).itemsize
    msg_weights = (w1_big, b1_big, w2f, b2f, w2r, b2r)
    resident_bytes = int(node_sel.size) * sel_bytes + sum(int(p.size) * 4 for p in msg_weights)

    # ---- edge-tile selection (review: bigger tiles amortize per-step overhead and the
    #      per-tile [N, M] accumulator RMW; bounded by the one-hot intermediates) ----
    if edge_tile is None:
        budget = 40 << 20
        te = 128
        for cand in range(2048, 127, -128):
            if _vmem_bytes_estimate(cand, n_nodes, d, f, eh0, msg_dim,
                                    sel_bytes, resident_bytes) <= budget:
                te = cand
                break
        # no point padding far past the actual per-split edge count
        te = min(te, _round_up(max(1, pl.cdiv(n_edges, n_split)), 128))
    else:
        te = max(128, (int(edge_tile) // 128) * 128)

    tiles_per_split = max(1, pl.cdiv(pl.cdiv(n_edges, te), n_split))
    e_pad = n_split * tiles_per_split * te
    pad = e_pad - n_edges

    # Out-of-range sentinel: padded edges match no node -> gather zeros, scatter nowhere.
    sent = n_nodes
    fi = jnp.pad(from_idx.astype(jnp.int32), (0, pad), constant_values=sent)
    ti = jnp.pad(to_idx.astype(jnp.int32), (0, pad), constant_values=sent)
    ef = jnp.pad(edge_features.astype(f32), ((0, pad), (0, 0)))

    inputs = (
        fi.reshape(e_pad, 1), ti.reshape(e_pad, 1),        # column form (gather one-hots)
        fi.reshape(1, e_pad), ti.reshape(1, e_pad),        # row form (scatter one-hots)
        node_sel, ef,
    ) + msg_weights

    # VMEM limit from actual footprint (+50% headroom), clamped to a safe range.
    vmem_est = _vmem_bytes_estimate(te, n_nodes, d, f, eh0, msg_dim, sel_bytes, resident_bytes)
    vmem_limit = int(min(max(int(vmem_est * 1.5) + (4 << 20), 32 << 20), 64 << 20))

    # Advisory cost estimate so XLA can schedule around the kernel.
    flops_per_tile = 2 * te * (2 * n_nodes * d                       # gather
                               + (2 * d + f) * 2 * eh0               # fused layer-1
                               + 2 * eh0 * msg_dim                   # two layer-2 matmuls
                               + 2 * n_nodes * msg_dim)              # fused scatter
    bytes_accessed = (sum(int(x.size) * x.dtype.itemsize for x in inputs)
                      + n_split * n_nodes * msg_dim * 4)
    cost = pl.CostEstimate(flops=int(n_split * tiles_per_split * flops_per_tile),
                           transcendentals=0, bytes_accessed=int(bytes_accessed))

    def build_edge_call(single_buffer):
        def maybe_single(block_shape, index_map):
            if single_buffer:
                return pl.BlockSpec(block_shape, index_map, pipeline_mode=pl.Buffered(1))
            return pl.BlockSpec(block_shape, index_map)

        def resident(shape):
            return maybe_single(shape, lambda c, i: (0, 0))

        tps = tiles_per_split
        in_specs = [
            pl.BlockSpec((te, 1), lambda c, i: (c * tps + i, 0)),    # from (column)
            pl.BlockSpec((te, 1), lambda c, i: (c * tps + i, 0)),    # to   (column)
            pl.BlockSpec((1, te), lambda c, i: (0, c * tps + i)),    # from (row)
            pl.BlockSpec((1, te), lambda c, i: (0, c * tps + i)),    # to   (row)
            resident((n_nodes, d)),                                  # node states (resident)
            pl.BlockSpec((te, f), lambda c, i: (c * tps + i, 0)),    # edge features
        ] + [resident(tuple(p.shape)) for p in msg_weights]          # message-net weights

        out_specs = maybe_single((1, n_nodes, msg_dim), lambda c, i: (c, 0, 0))

        return pl.pallas_call(
            _edge_accum_kernel,
            out_shape=jax.ShapeDtypeStruct((n_split, n_nodes, msg_dim), f32),
            grid_spec=pltpu.PrefetchScalarGridSpec(
                num_scalar_prefetch=0,
                grid=(n_split, tiles_per_split),
                in_specs=in_specs,
                out_specs=out_specs,
            ),
            compiler_params=pltpu.CompilerParams(
                dimension_semantics=("parallel", "arbitrary"),
                vmem_limit_bytes=vmem_limit,
            ),
            cost_estimate=cost,
        )

    # Prefer single-buffered resident blocks; fall back eagerly if Buffered(1) is rejected.
    try:
        agg_slabs = jax.block_until_ready(build_edge_call(True)(*inputs))
    except Exception:
        agg_slabs = build_edge_call(False)(*inputs)

    # Stage B: slab sum + node-update MLP + residual (everything fits in VMEM).
    return pl.pallas_call(
        _node_update_kernel,
        out_shape=jax.ShapeDtypeStruct((n_nodes, d), f32),
    )(agg_slabs, node_f32, wn1a, wn1n, bn1, wn2, bn2)


# ---------------------------------------------------------------------------
# Parameters / reference
# ---------------------------------------------------------------------------
def init_params(key, node_state_dim, edge_state_dim, edge_hidden_sizes,
                node_hidden_sizes, edge_net_init_scale=0.1):
    """Synthetic parameters; shapes mirror GraphPropLayer.build_model (2-layer MLPs).

    Linear weights are stored as [in_features, out_features] (x @ W + b)."""
    d, f = node_state_dim, edge_state_dim
    eh0, msg_dim = edge_hidden_sizes           # message dim = eh1
    nh0, nh1 = node_hidden_sizes               # nh1 == node_state_dim
    assert msg_dim + d == 3 * d, "message dim must be 2*node_state_dim (embedding prop)"
    assert nh1 == d

    def lin(k, fan_in, fan_out, scale):
        kw, kb = jax.random.split(k)
        return (scale * jax.random.normal(kw, (fan_in, fan_out), jnp.float32),
                scale * jax.random.normal(kb, (1, fan_out), jnp.float32))

    ks = jax.random.split(key, 6)
    w1f, b1f = lin(ks[0], 2 * d + f, eh0, edge_net_init_scale)   # forward message net
    w2f, b2f = lin(ks[1], eh0, msg_dim, edge_net_init_scale)
    w1r, b1r = lin(ks[2], 2 * d + f, eh0, edge_net_init_scale)   # reverse message net
    w2r, b2r = lin(ks[3], eh0, msg_dim, edge_net_init_scale)
    wn1, bn1 = lin(ks[4], msg_dim + d, nh0, 0.1)                 # node MLP
    wn2, bn2 = lin(ks[5], nh0, nh1, 0.1)
    return dict(w1f=w1f, b1f=b1f, w2f=w2f, b2f=b2f,
                w1r=w1r, b1r=b1r, w2r=w2r, b2r=b2r,
                wn1=wn1, bn1=bn1, wn2=wn2, bn2=bn2)


def prepare_kernel_params(p, node_state_dim):
    """Host-side fusion of weights for the kernel.

    W1_big rows are ordered [from | to | edge_feat] and cols [forward eh0 | reverse eh0];
    the reverse net's from/to row blocks are swapped so one x_cat serves both directions.
    The node-MLP first layer is split into its [agg | node] row blocks."""
    d = node_state_dim
    w1f, w1r = p["w1f"], p["w1r"]
    w1_rev = jnp.concatenate([w1r[d:2 * d], w1r[:d], w1r[2 * d:]], axis=0)
    w1_big = jnp.concatenate([w1f, w1_rev], axis=1)              # [2D+F, 2*eh0]
    b1_big = jnp.concatenate([p["b1f"], p["b1r"]], axis=1)       # [1, 2*eh0]
    msg_dim = int(p["w2f"].shape[1])
    wn1_a = p["wn1"][:msg_dim]
    wn1_n = p["wn1"][msg_dim:]
    return (w1_big, b1_big, p["w2f"], p["b2f"], p["w2r"], p["b2r"],
            wn1_a, wn1_n, p["bn1"], p["wn2"], p["bn2"])


def reference(node_states, from_idx, to_idx, ef, p):
    """Pure-JAX reference of GraphPropLayer.forward (residual update)."""
    def mlp2(x, w1, b1, w2, b2):
        return jnp.maximum(x @ w1 + b1, 0.0) @ w2 + b2

    n = node_states.shape[0]
    fs, ts = node_states[from_idx], node_states[to_idx]
    m_f = mlp2(jnp.concatenate([fs, ts, ef], -1), p["w1f"], p["b1f"], p["w2f"], p["b2f"])
    agg = jax.ops.segment_sum(m_f, to_idx, num_segments=n)
    m_r = mlp2(jnp.concatenate([ts, fs, ef], -1), p["w1r"], p["b1r"], p["w2r"], p["b2r"])
    agg = agg + jax.ops.segment_sum(m_r, from_idx, num_segments=n)
    h = jnp.maximum(jnp.concatenate([agg, node_states], -1) @ p["wn1"] + p["bn1"], 0.0)
    return node_states + h @ p["wn2"] + p["bn2"]


if __name__ == "__main__":
    # Small, module-consistent shapes.
    N_NODES = 16
    N_EDGES = 300                       # not tile-aligned -> exercises sentinel padding
    NODE_DIM = 16                       # node_state_dim
    EDGE_FEAT_DIM = 8                   # edge_state_dim
    EDGE_HIDDEN = [32, 2 * NODE_DIM]    # last entry = message dim = 2*D (embedding prop)
    NODE_HIDDEN = [32, NODE_DIM]        # node_hidden_sizes + [node_state_dim]

    key = jax.random.PRNGKey(0)
    k_ns, k_ef, k_fi, k_ti, k_p = jax.random.split(key, 5)

    node_states = jax.random.normal(k_ns, (N_NODES, NODE_DIM), jnp.float32)
    edge_features = jax.random.normal(k_ef, (N_EDGES, EDGE_FEAT_DIM), jnp.float32)
    from_idx = jax.random.randint(k_fi, (N_EDGES,), 0, N_NODES, jnp.int32)
    to_idx = jax.random.randint(k_ti, (N_EDGES,), 0, N_NODES, jnp.int32)

    params = init_params(k_p, NODE_DIM, EDGE_FEAT_DIM, EDGE_HIDDEN, NODE_HIDDEN,
                         edge_net_init_scale=0.1)
    kparams = prepare_kernel_params(params, NODE_DIM)
    ref = reference(node_states, from_idx, to_idx, edge_features, params)

    # f32 selection path, small tile -> grid (2, 2): exercises multi-tile accumulation,
    # the two-way core split, and padded-edge sentinel handling.  Tight tolerance.
    out_f32 = graph_prop_layer(node_states, from_idx, to_idx, edge_features, kparams,
                               edge_tile=128, n_core_splits=2,
                               selection_dtype=jnp.float32)
    out_f32 = jax.block_until_ready(out_f32)
    assert out_f32.shape == (N_NODES, NODE_DIM) and out_f32.dtype == jnp.float32
    assert jnp.allclose(out_f32, ref, atol=2e-4, rtol=2e-4), "f32 kernel mismatch vs reference"

    # bf16 selection-matmul path with auto-picked tile (one-hots exact in bf16, f32 accum);
    # looser tolerance for bf16 rounding of gathered states / messages.
    out_bf16 = graph_prop_layer(node_states, from_idx, to_idx, edge_features, kparams,
                                edge_tile=None, n_core_splits=2,
                                selection_dtype=jnp.bfloat16)
    out_bf16 = jax.block_until_ready(out_bf16)
    assert jnp.allclose(out_bf16, ref, atol=5e-2, rtol=5e-2), "bf16 kernel mismatch vs reference"

    print("KERNEL_OK")
</pallas_src>

<mosaic_0001>
module attributes {stable_mosaic.version = 11 : i64} {
  func.func @_edge_accum_kernel(%arg0: i32, %arg1: i32, %arg2: memref<128x1xi32, #tpu.memory_space<vmem>>, %arg3: memref<128x1xi32, #tpu.memory_space<vmem>>, %arg4: memref<1x128xi32, #tpu.memory_space<vmem>>, %arg5: memref<1x128xi32, #tpu.memory_space<vmem>>, %arg6: memref<16x16xf32, #tpu.memory_space<vmem>>, %arg7: memref<128x8xf32, #tpu.memory_space<vmem>>, %arg8: memref<40x64xf32, #tpu.memory_space<vmem>>, %arg9: memref<1x64xf32, #tpu.memory_space<vmem>>, %arg10: memref<32x32xf32, #tpu.memory_space<vmem>>, %arg11: memref<1x32xf32, #tpu.memory_space<vmem>>, %arg12: memref<32x32xf32, #tpu.memory_space<vmem>>, %arg13: memref<1x32xf32, #tpu.memory_space<vmem>>, %arg14: memref<1x16x32xf32, #tpu.memory_space<vmem>>) attributes {dimension_semantics = [#tpu.dimension_semantics<parallel>, #tpu.dimension_semantics<arbitrary>], iteration_bounds = array<i64: 2, 2>, scalar_prefetch = 0 : i64, scratch_operands = 0 : i64, tpu.core_type = #tpu.core_type<tc>, window_params = [{transform_indices = @transform_0, window_bounds = array<i64: 128, 1>}, {transform_indices = @transform_1, window_bounds = array<i64: 128, 1>}, {transform_indices = @transform_2, window_bounds = array<i64: 1, 128>}, {transform_indices = @transform_3, window_bounds = array<i64: 1, 128>}, {pipeline_mode = #tpu.pipeline_mode<synchronous>, transform_indices = @transform_4, window_bounds = array<i64: 16, 16>}, {transform_indices = @transform_5, window_bounds = array<i64: 128, 8>}, {pipeline_mode = #tpu.pipeline_mode<synchronous>, transform_indices = @transform_6, window_bounds = array<i64: 40, 64>}, {pipeline_mode = #tpu.pipeline_mode<synchronous>, transform_indices = @transform_7, window_bounds = array<i64: 1, 64>}, {pipeline_mode = #tpu.pipeline_mode<synchronous>, transform_indices = @transform_8, window_bounds = array<i64: 32, 32>}, {pipeline_mode = #tpu.pipeline_mode<synchronous>, transform_indices = @transform_9, window_bounds = array<i64: 1, 32>}, {pipeline_mode = #tpu.pipeline_mode<synchronous>, transform_indices = @transform_10, window_bounds = array<i64: 32, 32>}, {pipeline_mode = #tpu.pipeline_mode<synchronous>, transform_indices = @transform_11, window_bounds = array<i64: 1, 32>}, {pipeline_mode = #tpu.pipeline_mode<synchronous>, transform_indices = @transform_12, window_bounds = array<i64: 1, 16, 32>}]} {
    %c0_i32 = arith.constant 0 : i32
    %0 = arith.cmpi eq, %arg1, %c0_i32 : i32
    %1 = arith.extui %0 : i1 to i32
    %c0_i32_0 = arith.constant 0 : i32
    %2 = arith.cmpi ne, %1, %c0_i32_0 : i32
    scf.if %2 {
      %cst_35 = arith.constant 0.000000e+00 : f32
      %50 = vector.broadcast %cst_35 : f32 to vector<1x16x32xf32>
      %c0_36 = arith.constant 0 : index
      %c0_37 = arith.constant 0 : index
      %c0_38 = arith.constant 0 : index
      %51 = vector.load %arg14[%c0_36, %c0_37, %c0_38] : memref<1x16x32xf32, #tpu.memory_space<vmem>>, vector<1x16x32xf32>
      tpu.vector_store %arg14[%c0_36, %c0_37, %c0_38], %50 {strides = array<i32>} : memref<1x16x32xf32, #tpu.memory_space<vmem>>, vector<1x16x32xf32>,
    } else {
    }
    %c0 = arith.constant 0 : index
    %c0_1 = arith.constant 0 : index
    %3 = vector.load %arg6[%c0, %c0_1] : memref<16x16xf32, #tpu.memory_space<vmem>>, vector<16x16xf32>
    %c0_2 = arith.constant 0 : index
    %c0_3 = arith.constant 0 : index
    %4 = vector.load %arg7[%c0_2, %c0_3] : memref<128x8xf32, #tpu.memory_space<vmem>>, vector<128x8xf32>
    %c0_4 = arith.constant 0 : index
    %c0_5 = arith.constant 0 : index
    %5 = vector.load %arg2[%c0_4, %c0_5] : memref<128x1xi32, #tpu.memory_space<vmem>>, vector<128x1xi32>
    %c0_6 = arith.constant 0 : index
    %c0_7 = arith.constant 0 : index
    %6 = vector.load %arg3[%c0_6, %c0_7] : memref<128x1xi32, #tpu.memory_space<vmem>>, vector<128x1xi32>
    %7 = tpu.concatenate %5, %6 in 0 : vector<128x1xi32>, vector<128x1xi32> -> vector<256x1xi32>
    %8 = tpu.iota {dimensions = array<i32: 1>} : vector<256x16xi32>
    %9 = vector.broadcast %7 : vector<256x1xi32> to vector<256x16xi32>
    %10 = arith.cmpi eq, %9, %8 : vector<256x16xi32>
    %11 = arith.extui %10 : vector<256x16xi1> to vector<256x16xi32>
    %12 = arith.sitofp %11 : vector<256x16xi32> to vector<256x16xf32>
    %cst = arith.constant dense<0.000000e+00> : vector<256x16xf32>
    %13 = tpu.matmul %12, %3, %cst {dimension_numbers = #tpu.dot_dimension_numbers<[1], [0], [0], [1], [0, 0, 1, 1], [], []>} : vector<256x16xf32>, vector<16x16xf32>, vector<256x16xf32> -> vector<256x16xf32>
    %14 = vector.extract_strided_slice %13 {offsets = [0, 0], sizes = [128, 16], strides = [1, 1]} : vector<256x16xf32> to vector<128x16xf32>
    %15 = vector.extract_strided_slice %13 {offsets = [128, 0], sizes = [128, 16], strides = [1, 1]} : vector<256x16xf32> to vector<128x16xf32>
    %16 = tpu.concatenate %14, %15, %4 in 1 : vector<128x16xf32>, vector<128x16xf32>, vector<128x8xf32> -> vector<128x40xf32>
    %c0_8 = arith.constant 0 : index
    %c0_9 = arith.constant 0 : index
    %17 = vector.load %arg8[%c0_8, %c0_9] : memref<40x64xf32, #tpu.memory_space<vmem>>, vector<40x64xf32>
    %cst_10 = arith.constant dense<0.000000e+00> : vector<128x64xf32>
    %18 = tpu.matmul %16, %17, %cst_10 {dimension_numbers = #tpu.dot_dimension_numbers<[1], [0], [0], [1], [0, 0, 1, 1], [], []>} : vector<128x40xf32>, vector<40x64xf32>, vector<128x64xf32> -> vector<128x64xf32>
    %c0_11 = arith.constant 0 : index
    %c0_12 = arith.constant 0 : index
    %19 = vector.load %arg9[%c0_11, %c0_12] : memref<1x64xf32, #tpu.memory_space<vmem>>, vector<1x64xf32>
    %20 = vector.broadcast %19 : vector<1x64xf32> to vector<128x64xf32>
    %21 = arith.addf %18, %20 : vector<128x64xf32>
    %cst_13 = arith.constant 0.000000e+00 : f32
    %22 = vector.broadcast %cst_13 : f32 to vector<128x64xf32>
    %23 = arith.maximumf %21, %22 : vector<128x64xf32>
    %24 = vector.extract_strided_slice %23 {offsets = [0, 0], sizes = [128, 32], strides = [1, 1]} : vector<128x64xf32> to vector<128x32xf32>
    %c0_14 = arith.constant 0 : index
    %c0_15 = arith.constant 0 : index
    %25 = vector.load %arg10[%c0_14, %c0_15] : memref<32x32xf32, #tpu.memory_space<vmem>>, vector<32x32xf32>
    %cst_16 = arith.constant dense<0.000000e+00> : vector<128x32xf32>
    %26 = tpu.matmul %24, %25, %cst_16 {dimension_numbers = #tpu.dot_dimension_numbers<[1], [0], [0], [1], [0, 0, 1, 1], [], []>} : vector<128x32xf32>, vector<32x32xf32>, vector<128x32xf32> -> vector<128x32xf32>
    %c0_17 = arith.constant 0 : index
    %c0_18 = arith.constant 0 : index
    %27 = vector.load %arg11[%c0_17, %c0_18] : memref<1x32xf32, #tpu.memory_space<vmem>>, vector<1x32xf32>
    %28 = vector.broadcast %27 : vector<1x32xf32> to vector<128x32xf32>
    %29 = arith.addf %26, %28 : vector<128x32xf32>
    %30 = vector.extract_strided_slice %23 {offsets = [0, 32], sizes = [128, 32], strides = [1, 1]} : vector<128x64xf32> to vector<128x32xf32>
    %c0_19 = arith.constant 0 : index
    %c0_20 = arith.constant 0 : index
    %31 = vector.load %arg12[%c0_19, %c0_20] : memref<32x32xf32, #tpu.memory_space<vmem>>, vector<32x32xf32>
    %cst_21 = arith.constant dense<0.000000e+00> : vector<128x32xf32>
    %32 = tpu.matmul %30, %31, %cst_21 {dimension_numbers = #tpu.dot_dimension_numbers<[1], [0], [0], [1], [0, 0, 1, 1], [], []>} : vector<128x32xf32>, vector<32x32xf32>, vector<128x32xf32> -> vector<128x32xf32>
    %c0_22 = arith.constant 0 : index
    %c0_23 = arith.constant 0 : index
    %33 = vector.load %arg13[%c0_22, %c0_23] : memref<1x32xf32, #tpu.memory_space<vmem>>, vector<1x32xf32>
    %34 = vector.broadcast %33 : vector<1x32xf32> to vector<128x32xf32>
    %35 = arith.addf %32, %34 : vector<128x32xf32>
    %c0_24 = arith.constant 0 : index
    %c0_25 = arith.constant 0 : index
    %36 = vector.load %arg5[%c0_24, %c0_25] : memref<1x128xi32, #tpu.memory_space<vmem>>, vector<1x128xi32>
    %c0_26 = arith.constant 0 : index
    %c0_27 = arith.constant 0 : index
    %37 = vector.load %arg4[%c0_26, %c0_27] : memref<1x128xi32, #tpu.memory_space<vmem>>, vector<1x128xi32>
    %38 = tpu.concatenate %36, %37 in 1 : vector<1x128xi32>, vector<1x128xi32> -> vector<1x256xi32>
    %39 = tpu.iota {dimensions = array<i32: 0>} : vector<16x256xi32>
    %40 = vector.broadcast %38 : vector<1x256xi32> to vector<16x256xi32>
    %41 = arith.cmpi eq, %40, %39 : vector<16x256xi32>
    %42 = arith.extui %41 : vector<16x256xi1> to vector<16x256xi32>
    %43 = arith.sitofp %42 : vector<16x256xi32> to vector<16x256xf32>
    %44 = tpu.concatenate %29, %35 in 0 : vector<128x32xf32>, vector<128x32xf32> -> vector<256x32xf32>
    %cst_28 = arith.constant dense<0.000000e+00> : vector<16x32xf32>
    %45 = tpu.matmul %43, %44, %cst_28 {dimension_numbers = #tpu.dot_dimension_numbers<[1], [0], [0], [1], [0, 0, 1, 1], [], []>} : vector<16x256xf32>, vector<256x32xf32>, vector<16x32xf32> -> vector<16x32xf32>
    %c0_29 = arith.constant 0 : index
    %c0_30 = arith.constant 0 : index
    %c0_31 = arith.constant 0 : index
    %46 = vector.load %arg14[%c0_29, %c0_30, %c0_31] : memref<1x16x32xf32, #tpu.memory_space<vmem>>, vector<1x16x32xf32>
    %47 = vector.shape_cast %45 : vector<16x32xf32> to vector<1x16x32xf32>
    %48 = arith.addf %46, %47 : vector<1x16x32xf32>
    %c0_32 = arith.constant 0 : index
    %c0_33 = arith.constant 0 : index
    %c0_34 = arith.constant 0 : index
    %49 = vector.load %arg14[%c0_32, %c0_33, %c0_34] : memref<1x16x32xf32, #tpu.memory_space<vmem>>, vector<1x16x32xf32>
    tpu.vector_store %arg14[%c0_32, %c0_33, %c0_34], %48 {strides = array<i32>} : memref<1x16x32xf32, #tpu.memory_space<vmem>>, vector<1x16x32xf32>,
    return
  }
  func.func @transform_0(%arg0: i32, %arg1: i32) -> (i32, i32) {
    %c2_i32 = arith.constant 2 : i32
    %0 = arith.muli %arg0, %c2_i32 : i32
    %1 = arith.addi %0, %arg1 : i32
    %c0_i32 = arith.constant 0 : i32
    %c0_i32_0 = arith.constant 0 : i32
    return %1, %c0_i32 : i32, i32
  }
  func.func @transform_1(%arg0: i32, %arg1: i32) -> (i32, i32) {
    %c2_i32 = arith.constant 2 : i32
    %0 = arith.muli %arg0, %c2_i32 : i32
    %1 = arith.addi %0, %arg1 : i32
    %c0_i32 = arith.constant 0 : i32
    %c0_i32_0 = arith.constant 0 : i32
    return %1, %c0_i32 : i32, i32
  }
  func.func @transform_2(%arg0: i32, %arg1: i32) -> (i32, i32) {
    %c2_i32 = arith.constant 2 : i32
    %0 = arith.muli %arg0, %c2_i32 : i32
    %1 = arith.addi %0, %arg1 : i32
    %c0_i32 = arith.constant 0 : i32
    %c0_i32_0 = arith.constant 0 : i32
    return %c0_i32, %1 : i32, i32
  }
  func.func @transform_3(%arg0: i32, %arg1: i32) -> (i32, i32) {
    %c2_i32 = arith.constant 2 : i32
    %0 = arith.muli %arg0, %c2_i32 : i32
    %1 = arith.addi %0, %arg1 : i32
    %c0_i32 = arith.constant 0 : i32
    %c0_i32_0 = arith.constant 0 : i32
    return %c0_i32, %1 : i32, i32
  }
  func.func @transform_4(%arg0: i32, %arg1: i32) -> (i32, i32) {
    %c0_i32 = arith.constant 0 : i32
    %c0_i32_0 = arith.constant 0 : i32
    %c0_i32_1 = arith.constant 0 : i32
    return %c0_i32, %c0_i32_0 : i32, i32
  }
  func.func @transform_5(%arg0: i32, %arg1: i32) -> (i32, i32) {
    %c2_i32 = arith.constant 2 : i32
    %0 = arith.muli %arg0, %c2_i32 : i32
    %1 = arith.addi %0, %arg1 : i32
    %c0_i32 = arith.constant 0 : i32
    %c0_i32_0 = arith.constant 0 : i32
    return %1, %c0_i32 : i32, i32
  }
  func.func @transform_6(%arg0: i32, %arg1: i32) -> (i32, i32) {
    %c0_i32 = arith.constant 0 : i32
    %c0_i32_0 = arith.constant 0 : i32
    %c0_i32_1 = arith.constant 0 : i32
    return %c0_i32, %c0_i32_0 : i32, i32
  }
  func.func @transform_7(%arg0: i32, %arg1: i32) -> (i32, i32) {
    %c0_i32 = arith.constant 0 : i32
    %c0_i32_0 = arith.constant 0 : i32
    %c0_i32_1 = arith.constant 0 : i32
    return %c0_i32, %c0_i32_0 : i32, i32
  }
  func.func @transform_8(%arg0: i32, %arg1: i32) -> (i32, i32) {
    %c0_i32 = arith.constant 0 : i32
    %c0_i32_0 = arith.constant 0 : i32
    %c0_i32_1 = arith.constant 0 : i32
    return %c0_i32, %c0_i32_0 : i32, i32
  }
  func.func @transform_9(%arg0: i32, %arg1: i32) -> (i32, i32) {
    %c0_i32 = arith.constant 0 : i32
    %c0_i32_0 = arith.constant 0 : i32
    %c0_i32_1 = arith.constant 0 : i32
    return %c0_i32, %c0_i32_0 : i32, i32
  }
  func.func @transform_10(%arg0: i32, %arg1: i32) -> (i32, i32) {
    %c0_i32 = arith.constant 0 : i32
    %c0_i32_0 = arith.constant 0 : i32
    %c0_i32_1 = arith.constant 0 : i32
    return %c0_i32, %c0_i32_0 : i32, i32
  }
  func.func @transform_11(%arg0: i32, %arg1: i32) -> (i32, i32) {
    %c0_i32 = arith.constant 0 : i32
    %c0_i32_0 = arith.constant 0 : i32
    %c0_i32_1 = arith.constant 0 : i32
    return %c0_i32, %c0_i32_0 : i32, i32
  }
  func.func @transform_12(%arg0: i32, %arg1: i32) -> (i32, i32, i32) {
    %c0_i32 = arith.constant 0 : i32
    %c0_i32_0 = arith.constant 0 : i32
    %c0_i32_1 = arith.constant 0 : i32
    return %arg0, %c0_i32, %c0_i32_0 : i32, i32, i32
  }
}

module attributes {stable_mosaic.version = 11 : i64} {
  func.func @_edge_accum_kernel(%arg0: i32, %arg1: i32, %arg2: memref<128x1xi32, #tpu.memory_space<vmem>>, %arg3: memref<128x1xi32, #tpu.memory_space<vmem>>, %arg4: memref<1x128xi32, #tpu.memory_space<vmem>>, %arg5: memref<1x128xi32, #tpu.memory_space<vmem>>, %arg6: memref<16x16xf32, #tpu.memory_space<vmem>>, %arg7: memref<128x8xf32, #tpu.memory_space<vmem>>, %arg8: memref<40x64xf32, #tpu.memory_space<vmem>>, %arg9: memref<1x64xf32, #tpu.memory_space<vmem>>, %arg10: memref<32x32xf32, #tpu.memory_space<vmem>>, %arg11: memref<1x32xf32, #tpu.memory_space<vmem>>, %arg12: memref<32x32xf32, #tpu.memory_space<vmem>>, %arg13: memref<1x32xf32, #tpu.memory_space<vmem>>, %arg14: memref<1x16x32xf32, #tpu.memory_space<vmem>>) attributes {dimension_semantics = [#tpu.dimension_semantics<parallel>, #tpu.dimension_semantics<arbitrary>], iteration_bounds = array<i64: 2, 2>, scalar_prefetch = 0 : i64, scratch_operands = 0 : i64, tpu.core_type = #tpu.core_type<tc>, window_params = [{transform_indices = @transform_0, window_bounds = array<i64: 128, 1>}, {transform_indices = @transform_1, window_bounds = array<i64: 128, 1>}, {transform_indices = @transform_2, window_bounds = array<i64: 1, 128>}, {transform_indices = @transform_3, window_bounds = array<i64: 1, 128>}, {pipeline_mode = #tpu.pipeline_mode<synchronous>, transform_indices = @transform_4, window_bounds = array<i64: 16, 16>}, {transform_indices = @transform_5, window_bounds = array<i64: 128, 8>}, {pipeline_mode = #tpu.pipeline_mode<synchronous>, transform_indices = @transform_6, window_bounds = array<i64: 40, 64>}, {pipeline_mode = #tpu.pipeline_mode<synchronous>, transform_indices = @transform_7, window_bounds = array<i64: 1, 64>}, {pipeline_mode = #tpu.pipeline_mode<synchronous>, transform_indices = @transform_8, window_bounds = array<i64: 32, 32>}, {pipeline_mode = #tpu.pipeline_mode<synchronous>, transform_indices = @transform_9, window_bounds = array<i64: 1, 32>}, {pipeline_mode = #tpu.pipeline_mode<synchronous>, transform_indices = @transform_10, window_bounds = array<i64: 32, 32>}, {pipeline_mode = #tpu.pipeline_mode<synchronous>, transform_indices = @transform_11, window_bounds = array<i64: 1, 32>}, {transform_indices = @transform_12, window_bounds = array<i64: 1, 16, 32>}]} {
    %c0_i32 = arith.constant 0 : i32
    %0 = arith.cmpi eq, %arg1, %c0_i32 : i32
    %1 = arith.extui %0 : i1 to i32
    %c0_i32_0 = arith.constant 0 : i32
    %2 = arith.cmpi ne, %1, %c0_i32_0 : i32
    scf.if %2 {
      %cst_35 = arith.constant 0.000000e+00 : f32
      %50 = vector.broadcast %cst_35 : f32 to vector<1x16x32xf32>
      %c0_36 = arith.constant 0 : index
      %c0_37 = arith.constant 0 : index
      %c0_38 = arith.constant 0 : index
      %51 = vector.load %arg14[%c0_36, %c0_37, %c0_38] : memref<1x16x32xf32, #tpu.memory_space<vmem>>, vector<1x16x32xf32>
      tpu.vector_store %arg14[%c0_36, %c0_37, %c0_38], %50 {strides = array<i32>} : memref<1x16x32xf32, #tpu.memory_space<vmem>>, vector<1x16x32xf32>,
    } else {
    }
    %c0 = arith.constant 0 : index
    %c0_1 = arith.constant 0 : index
    %3 = vector.load %arg6[%c0, %c0_1] : memref<16x16xf32, #tpu.memory_space<vmem>>, vector<16x16xf32>
    %c0_2 = arith.constant 0 : index
    %c0_3 = arith.constant 0 : index
    %4 = vector.load %arg7[%c0_2, %c0_3] : memref<128x8xf32, #tpu.memory_space<vmem>>, vector<128x8xf32>
    %c0_4 = arith.constant 0 : index
    %c0_5 = arith.constant 0 : index
    %5 = vector.load %arg2[%c0_4, %c0_5] : memref<128x1xi32, #tpu.memory_space<vmem>>, vector<128x1xi32>
    %c0_6 = arith.constant 0 : index
    %c0_7 = arith.constant 0 : index
    %6 = vector.load %arg3[%c0_6, %c0_7] : memref<128x1xi32, #tpu.memory_space<vmem>>, vector<128x1xi32>
    %7 = tpu.concatenate %5, %6 in 0 : vector<128x1xi32>, vector<128x1xi32> -> vector<256x1xi32>
    %8 = tpu.iota {dimensions = array<i32: 1>} : vector<256x16xi32>
    %9 = vector.broadcast %7 : vector<256x1xi32> to vector<256x16xi32>
    %10 = arith.cmpi eq, %9, %8 : vector<256x16xi32>
    %11 = arith.extui %10 : vector<256x16xi1> to vector<256x16xi32>
    %12 = arith.sitofp %11 : vector<256x16xi32> to vector<256x16xf32>
    %cst = arith.constant dense<0.000000e+00> : vector<256x16xf32>
    %13 = tpu.matmul %12, %3, %cst {dimension_numbers = #tpu.dot_dimension_numbers<[1], [0], [0], [1], [0, 0, 1, 1], [], []>} : vector<256x16xf32>, vector<16x16xf32>, vector<256x16xf32> -> vector<256x16xf32>
    %14 = vector.extract_strided_slice %13 {offsets = [0, 0], sizes = [128, 16], strides = [1, 1]} : vector<256x16xf32> to vector<128x16xf32>
    %15 = vector.extract_strided_slice %13 {offsets = [128, 0], sizes = [128, 16], strides = [1, 1]} : vector<256x16xf32> to vector<128x16xf32>
    %16 = tpu.concatenate %14, %15, %4 in 1 : vector<128x16xf32>, vector<128x16xf32>, vector<128x8xf32> -> vector<128x40xf32>
    %c0_8 = arith.constant 0 : index
    %c0_9 = arith.constant 0 : index
    %17 = vector.load %arg8[%c0_8, %c0_9] : memref<40x64xf32, #tpu.memory_space<vmem>>, vector<40x64xf32>
    %cst_10 = arith.constant dense<0.000000e+00> : vector<128x64xf32>
    %18 = tpu.matmul %16, %17, %cst_10 {dimension_numbers = #tpu.dot_dimension_numbers<[1], [0], [0], [1], [0, 0, 1, 1], [], []>} : vector<128x40xf32>, vector<40x64xf32>, vector<128x64xf32> -> vector<128x64xf32>
    %c0_11 = arith.constant 0 : index
    %c0_12 = arith.constant 0 : index
    %19 = vector.load %arg9[%c0_11, %c0_12] : memref<1x64xf32, #tpu.memory_space<vmem>>, vector<1x64xf32>
    %20 = vector.broadcast %19 : vector<1x64xf32> to vector<128x64xf32>
    %21 = arith.addf %18, %20 : vector<128x64xf32>
    %cst_13 = arith.constant 0.000000e+00 : f32
    %22 = vector.broadcast %cst_13 : f32 to vector<128x64xf32>
    %23 = arith.maximumf %21, %22 : vector<128x64xf32>
    %24 = vector.extract_strided_slice %23 {offsets = [0, 0], sizes = [128, 32], strides = [1, 1]} : vector<128x64xf32> to vector<128x32xf32>
    %c0_14 = arith.constant 0 : index
    %c0_15 = arith.constant 0 : index
    %25 = vector.load %arg10[%c0_14, %c0_15] : memref<32x32xf32, #tpu.memory_space<vmem>>, vector<32x32xf32>
    %cst_16 = arith.constant dense<0.000000e+00> : vector<128x32xf32>
    %26 = tpu.matmul %24, %25, %cst_16 {dimension_numbers = #tpu.dot_dimension_numbers<[1], [0], [0], [1], [0, 0, 1, 1], [], []>} : vector<128x32xf32>, vector<32x32xf32>, vector<128x32xf32> -> vector<128x32xf32>
    %c0_17 = arith.constant 0 : index
    %c0_18 = arith.constant 0 : index
    %27 = vector.load %arg11[%c0_17, %c0_18] : memref<1x32xf32, #tpu.memory_space<vmem>>, vector<1x32xf32>
    %28 = vector.broadcast %27 : vector<1x32xf32> to vector<128x32xf32>
    %29 = arith.addf %26, %28 : vector<128x32xf32>
    %30 = vector.extract_strided_slice %23 {offsets = [0, 32], sizes = [128, 32], strides = [1, 1]} : vector<128x64xf32> to vector<128x32xf32>
    %c0_19 = arith.constant 0 : index
    %c0_20 = arith.constant 0 : index
    %31 = vector.load %arg12[%c0_19, %c0_20] : memref<32x32xf32, #tpu.memory_space<vmem>>, vector<32x32xf32>
    %cst_21 = arith.constant dense<0.000000e+00> : vector<128x32xf32>
    %32 = tpu.matmul %30, %31, %cst_21 {dimension_numbers = #tpu.dot_dimension_numbers<[1], [0], [0], [1], [0, 0, 1, 1], [], []>} : vector<128x32xf32>, vector<32x32xf32>, vector<128x32xf32> -> vector<128x32xf32>
    %c0_22 = arith.constant 0 : index
    %c0_23 = arith.constant 0 : index
    %33 = vector.load %arg13[%c0_22, %c0_23] : memref<1x32xf32, #tpu.memory_space<vmem>>, vector<1x32xf32>
    %34 = vector.broadcast %33 : vector<1x32xf32> to vector<128x32xf32>
    %35 = arith.addf %32, %34 : vector<128x32xf32>
    %c0_24 = arith.constant 0 : index
    %c0_25 = arith.constant 0 : index
    %36 = vector.load %arg5[%c0_24, %c0_25] : memref<1x128xi32, #tpu.memory_space<vmem>>, vector<1x128xi32>
    %c0_26 = arith.constant 0 : index
    %c0_27 = arith.constant 0 : index
    %37 = vector.load %arg4[%c0_26, %c0_27] : memref<1x128xi32, #tpu.memory_space<vmem>>, vector<1x128xi32>
    %38 = tpu.concatenate %36, %37 in 1 : vector<1x128xi32>, vector<1x128xi32> -> vector<1x256xi32>
    %39 = tpu.iota {dimensions = array<i32: 0>} : vector<16x256xi32>
    %40 = vector.broadcast %38 : vector<1x256xi32> to vector<16x256xi32>
    %41 = arith.cmpi eq, %40, %39 : vector<16x256xi32>
    %42 = arith.extui %41 : vector<16x256xi1> to vector<16x256xi32>
    %43 = arith.sitofp %42 : vector<16x256xi32> to vector<16x256xf32>
    %44 = tpu.concatenate %29, %35 in 0 : vector<128x32xf32>, vector<128x32xf32> -> vector<256x32xf32>
    %cst_28 = arith.constant dense<0.000000e+00> : vector<16x32xf32>
    %45 = tpu.matmul %43, %44, %cst_28 {dimension_numbers = #tpu.dot_dimension_numbers<[1], [0], [0], [1], [0, 0, 1, 1], [], []>} : vector<16x256xf32>, vector<256x32xf32>, vector<16x32xf32> -> vector<16x32xf32>
    %c0_29 = arith.constant 0 : index
    %c0_30 = arith.constant 0 : index
    %c0_31 = arith.constant 0 : index
    %46 = vector.load %arg14[%c0_29, %c0_30, %c0_31] : memref<1x16x32xf32, #tpu.memory_space<vmem>>, vector<1x16x32xf32>
    %47 = vector.shape_cast %45 : vector<16x32xf32> to vector<1x16x32xf32>
    %48 = arith.addf %46, %47 : vector<1x16x32xf32>
    %c0_32 = arith.constant 0 : index
    %c0_33 = arith.constant 0 : index
    %c0_34 = arith.constant 0 : index
    %49 = vector.load %arg14[%c0_32, %c0_33, %c0_34] : memref<1x16x32xf32, #tpu.memory_space<vmem>>, vector<1x16x32xf32>
    tpu.vector_store %arg14[%c0_32, %c0_33, %c0_34], %48 {strides = array<i32>} : memref<1x16x32xf32, #tpu.memory_space<vmem>>, vector<1x16x32xf32>,
    return
  }
  func.func @transform_0(%arg0: i32, %arg1: i32) -> (i32, i32) {
    %c2_i32 = arith.constant 2 : i32
    %0 = arith.muli %arg0, %c2_i32 : i32
    %1 = arith.addi %0, %arg1 : i32
    %c0_i32 = arith.constant 0 : i32
    %c0_i32_0 = arith.constant 0 : i32
    return %1, %c0_i32 : i32, i32
  }
  func.func @transform_1(%arg0: i32, %arg1: i32) -> (i32, i32) {
    %c2_i32 = arith.constant 2 : i32
    %0 = arith.muli %arg0, %c2_i32 : i32
    %1 = arith.addi %0, %arg1 : i32
    %c0_i32 = arith.constant 0 : i32
    %c0_i32_0 = arith.constant 0 : i32
    return %1, %c0_i32 : i32, i32
  }
  func.func @transform_2(%arg0: i32, %arg1: i32) -> (i32, i32) {
    %c2_i32 = arith.constant 2 : i32
    %0 = arith.muli %arg0, %c2_i32 : i32
    %1 = arith.addi %0, %arg1 : i32
    %c0_i32 = arith.constant 0 : i32
    %c0_i32_0 = arith.constant 0 : i32
    return %c0_i32, %1 : i32, i32
  }
  func.func @transform_3(%arg0: i32, %arg1: i32) -> (i32, i32) {
    %c2_i32 = arith.constant 2 : i32
    %0 = arith.muli %arg0, %c2_i32 : i32
    %1 = arith.addi %0, %arg1 : i32
    %c0_i32 = arith.constant 0 : i32
    %c0_i32_0 = arith.constant 0 : i32
    return %c0_i32, %1 : i32, i32
  }
  func.func @transform_4(%arg0: i32, %arg1: i32) -> (i32, i32) {
    %c0_i32 = arith.constant 0 : i32
    %c0_i32_0 = arith.constant 0 : i32
    %c0_i32_1 = arith.constant 0 : i32
    return %c0_i32, %c0_i32_0 : i32, i32
  }
  func.func @transform_5(%arg0: i32, %arg1: i32) -> (i32, i32) {
    %c2_i32 = arith.constant 2 : i32
    %0 = arith.muli %arg0, %c2_i32 : i32
    %1 = arith.addi %0, %arg1 : i32
    %c0_i32 = arith.constant 0 : i32
    %c0_i32_0 = arith.constant 0 : i32
    return %1, %c0_i32 : i32, i32
  }
  func.func @transform_6(%arg0: i32, %arg1: i32) -> (i32, i32) {
    %c0_i32 = arith.constant 0 : i32
    %c0_i32_0 = arith.constant 0 : i32
    %c0_i32_1 = arith.constant 0 : i32
    return %c0_i32, %c0_i32_0 : i32, i32
  }
  func.func @transform_7(%arg0: i32, %arg1: i32) -> (i32, i32) {
    %c0_i32 = arith.constant 0 : i32
    %c0_i32_0 = arith.constant 0 : i32
    %c0_i32_1 = arith.constant 0 : i32
    return %c0_i32, %c0_i32_0 : i32, i32
  }
  func.func @transform_8(%arg0: i32, %arg1: i32) -> (i32, i32) {
    %c0_i32 = arith.constant 0 : i32
    %c0_i32_0 = arith.constant 0 : i32
    %c0_i32_1 = arith.constant 0 : i32
    return %c0_i32, %c0_i32_0 : i32, i32
  }
  func.func @transform_9(%arg0: i32, %arg1: i32) -> (i32, i32) {
    %c0_i32 = arith.constant 0 : i32
    %c0_i32_0 = arith.constant 0 : i32
    %c0_i32_1 = arith.constant 0 : i32
    return %c0_i32, %c0_i32_0 : i32, i32
  }
  func.func @transform_10(%arg0: i32, %arg1: i32) -> (i32, i32) {
    %c0_i32 = arith.constant 0 : i32
    %c0_i32_0 = arith.constant 0 : i32
    %c0_i32_1 = arith.constant 0 : i32
    return %c0_i32, %c0_i32_0 : i32, i32
  }
  func.func @transform_11(%arg0: i32, %arg1: i32) -> (i32, i32) {
    %c0_i32 = arith.constant 0 : i32
    %c0_i32_0 = arith.constant 0 : i32
    %c0_i32_1 = arith.constant 0 : i32
    return %c0_i32, %c0_i32_0 : i32, i32
  }
  func.func @transform_12(%arg0: i32, %arg1: i32) -> (i32, i32, i32) {
    %c0_i32 = arith.constant 0 : i32
    %c0_i32_0 = arith.constant 0 : i32
    %c0_i32_1 = arith.constant 0 : i32
    return %arg0, %c0_i32, %c0_i32_0 : i32, i32, i32
  }
}

</mosaic_0001>

<bundles_post_ra>
// kernel: tpu_custom_call.1
= control target key start
LH: loop header
LB: loop body
LE: loop exit
PB: predicated region body
PF: predicated region fallthrough
CT: control target
= control target key end

     0   :  { %s3458_s0 = inlined_call_operand.vmem [shape: s32[512,1], index: 0, kind: input, shape index: {}]   ;;  %s3459_s1 = inlined_call_operand.vmem [shape: s32[512,1], index: 1, kind: input, shape index: {}]   ;;  %s3460_s2 = inlined_call_operand.vmem [shape: s32[1,512], index: 2, kind: input, shape index: {}]   ;;  %s3461_s3 = inlined_call_operand.vmem [shape: s32[1,512], index: 3, kind: input, shape index: {}]   ;;  %s3462_s4 = inlined_call_operand.vmem [shape: f32[16,16], index: 4, kind: input, shape index: {}]   ;;  %s3463_s5 = inlined_call_operand.vmem [shape: f32[512,8], index: 5, kind: input, shape index: {}]   ;;  %s3464_s6 = inlined_call_operand.vmem [shape: f32[40,64], index: 6, kind: input, shape index: {}]   ;;  %s3465_s7 = inlined_call_operand.vmem [shape: f32[1,64], index: 7, kind: input, shape index: {}]   ;;  %s3466_s8 = inlined_call_operand.vmem [shape: f32[32,32], index: 8, kind: input, shape index: {}]   ;;  %s3467_s9 = inlined_call_operand.vmem [shape: f32[1,32], index: 9, kind: input, shape index: {}]   ;;  %s3468_s10 = inlined_call_operand.vmem [shape: f32[32,32], index: 10, kind: input, shape index: {}]   ;;  %s3469_s11 = inlined_call_operand.vmem [shape: f32[1,32], index: 11, kind: input, shape index: {}]   ;;  %s3470_s12 = inlined_call_operand.hbm [shape: f32[2,16,32], index: 12, kind: output, shape index: {}]  }
   0x1   :  { %3479 = sst [smem:[#allocation13_spill]] %s3470_s12 }
   0x2   :  { %17 = vsyncpa [#allocation3], 0  ;;  %s2888_s21 = smov 0   ;;  %s2890_s22 = smov 0  }
   0x3   :  { %s2892_s23 = smov 0   ;;  %s2894_s24 = smov 0  }
   0x4   :  { %s2896_s25 = smov 0   ;;  %s2898_s26 = smov 0  }
   0x5   :  { %s2900_s27 = smov 0  }
   0x6 LB: > { %3480 = sst [smem:[#allocation5_spill]] %s2791_s22  ;;  %s32_s28 = sadd.s32 1, %s2803_s25  ;;  %s2811_s27 = sphi %s2900_s27, %s23_s27   ;;  %s2807_s26 = sphi %s2898_s26, %s3498_s26   ;;  %s2803_s25 = sphi %s2896_s25, %s3497_s25   ;;  %s2799_s24 = sphi %s2894_s24, %s3496_s24   ;;  %s2795_s23 = sphi %s2892_s23, %s3495_s23   ;;  %s2791_s22 = sphi %s2890_s22, %s3494_s22   ;;  %s2787_s21 = sphi %s2888_s21, %s3493_s21  }
   0x7   : > { %3481 = sst [smem:[#allocation6_spill]] %s2803_s25  ;;  %p33_p0 = scmp.ge.s32.totalorder %s32_s28, 2 }
   0x8   : > { %3482 = sst [smem:[#allocation7_spill]] %s2807_s26  ;;  %s35_s29 = sadd.s32 1, %s2807_s26 }
   0x9   : > { %3483 = sst [smem:[#allocation8_spill]] %s2811_s27  ;;  %s2154_s30 = sadd.s32 4294967295, %s2811_s27  }
   0xa   : > { %p349_p1 = scmp.ne.s32.totalorder %s2791_s22, %s2787_s21  ;;  %s3500_s28 = smov (%p33_p0, %s32_s28), 0 }
   0xb   : > { %3484 = sst [smem:[#allocation9_spill]] %s3500_s28  ;;  %s3502_s29 = smov (!%p33_p0, %s35_s29), %s2807_s26 }
   0xc   : > { %p350_p2 = scmp.eq.s32.totalorder %s2154_s30, 3  ;;  %p2167_p3 = scmp.ge.s32.totalorder %s2811_s27, 1 }
   0xd   : > { %p37_p4 = scmp.ge.s32.totalorder %s3502_s29, 2  ;;  %p454_p5 = scmp.lt.s32.totalorder %s2811_s27, 5 }
   0xe   : > { %p2930_p6 = por %p350_p2, %p349_p1  ;;  %s339_s15 = sadd.s32 1, %s2791_s22 }
   0xf   : > { %s3504_s29 = smov (%p37_p4, %s3502_s29), 0  ;;  %p455_p7 = pnand %p2167_p3, %p454_p5 }
  0x10   : > { %s3485_s13 = scalar_select %p2930_p6, 1, 0 }
  0x11   : > { %3487 = sst [smem:[#allocation11_spill]] %s3504_s29  ;;  %s336_s14 = ssub.s32 %s2807_s26, %s3504_s29 }
  0x12   : > { %3486 = sst [smem:[#allocation10_spill]] %s3485_s13  ;;  %p337_p8 = scmp.eq.s32.totalorder %s336_s14, 0 }
  0x13   : > { %458 = sbr.rel (%p455_p7) target bundleno = 1378 (0x562), region = 68  ;;  %s2168_s17 = sshll.u32 (!%p455_p7), %s2799_s24, 1 }
  0x14   : > { %s2940_s16 = scalar_select %p337_p8, %s2791_s22, %s339_s15  }
  0x15   : > { %s518_s18 = sadd.s32 (!%p455_p7), %s2795_s23, %s2168_s17  ;;  %p2179_p11 = scmp.ne.s32.totalorder (!%p455_p7), %s2795_s23, 0 }
  0x16   : > { %3488 = sst [smem:[#allocation12_spill]] %s2940_s16  ;;  %s2169_s19 = sshll.u32 (!%p455_p7), %s518_s18, 4 }
  0x17   : > { %p539_p9 = scmp.lt.s32.totalorder (!%p455_p7), %s518_s18, 3  ;;  %p520_p10 = scmp.lt.s32.totalorder (!%p455_p7), %s2169_s19, 63 }
  0x1a   : > { %s3506_s18 = smov (!%p539_p9, %s518_s18), 3  ;;  %s3508_s19 = smov (!%p520_p10, %s2169_s19), 63 }
  0x1b   : > { %s541_s30 = scalar_lea.vmem %s3460_s2, %s3506_s18  ;;  %s548_s29 = scalar_lea.vmem %s3461_s3, %s3506_s18  ;;  %vm565_vm0 = vcmask (!%p2179_p11), 261120   ;;  %v2813_v0 = vmov (!%p2179_p11), 0.0  }
  0x1c   : > { %s2170_s28 = sshll.u32 %s3508_s19, 3  ;;  %564 = sbr.rel (%p2179_p11) target bundleno = 35 (0x23), region = 72  ;;  %566 = vst.msk [vmem:[#allocation2] sm:$0xff] (!%p2179_p11), %vm565_vm0, %v2813_v0  ;;  %567 = vst.msk [vmem:[#allocation2 + $0x8] sm:$0xff] (!%p2179_p11), %vm565_vm0, %v2813_v0 }
  0x1d   : > { %s2957_s17 = scalar_lea.vmem %s3458_s0, %s2170_s28  ;;  %s2962_s27 = scalar_lea.vmem %s3459_s1, %s2170_s28 }
  0x1e   : > { %s2967_s20 = scalar_lea.vmem %s3463_s5, %s2170_s28 }
  0x23 PF: > { %v588_v1 = vld [vmem:[%s2957_s17 + $0x10] sm:$0xff]  ;;  %v586_v2 = vld [vmem:[%s2957_s17] sm:$0xff]  ;;  %v2814_v3 = vmov 0   ;;  %v589_v4 = vld [vmem:[%s2957_s17 + $0x18] sm:$0xff]  ;;  %v618_v37 = vlaneseq  ;;  %vm812_vm1 = vcmask 130048   ;;  %v2815_v41 = vmov 0.0  }
  0x24   : > { %2724 = vset.pattern.permute.xlu1 %v2814_v3  ;;  %2723 = vset.pattern.permute.xlu0 %v2814_v3  ;;  %v587_v5 = vld [vmem:[%s2957_s17 + $0x8] sm:$0xff]  ;;  %v590_v7 = vld [vmem:[%s2957_s17 + $0x20] sm:$0xff]  ;;  %v593_v9 = vld [vmem:[%s2957_s17 + $0x38] sm:$0xff]  ;;  %s2816_s26 = smov 32   ;;  %s2817_s22 = smov 16  }
  0x25   : > { %627 = vperm.xlu1 %2724, %v588_v1   ;;  %621 = vperm.xlu0 %2723, %v586_v2   ;;  %v591_v6 = vld [vmem:[%s2957_s17 + $0x28] sm:$0xff]  ;;  %v568_v8 = vld [vmem:[%s3462_s4] sm:$0xff]  ;;  %v592_v10 = vld [vmem:[%s2957_s17 + $0x30] sm:$0xff]  ;;  %v3009_v38 = vand.u32 127, %v618_v37  ;;  %s2818_s28 = smov 96   ;;  %s2309_s18 = sshll.u32 %s2799_s24, 8 }
  0x26   : > { %v569_v11 = vld [vmem:[%s3462_s4 + $0x8] sm:$0xff]  ;;  %v594_v14 = vld [vmem:[%s2957_s17 + $0x40] sm:$0xff]  ;;  %v597_v15 = vld [vmem:[%s2957_s17 + $0x58] sm:$0xff]  ;;  %s2820_s15 = smov [#allocation2]   ;;  %s3490_s23 = sld [smem:[#allocation13_spill]] }
  0x27   : > { %v2593_v12 = vpack.c.bf16 %v569_v11, %v568_v8  ;;  %v595_v13 = vld [vmem:[%s2957_s17 + $0x48] sm:$0xff]  ;;  %v596_v16 = vld [vmem:[%s2957_s17 + $0x50] sm:$0xff]  ;;  %v598_v18 = vld [vmem:[%s2957_s17 + $0x60] sm:$0xff] }
  0x28   : > { %v599_v17 = vld [vmem:[%s2957_s17 + $0x68] sm:$0xff]  ;;  %v601_v19 = vld [vmem:[%s2957_s17 + $0x78] sm:$0xff]  ;;  %v600_v20 = vld [vmem:[%s2957_s17 + $0x70] sm:$0xff]  ;;  %s2056_s17 = sshll.u32 %s2820_s15, 4  ;;  %s3408_s17 = int_to_ptr.vmem [resolvable:$true] %s2056_s17 }
  0x29   : > { %630 = vperm.xlu1 %2724, %v589_v4   ;;  %624 = vperm.xlu0 %2723, %v587_v5   ;;  %v603_v21 = vld [vmem:[%s2962_s27 + $0x8] sm:$0xff]  ;;  %v602_v22 = vld [vmem:[%s2962_s27] sm:$0xff]  ;;  %v605_v23 = vld [vmem:[%s2962_s27 + $0x18] sm:$0xff]  ;;  %s2725_s24 = scalar_lea.vmem %s3408_s17, 256  ;;  %p2732_p1 = scmp.lt.s32.totalorder %s3408_s17, %s3408_s17 }
  0x2a   : > { %2594 = vmatprep.subr.bf16.mxu0 %v2593_v12  ;;  %2653 = vmatprep.subr.bf16.mxu1 %v2593_v12  ;;  %v604_v24 = vld [vmem:[%s2962_s27 + $0x10] sm:$0xff]  ;;  %v607_v25 = vld [vmem:[%s2962_s27 + $0x28] sm:$0xff]  ;;  %v606_v26 = vld [vmem:[%s2962_s27 + $0x20] sm:$0xff]  ;;  %p2726_p12 = scmp.ne.s32.totalorder %s3408_s17, %s2725_s24  ;;  %p2733_p2 = scmp.lt.s32.totalorder %s2725_s24, %s2725_s24 }
  0x2b   : > { %2596 = vmatpush3.bf16.msra.mxu0 %v2593_v12  ;;  %2654 = vmatpush3.bf16.msra.mxu1 %v2593_v12  ;;  %v609_v27 = vld [vmem:[%s2962_s27 + $0x38] sm:$0xff]  ;;  %v608_v28 = vld [vmem:[%s2962_s27 + $0x30] sm:$0xff]  ;;  %v611_v29 = vld [vmem:[%s2962_s27 + $0x48] sm:$0xff] }
  0x2c   : > { %v610_v30 = vld [vmem:[%s2962_s27 + $0x40] sm:$0xff]  ;;  %v613_v31 = vld [vmem:[%s2962_s27 + $0x58] sm:$0xff]  ;;  %v612_v32 = vld [vmem:[%s2962_s27 + $0x50] sm:$0xff]  ;;  %s3406_s25 = scalar_lea.hbm %s3490_s23, %s2309_s18  ;;  %p2727_p13 = pnand %p2726_p12, %p2930_p6 }
  0x2d   : > { %636 = vperm.xlu1 %2724, %v591_v6   ;;  %633 = vperm.xlu0 %2723, %v590_v7   ;;  %v615_v33 = vld [vmem:[%s2962_s27 + $0x68] sm:$0xff]  ;;  %v614_v34 = vld [vmem:[%s2962_s27 + $0x60] sm:$0xff]  ;;  %v617_v35 = vld [vmem:[%s2962_s27 + $0x78] sm:$0xff]  ;;  %p2734_p3 = por %p2733_p2, %p2732_p1 }
  0x2e   : > { %v616_v36 = vld [vmem:[%s2962_s27 + $0x70] sm:$0xff]  ;;  %p2728_p0 = pneg %p2727_p13 }
  0x30   : > { %p2735_p4 = pnand %p2734_p3, %p2728_p0 }
  0x31   : > { %642 = vperm.xlu1 %2724, %v593_v9   ;;  %639 = vperm.xlu0 %2723, %v592_v10  }
  0x35   : > { %648 = vperm.xlu1 %2724, %v595_v13   ;;  %645 = vperm.xlu0 %2723, %v594_v14  }
  0x39   : > { %654 = vperm.xlu1 %2724, %v597_v15   ;;  %651 = vperm.xlu0 %2723, %v596_v16  }
  0x3d   : > { %660 = vperm.xlu1 %2724, %v599_v17   ;;  %657 = vperm.xlu0 %2723, %v598_v18  }
  0x41   : > { %666 = vperm.xlu1 %2724, %v601_v19   ;;  %663 = vperm.xlu0 %2723, %v600_v20  }
  0x45   : > { %672 = vperm.xlu1 %2724, %v603_v21   ;;  %669 = vperm.xlu0 %2723, %v602_v22  }
  0x49   : > { %678 = vperm.xlu1 %2724, %v605_v23   ;;  %675 = vperm.xlu0 %2723, %v604_v24  }
  0x4d   : > { %684 = vperm.xlu1 %2724, %v607_v25   ;;  %681 = vperm.xlu0 %2723, %v606_v26  }
  0x51   : > { %690 = vperm.xlu1 %2724, %v609_v27   ;;  %687 = vperm.xlu0 %2723, %v608_v28  }
  0x55   : > { %696 = vperm.xlu1 %2724, %v611_v29   ;;  %693 = vperm.xlu0 %2723, %v610_v30  }
  0x59   : > { %702 = vperm.xlu1 %2724, %v613_v31   ;;  %699 = vperm.xlu0 %2723, %v612_v32  }
  0x5d   : > { %708 = vperm.xlu1 %2724, %v615_v33   ;;  %705 = vperm.xlu0 %2723, %v614_v34  }
  0x61   : > { %714 = vperm.xlu1 %2724, %v617_v35   ;;  %711 = vperm.xlu0 %2723, %v616_v36  }
  0xa4   : > { %v628_v39 = vpop.permute.xlu1 %627  ;;  %v622_v40 = vpop.permute.xlu0 %621 }
  0xa5   : > { %vm716_vm2 = vcmp.eq.s32.totalorder %v622_v40, %v3009_v38  ;;  %vm718_vm3 = vcmp.eq.s32.totalorder %v628_v39, %v3009_v38 }
  0xa6   : > { %v2180_v42 = vsel %vm716_vm2, 1.0, %v2815_v41  ;;  %v2182_v46 = vsel %vm718_vm3, 1.0, %v2815_v41 }
  0xa7   : > { %2447 = vmatprep.mubr.msk.f32.mxu0 %vm812_vm1, %v2180_v42 }
  0xa8   : > { %v631_v43 = vpop.permute.xlu1 %630  ;;  %v625_v44 = vpop.permute.xlu0 %624 }
  0xa9   : > { %vm717_vm4 = vcmp.eq.s32.totalorder %v625_v44, %v3009_v38  ;;  %vm719_vm5 = vcmp.eq.s32.totalorder %v631_v43, %v3009_v38  ;;  %v571_v43 = vld [vmem:[%s2967_s20 + $0x8] sm:$0xff]  ;;  %v570_v44 = vld [vmem:[%s2967_s20] sm:$0xff] }
  0xaa   : > { %v2181_v45 = vsel %vm717_vm4, 1.0, %v2815_v41  ;;  %v2183_v49 = vsel %vm719_vm5, 1.0, %v2815_v41  ;;  %1216 = vrot.lane.b32.xlu1 %v571_v43, %s2816_s26  ;;  %1214 = vrot.lane.b32.xlu0 %v570_v44, %s2816_s26 }
  0xab   : > { %2448 = vmatmul.mubr.msk.f32.vlgmr.msra.gmra.mrb[0].mxu0 %vm812_vm1, %v2181_v45  ;;  %v572_v45 = vld [vmem:[%s2967_s20 + $0x10] sm:$0xff] }
  0xac   : > { %v637_v47 = vpop.permute.xlu1 %636  ;;  %v634_v48 = vpop.permute.xlu0 %633  ;;  %2450 = vmatprep.mubr.msk.f32.mxu0 %vm812_vm1, %v2182_v46  ;;  %v574_v46 = vld [vmem:[%s2967_s20 + $0x20] sm:$0xff] }
  0xad   : > { %vm720_vm6 = vcmp.eq.s32.totalorder %v634_v48, %v3009_v38  ;;  %vm721_vm7 = vcmp.eq.s32.totalorder %v637_v47, %v3009_v38  ;;  %v577_v47 = vld [vmem:[%s2967_s20 + $0x38] sm:$0xff]  ;;  %v576_v48 = vld [vmem:[%s2967_s20 + $0x30] sm:$0xff] }
  0xae   : > { %v2184_v50 = vsel %vm720_vm6, 1.0, %v2815_v41  ;;  %v2185_v53 = vsel %vm721_vm7, 1.0, %v2815_v41  ;;  %1218 = vrot.lane.b32.xlu0 %v572_v45, %s2816_s26 }
  0xaf   : > { %2451 = vmatmul.mubr.msk.f32.gmra.mrb[2].mxu0 %vm812_vm1, %v2183_v49  ;;  %v579_v49 = vld [vmem:[%s2967_s20 + $0x48] sm:$0xff] }
  0xb0   : > { %v643_v51 = vpop.permute.xlu1 %642  ;;  %v640_v52 = vpop.permute.xlu0 %639  ;;  %2453 = vmatprep.mubr.msk.f32.mxu0 %vm812_vm1, %v2184_v50  ;;  %v578_v50 = vld [vmem:[%s2967_s20 + $0x40] sm:$0xff] }
  0xb1   : > { %vm722_vm8 = vcmp.eq.s32.totalorder %v640_v52, %v3009_v38  ;;  %vm723_vm9 = vcmp.eq.s32.totalorder %v643_v51, %v3009_v38  ;;  %v581_v51 = vld [vmem:[%s2967_s20 + $0x58] sm:$0xff]  ;;  %v580_v52 = vld [vmem:[%s2967_s20 + $0x50] sm:$0xff] }
  0xb2   : > { %v2186_v54 = vsel %vm722_vm8, 1.0, %v2815_v41  ;;  %v2187_v57 = vsel %vm723_vm9, 1.0, %v2815_v41  ;;  %1222 = vrot.lane.b32.xlu0 %v574_v46, %s2816_s26 }
  0xb3   : > { %2454 = vmatmul.mubr.msk.f32.gmra.mrb[4].mxu0 %vm812_vm1, %v2185_v53  ;;  %v1295_v53 = vld [vmem:[%s3464_s6] sm:$0xff] }
  0xb4   : > { %v649_v55 = vpop.permute.xlu1 %648  ;;  %v646_v56 = vpop.permute.xlu0 %645  ;;  %2456 = vmatprep.mubr.msk.f32.mxu0 %vm812_vm1, %v2186_v54  ;;  %v1296_v54 = vld [vmem:[%s3464_s6 + $0x8] sm:$0xff] }
  0xb5   : > { %vm724_vm10 = vcmp.eq.s32.totalorder %v646_v56, %v3009_v38  ;;  %vm725_vm11 = vcmp.eq.s32.totalorder %v649_v55, %v3009_v38  ;;  %v2597_v55 = vpack.c.bf16 %v1296_v54, %v1295_v53 }
  0xb6   : > { %v2188_v58 = vsel %vm724_vm10, 1.0, %v2815_v41  ;;  %v2189_v61 = vsel %vm725_vm11, 1.0, %v2815_v41  ;;  %1226 = vrot.lane.b32.xlu0 %v576_v48, %s2816_s26 }
  0xb7   : > { %2457 = vmatmul.mubr.msk.f32.gmra.mrb[6].mxu0 %vm812_vm1, %v2187_v57  ;;  %2598 = vmatprep.subr.bf16.mxu1 %v2597_v55 }
  0xb8   : > { %v655_v59 = vpop.permute.xlu1 %654  ;;  %v652_v60 = vpop.permute.xlu0 %651  ;;  %2459 = vmatprep.mubr.msk.f32.mxu0 %vm812_vm1, %v2188_v58 }
  0xb9   : > { %vm726_vm12 = vcmp.eq.s32.totalorder %v652_v60, %v3009_v38  ;;  %vm727_vm13 = vcmp.eq.s32.totalorder %v655_v59, %v3009_v38 }
  0xba   : > { %v2190_v62 = vsel %vm726_vm12, 1.0, %v2815_v41  ;;  %v2191_v1 = vsel %vm727_vm13, 1.0, %v2815_v41  ;;  %1230 = vrot.lane.b32.xlu0 %v578_v50, %s2816_s26 }
  0xbb   : > { %2460 = vmatmul.mubr.msk.f32.gmra.mrb[8].mxu0 %vm812_vm1, %v2189_v61 }
  0xbc   : > { %v661_v63 = vpop.permute.xlu1 %660  ;;  %v658_v0 = vpop.permute.xlu0 %657  ;;  %2462 = vmatprep.mubr.msk.f32.mxu0 %vm812_vm1, %v2190_v62 }
  0xbd   : > { %vm728_vm14 = vcmp.eq.s32.totalorder %v658_v0, %v3009_v38  ;;  %vm729_vm15 = vcmp.eq.s32.totalorder %v661_v63, %v3009_v38 }
  0xbe   : > { %v2192_v2 = vsel %vm728_vm14, 1.0, %v2815_v41  ;;  %v2193_v5 = vsel %vm729_vm15, 1.0, %v2815_v41  ;;  %1234 = vrot.lane.b32.xlu0 %v580_v52, %s2816_s26 }
  0xbf   : > { %2463 = vmatmul.mubr.msk.f32.gmra.mrb[10].mxu0 %vm812_vm1, %v2191_v1 }
  0xc0   : > { %v667_v3 = vpop.permute.xlu1 %666  ;;  %v664_v4 = vpop.permute.xlu0 %663  ;;  %2465 = vmatprep.mubr.msk.f32.mxu0 %vm812_vm1, %v2192_v2 }
  0xc1   : > { %vm730_vm0 = vcmp.eq.s32.totalorder %v664_v4, %v3009_v38  ;;  %vm731_vm2 = vcmp.eq.s32.totalorder %v667_v3, %v3009_v38 }
  0xc2   : > { %v2194_v6 = vsel %vm730_vm0, 1.0, %v2815_v41  ;;  %v2195_v9 = vsel %vm731_vm2, 1.0, %v2815_v41 }
  0xc3   : > { %2466 = vmatmul.mubr.msk.f32.gmra.mrb[12].mxu0 %vm812_vm1, %v2193_v5 }
  0xc4   : > { %v673_v7 = vpop.permute.xlu1 %672  ;;  %v670_v8 = vpop.permute.xlu0 %669  ;;  %2468 = vmatprep.mubr.msk.f32.mxu0 %vm812_vm1, %v2194_v6 }
  0xc5   : > { %vm732_vm3 = vcmp.eq.s32.totalorder %v670_v8, %v3009_v38  ;;  %vm733_vm4 = vcmp.eq.s32.totalorder %v673_v7, %v3009_v38 }
  0xc6   : > { %v2196_v10 = vsel %vm732_vm3, 1.0, %v2815_v41  ;;  %v2197_v13 = vsel %vm733_vm4, 1.0, %v2815_v41  ;;  %vm1307_vm4 = vcmask 326656  }
  0xc7   : > { %2469 = vmatmul.mubr.msk.f32.gmra.mrb[14].mxu0 %vm812_vm1, %v2195_v9 }
  0xc8   : > { %v679_v11 = vpop.permute.xlu1 %678  ;;  %v676_v12 = vpop.permute.xlu0 %675  ;;  %2471 = vmatprep.mubr.msk.f32.mxu0 %vm812_vm1, %v2196_v10 }
  0xc9   : > { %vm734_vm5 = vcmp.eq.s32.totalorder %v676_v12, %v3009_v38  ;;  %vm735_vm6 = vcmp.eq.s32.totalorder %v679_v11, %v3009_v38  ;;  %v1297_v11 = vld [vmem:[%s3464_s6 + $0x10] sm:$0xff]  ;;  %v1298_v12 = vld [vmem:[%s3464_s6 + $0x18] sm:$0xff] }
  0xca   : > { %v2198_v14 = vsel %vm734_vm5, 1.0, %v2815_v41  ;;  %v2199_v17 = vsel %vm735_vm6, 1.0, %v2815_v41  ;;  %vm1278_vm5 = vcmask 261120  }
  0xcb   : > { %2472 = vmatmul.mubr.msk.f32.gmra.mrb[16].mxu0 %vm812_vm1, %v2197_v13 }
  0xcc   : > { %v685_v15 = vpop.permute.xlu1 %684  ;;  %v682_v16 = vpop.permute.xlu0 %681  ;;  %2474 = vmatprep.mubr.msk.f32.mxu0 %vm812_vm1, %v2198_v14  ;;  %v2601_v14 = vpack.c.bf16 %v1298_v12, %v1297_v11 }
  0xcd   : > { %vm736_vm7 = vcmp.eq.s32.totalorder %v682_v16, %v3009_v38  ;;  %vm737_vm8 = vcmp.eq.s32.totalorder %v685_v15, %v3009_v38 }
  0xce   : > { %v2200_v18 = vsel %vm736_vm7, 1.0, %v2815_v41  ;;  %v2201_v21 = vsel %vm737_vm8, 1.0, %v2815_v41 }
  0xcf   : > { %2475 = vmatmul.mubr.msk.f32.gmra.mrb[18].mxu0 %vm812_vm1, %v2199_v17  ;;  %v1299_v17 = vld [vmem:[%s3464_s6 + $0x20] sm:$0xff] }
  0xd0   : > { %v691_v19 = vpop.permute.xlu1 %690  ;;  %v688_v20 = vpop.permute.xlu0 %687  ;;  %2477 = vmatprep.mubr.msk.f32.mxu0 %vm812_vm1, %v2200_v18 }
  0xd1   : > { %vm738_vm9 = vcmp.eq.s32.totalorder %v688_v20, %v3009_v38  ;;  %vm739_vm10 = vcmp.eq.s32.totalorder %v691_v19, %v3009_v38 }
  0xd2   : > { %v2202_v22 = vsel %vm738_vm9, 1.0, %v2815_v41  ;;  %v2203_v25 = vsel %vm739_vm10, 1.0, %v2815_v41 }
  0xd3   : > { %2478 = vmatmul.mubr.msk.f32.gmra.mrb[20].mxu0 %vm812_vm1, %v2201_v21 }
  0xd4   : > { %v697_v23 = vpop.permute.xlu1 %696  ;;  %v694_v24 = vpop.permute.xlu0 %693  ;;  %2480 = vmatprep.mubr.msk.f32.mxu0 %vm812_vm1, %v2202_v22 }
  0xd5   : > { %vm740_vm11 = vcmp.eq.s32.totalorder %v694_v24, %v3009_v38  ;;  %vm741_vm12 = vcmp.eq.s32.totalorder %v697_v23, %v3009_v38 }
  0xd6   : > { %v2204_v26 = vsel %vm740_vm11, 1.0, %v2815_v41  ;;  %v2205_v29 = vsel %vm741_vm12, 1.0, %v2815_v41 }
  0xd7   : > { %2481 = vmatmul.mubr.msk.f32.gmra.mrb[22].mxu0 %vm812_vm1, %v2203_v25 }
  0xd8   : > { %v703_v27 = vpop.permute.xlu1 %702  ;;  %v700_v28 = vpop.permute.xlu0 %699  ;;  %2483 = vmatprep.mubr.msk.f32.mxu0 %vm812_vm1, %v2204_v26 }
  0xd9   : > { %vm743_vm13 = vcmp.eq.s32.totalorder %v703_v27, %v3009_v38  ;;  %vm742_vm14 = vcmp.eq.s32.totalorder %v700_v28, %v3009_v38  ;;  %v583_v28 = vld [vmem:[%s2967_s20 + $0x68] sm:$0xff] }
  0xda   : > { %v2207_v30 = vsel %vm743_vm13, 1.0, %v2815_v41  ;;  %v2206_v31 = vsel %vm742_vm14, 1.0, %v2815_v41 }
  0xdb   : > { %2484 = vmatmul.mubr.msk.f32.gmra.mrb[24].mxu0 %vm812_vm1, %v2205_v29  ;;  %2486 = vmatprep.mubr.msk.f32.mxu1 %vm812_vm1, %v2206_v31  ;;  %v582_v29 = vld [vmem:[%s2967_s20 + $0x60] sm:$0xff]  ;;  %v1518_v31 = vld [vmem:[%s3466_s8 + $0x8] sm:$0xff] }
  0xdc   : > { %v709_v32 = vpop.permute.xlu1 %708  ;;  %v706_v33 = vpop.permute.xlu0 %705  ;;  %2487 = vmatmul.mubr.msk.f32.vlgmr.msra.gmra.mrb[0].mxu1 %vm812_vm1, %v2207_v30  ;;  %v1517_v30 = vld [vmem:[%s3466_s8] sm:$0xff] }
  0xdd   : > { %vm745_vm15 = vcmp.eq.s32.totalorder %v709_v32, %v3009_v38  ;;  %vm744_vm0 = vcmp.eq.s32.totalorder %v706_v33, %v3009_v38  ;;  %2600 = vmatpush3.bf16.msra.mxu1 %v2597_v55  ;;  %v2605_v32 = vpack.c.bf16 %v1518_v31, %v1517_v30  ;;  %v585_v33 = vld [vmem:[%s2967_s20 + $0x78] sm:$0xff] }
  0xde   : > { %v2209_v34 = vsel %vm745_vm15, 1.0, %v2815_v41  ;;  %v2208_v35 = vsel %vm744_vm0, 1.0, %v2815_v41  ;;  %2602 = vmatprep.subr.bf16.mxu1 %v2601_v14 }
  0xdf   : > { %2489 = vmatprep.mubr.msk.f32.mxu1 %vm812_vm1, %v2208_v35 }
  0xe0   : > { %v715_v36 = vpop.permute.xlu1 %714  ;;  %v712_v39 = vpop.permute.xlu0 %711  ;;  %2490 = vmatmul.mubr.msk.f32.gmra.mrb[2].mxu1 %vm812_vm1, %v2209_v34  ;;  %v584_v34 = vld [vmem:[%s2967_s20 + $0x70] sm:$0xff] }
  0xe1   : > { %vm747_vm2 = vcmp.eq.s32.totalorder %v715_v36, %v3009_v38  ;;  %vm746_vm3 = vcmp.eq.s32.totalorder %v712_v39, %v3009_v38  ;;  %v573_v38 = vld [vmem:[%s2967_s20 + $0x18] sm:$0xff]  ;;  %2604 = vmatpush3.bf16.msra.mxu1 %v2601_v14 }
  0xe2   : > { %v2211_v40 = vsel %vm747_vm2, 1.0, %v2815_v41  ;;  %v2210_v42 = vsel %vm746_vm3, 1.0, %v2815_v41  ;;  %1220 = vrot.lane.b32.xlu1 %v573_v38, %s2816_s26  ;;  %v575_v41 = vld [vmem:[%s2967_s20 + $0x28] sm:$0xff]  ;;  %2503 = vmatprep.subr.mxu1 %v1299_v17 }
  0xe3   : > { %2492 = vmatprep.mubr.msk.f32.mxu1 %vm812_vm1, %v2210_v42 }
  0xe4   : > { %2493 = vmatmul.mubr.msk.f32.gmra.mrb[4].mxu1 %vm812_vm1, %v2211_v40 }
  0xe5   : > { %2504 = vmatpush3.msra.mxu1 %v1299_v17 }
  0xe6   : > { %1224 = vrot.lane.b32.xlu1 %v575_v41, %s2816_s26  ;;  %2606 = vmatprep.subr.bf16.mxu1 %v2605_v32 }
  0xea   : > { %1228 = vrot.lane.b32.xlu1 %v577_v47, %s2816_s26 }
  0xee   : > { %1232 = vrot.lane.b32.xlu1 %v579_v49, %s2816_s26 }
  0xf2   : > { %1236 = vrot.lane.b32.xlu1 %v581_v51, %s2816_s26 }
 0x11c   : > { %v1217_v35 = vpop.permute.xlu1 %1216  ;;  %v1215_v36 = vpop.permute.xlu0 %1214 }
 0x120   : > { %v1219_v40 = vpop.permute.xlu0 %1218 }
 0x124   : > { %v1223_v43 = vpop.permute.xlu0 %1222 }
 0x128   : > { %v1227_v38 = vpop.permute.xlu0 %1226 }
 0x12c   : > { %v1231_v41 = vpop.permute.xlu0 %1230 }
 0x130   : > { %v1235_v47 = vpop.permute.xlu0 %1234 }
 0x154   : > { %v1221_v39 = vpop.permute.xlu1 %1220 }
 0x158   : > { %v1225_v42 = vpop.permute.xlu1 %1224 }
 0x15c   : > { %v1229_v44 = vpop.permute.xlu1 %1228 }
 0x160   : > { %v1233_v45 = vpop.permute.xlu1 %1232 }
 0x164   : > { %v1237_v46 = vpop.permute.xlu1 %1236 }
 0x17e   : > { %v3137_v56 = vpop.f32.mrb[0].mxu0 }
 0x17f   : > { %v3139_v57 = vpop.f32.mrb[1].mxu0 }
 0x182   : > { %v3141_v58 = vpop.f32.mrb[2].mxu0 }
 0x183   : > { %v3143_v59 = vpop.f32.mrb[3].mxu0 }
 0x186   : > { %v3145_v60 = vpop.f32.mrb[4].mxu0 }
 0x187   : > { %v3147_v61 = vpop.f32.mrb[5].mxu0 }
 0x18a   : > { %v3149_v62 = vpop.f32.mrb[6].mxu0 }
 0x18b   : > { %v3151_v63 = vpop.f32.mrb[7].mxu0 }
 0x18e   : > { %v3153_v0 = vpop.f32.mrb[8].mxu0 }
 0x18f   : > { %v3155_v1 = vpop.f32.mrb[9].mxu0 }
 0x192   : > { %v3157_v2 = vpop.f32.mrb[10].mxu0 }
 0x193   : > { %v3159_v3 = vpop.f32.mrb[11].mxu0 }
 0x196   : > { %v3161_v4 = vpop.f32.mrb[12].mxu0 }
 0x197   : > { %v3163_v5 = vpop.f32.mrb[13].mxu0 }
 0x19a   : > { %v3165_v6 = vpop.f32.mrb[14].mxu0 }
 0x19b   : > { %v3167_v7 = vpop.f32.mrb[15].mxu0 }
 0x19e   : > { %v2473_v8 = vpop.f32.mrb[16].mxu0 }
 0x19f   : > { %v1055_v9 = vpop.f32.mrb[17].mxu0 }
 0x1a2   : > { %v2476_v10 = vpop.f32.mrb[18].mxu0 }
 0x1a3   : > { %v1065_v13 = vpop.f32.mrb[19].mxu0 }
 0x1a6   : > { %v2479_v15 = vpop.f32.mrb[20].mxu0 }
 0x1a7   : > { %v1075_v16 = vpop.f32.mrb[21].mxu0 }
 0x1aa   : > { %v2482_v18 = vpop.f32.mrb[22].mxu0 }
 0x1ab   : > { %v1085_v19 = vpop.f32.mrb[23].mxu0 }
 0x1ae   : > { %v2485_v20 = vpop.f32.mrb[24].mxu0 }
 0x1af   : > { %v1095_v21 = vpop.f32.mrb[25].mxu0  ;;  %v2488_v22 = vpop.f32.mrb[0].mxu1 }
 0x1b0   : > { %1172 = vrot.lane.b32.xlu1 %v2488_v22, %s2817_s22  ;;  %v1105_v23 = vpop.f32.mrb[1].mxu1 }
 0x1b1   : > { %1170 = vrot.lane.b32.xlu0 %v1105_v23, %s2817_s22 }
 0x1b3   : > { %v2491_v24 = vpop.f32.mrb[2].mxu1 }
 0x1b4   : > { %v1115_v25 = vpop.f32.mrb[3].mxu1  ;;  %1152 = vrot.lane.b32.xlu1 %v2473_v8, %s2817_s22 }
 0x1b5   : > { %1150 = vrot.lane.b32.xlu0 %v1055_v9, %s2817_s22 }
 0x1b7   : > { %v2494_v26 = vpop.f32.mrb[4].mxu1 }
 0x1b8   : > { %v1125_v27 = vpop.f32.mrb[5].mxu1  ;;  %1156 = vrot.lane.b32.xlu1 %v2476_v10, %s2817_s22 }
 0x1b9   : > { %1154 = vrot.lane.b32.xlu0 %v1065_v13, %s2817_s22 }
 0x1bc   : > { %1160 = vrot.lane.b32.xlu1 %v2479_v15, %s2817_s22 }
 0x1bd   : > { %1158 = vrot.lane.b32.xlu0 %v1075_v16, %s2817_s22 }
 0x1c0   : > { %1164 = vrot.lane.b32.xlu1 %v2482_v18, %s2817_s22 }
 0x1c1   : > { %1162 = vrot.lane.b32.xlu0 %v1085_v19, %s2817_s22 }
 0x1c4   : > { %1168 = vrot.lane.b32.xlu1 %v2485_v20, %s2817_s22 }
 0x1c5   : > { %1166 = vrot.lane.b32.xlu0 %v1095_v21, %s2817_s22 }
 0x1c8   : > { %1176 = vrot.lane.b32.xlu1 %v2491_v24, %s2817_s22 }
 0x1c9   : > { %1174 = vrot.lane.b32.xlu0 %v1115_v25, %s2817_s22 }
 0x1cc   : > { %1240 = vrot.lane.b32.xlu1 %v583_v28, %s2816_s26 }
 0x1cd   : > { %1238 = vrot.lane.b32.xlu0 %v582_v29, %s2816_s26 }
 0x1d0   : > { %1180 = vrot.lane.b32.xlu1 %v2494_v26, %s2817_s22 }
 0x1d1   : > { %1178 = vrot.lane.b32.xlu0 %v1125_v27, %s2817_s22 }
 0x1d4   : > { %1244 = vrot.lane.b32.xlu1 %v585_v33, %s2816_s26 }
 0x1d5   : > { %1242 = vrot.lane.b32.xlu0 %v584_v34, %s2816_s26 }
 0x222   : > { %v1173_v48 = vpop.permute.xlu1 %1172 }
 0x223   : > { %v1171_v49 = vpop.permute.xlu0 %1170  ;;  %v1273_v26 = vsel %vm812_vm1, %v3157_v2, %v1173_v48 }
 0x226   : > { %v1153_v50 = vpop.permute.xlu1 %1152 }
 0x227   : > { %v1263_v51 = vsel %vm812_vm1, %v3137_v56, %v1153_v50  ;;  %v1151_v52 = vpop.permute.xlu0 %1150 }
 0x228   : > { %v1262_v53 = vsel %vm812_vm1, %v3139_v57, %v1151_v52  ;;  %v1280_v55 = vsel %vm1278_vm5, %v1263_v51, %v1217_v35 }
 0x229   : > { %v1279_v54 = vsel %vm1278_vm5, %v1262_v53, %v1215_v36 }
 0x22a   : > { %2505 = vmatprep.mubr.msk.f32.mxu1 %vm1307_vm4, %v1279_v54  ;;  %v1157_v8 = vpop.permute.xlu1 %1156 }
 0x22b   : > { %v1265_v9 = vsel %vm812_vm1, %v3141_v58, %v1157_v8  ;;  %2506 = vmatmul.mubr.msk.f32.vlgmr.msra.gmra.mrb[6].mxu1 %vm1307_vm4, %v1280_v55  ;;  %v1155_v10 = vpop.permute.xlu0 %1154 }
 0x22c   : > { %v1264_v56 = vsel %vm812_vm1, %v3143_v59, %v1155_v10  ;;  %2608 = vmatpush3.bf16.msra.mxu1 %v2605_v32  ;;  %v1282_v12 = vsel %vm1278_vm5, %v1265_v9, %v1221_v39 }
 0x22d   : > { %v1281_v11 = vsel %vm1278_vm5, %v1264_v56, %v1219_v40  ;;  %v1519_v40 = vld [vmem:[%s3466_s8 + $0x10] sm:$0xff] }
 0x22e   : > { %2508 = vmatprep.mubr.msk.f32.mxu1 %vm1307_vm4, %v1281_v11  ;;  %v1161_v57 = vpop.permute.xlu1 %1160 }
 0x22f   : > { %v1267_v13 = vsel %vm812_vm1, %v3145_v60, %v1161_v57  ;;  %2509 = vmatmul.mubr.msk.f32.gmra.mrb[8].mxu1 %vm1307_vm4, %v1282_v12  ;;  %v1159_v58 = vpop.permute.xlu0 %1158 }
 0x230   : > { %v1266_v14 = vsel %vm812_vm1, %v3147_v61, %v1159_v58  ;;  %v1284_v16 = vsel %vm1278_vm5, %v1267_v13, %v1225_v42 }
 0x231   : > { %v1283_v15 = vsel %vm1278_vm5, %v1266_v14, %v1223_v43  ;;  %v1722_v43 = vld [vmem:[%s3468_s10 + $0x8] sm:$0xff] }
 0x232   : > { %2511 = vmatprep.mubr.msk.f32.mxu1 %vm1307_vm4, %v1283_v15  ;;  %v1165_v59 = vpop.permute.xlu1 %1164 }
 0x233   : > { %v1269_v17 = vsel %vm812_vm1, %v3149_v62, %v1165_v59  ;;  %2512 = vmatmul.mubr.msk.f32.gmra.mrb[10].mxu1 %vm1307_vm4, %v1284_v16  ;;  %v1163_v18 = vpop.permute.xlu0 %1162  ;;  %v1272_v62 = vsel %vm812_vm1, %v3159_v3, %v1171_v49 }
 0x234   : > { %v1268_v60 = vsel %vm812_vm1, %v3151_v63, %v1163_v18  ;;  %v1286_v20 = vsel %vm1278_vm5, %v1269_v17, %v1229_v44  ;;  %v1289_v27 = vsel %vm1278_vm5, %v1272_v62, %v1235_v47  ;;  %v1723_v44 = vld [vmem:[%s3468_s10 + $0x10] sm:$0xff] }
 0x235   : > { %v1285_v19 = vsel %vm1278_vm5, %v1268_v60, %v1227_v38 }
 0x236   : > { %2514 = vmatprep.mubr.msk.f32.mxu1 %vm1307_vm4, %v1285_v19  ;;  %v1169_v61 = vpop.permute.xlu1 %1168 }
 0x237   : > { %v1271_v21 = vsel %vm812_vm1, %v3153_v0, %v1169_v61  ;;  %2515 = vmatmul.mubr.msk.f32.gmra.mrb[12].mxu1 %vm1307_vm4, %v1286_v20  ;;  %v1167_v22 = vpop.permute.xlu0 %1166 }
 0x238   : > { %v1270_v23 = vsel %vm812_vm1, %v3155_v1, %v1167_v22  ;;  %v1288_v25 = vsel %vm1278_vm5, %v1271_v21, %v1233_v45  ;;  %v1290_v1 = vsel %vm1278_vm5, %v1273_v26, %v1237_v46  ;;  %v1724_v45 = vld [vmem:[%s3468_s10 + $0x18] sm:$0xff]  ;;  %v3277_v46 = vld [vmem:[%s3465_s7] ss:$0 sm:$0xff] }
 0x239   : > { %v1287_v63 = vsel %vm1278_vm5, %v1270_v23, %v1231_v41  ;;  %v2617_v41 = vpack.c.bf16 %v1724_v45, %v1723_v44 }
 0x23a   : > { %v1177_v24 = vpop.permute.xlu1 %1176  ;;  %2517 = vmatprep.mubr.msk.f32.mxu1 %vm1307_vm4, %v1287_v63 }
 0x23b   : > { %2518 = vmatmul.mubr.msk.f32.gmra.mrb[14].mxu1 %vm1307_vm4, %v1288_v25  ;;  %v1175_v0 = vpop.permute.xlu0 %1174  ;;  %v1275_v2 = vsel %vm812_vm1, %v3161_v4, %v1177_v24 }
 0x23c   : > { %2520 = vmatprep.mubr.msk.f32.mxu1 %vm1307_vm4, %v1289_v27  ;;  %v1274_v28 = vsel %vm812_vm1, %v3163_v5, %v1175_v0 }
 0x23e   : > { %v1241_v3 = vpop.permute.xlu1 %1240 }
 0x23f   : > { %2521 = vmatmul.mubr.msk.f32.gmra.mrb[16].mxu1 %vm1307_vm4, %v1290_v1  ;;  %v1239_v29 = vpop.permute.xlu0 %1238  ;;  %v1292_v31 = vsel %vm1278_vm5, %v1275_v2, %v1241_v3 }
 0x240   : > { %v1291_v30 = vsel %vm1278_vm5, %v1274_v28, %v1239_v29 }
 0x241   : > { %2523 = vmatprep.mubr.msk.f32.mxu1 %vm1307_vm4, %v1291_v30 }
 0x242   : > { %v1181_v32 = vpop.permute.xlu1 %1180 }
 0x243   : > { %2524 = vmatmul.mubr.msk.f32.gmra.mrb[18].mxu1 %vm1307_vm4, %v1292_v31  ;;  %v1179_v33 = vpop.permute.xlu0 %1178  ;;  %v1277_v36 = vsel %vm812_vm1, %v3165_v6, %v1181_v32  ;;  %v1721_v6 = vld [vmem:[%s3468_s10] sm:$0xff] }
 0x244   : > { %v1276_v5 = vsel %vm812_vm1, %v3167_v7, %v1179_v33  ;;  %v1520_v7 = vld [vmem:[%s3466_s8 + $0x18] sm:$0xff]  ;;  %v2613_v38 = vpack.c.bf16 %v1722_v43, %v1721_v6 }
 0x245   : > { %v2609_v42 = vpack.c.bf16 %v1520_v7, %v1519_v40 }
 0x246   : > { %v1245_v34 = vpop.permute.xlu1 %1244  ;;  %2614 = vmatprep.subr.bf16.mxu0 %v2613_v38 }
 0x247   : > { %v1243_v35 = vpop.permute.xlu0 %1242  ;;  %v1294_v4 = vsel %vm1278_vm5, %v1277_v36, %v1245_v34  ;;  %2610 = vmatprep.subr.bf16.mxu1 %v2609_v42  ;;  %2616 = vmatpush3.bf16.msra.mxu0 %v2613_v38 }
 0x248   : > { %v1293_v39 = vsel %vm1278_vm5, %v1276_v5, %v1243_v35  ;;  %2612 = vmatpush3.bf16.msra.mxu1 %v2609_v42  ;;  %2618 = vmatprep.subr.bf16.mxu0 %v2617_v41 }
 0x249   : > { %2526 = vmatprep.mubr.msk.f32.mxu1 %vm1307_vm4, %v1293_v39 }
 0x24a   : > { %2527 = vmatmul.mubr.msk.f32.gmra.mrb[20].mxu1 %vm1307_vm4, %v1294_v4 }
 0x24b   : > { %2620 = vmatpush3.bf16.msra.mxu0 %v2617_v41 }
 0x2fe   : > { %v2507_v47 = vpop.f32.mrb[6].mxu1 }
 0x2ff   : > { %v1428_v48 = vadd.f32 %v2507_v47, %v3277_v46  ;;  %v1422_v49 = vpop.f32.mrb[7].mxu1 }
 0x300   : > { %v1423_v50 = vadd.f32 %v3277_v46, %v1422_v49 }
 0x301   : > { %v1502_v51 = vmax.f32 %v1428_v48, 0.0  ;;  %v2261_v48 = vld [vmem:[%s3467_s9] ss:$0 sm:$0xff] }
 0x302   : > { %v1501_v52 = vmax.f32 %v1423_v50, 0.0  ;;  %v2510_v53 = vpop.f32.mrb[8].mxu1 }
 0x303   : > { %v1438_v54 = vadd.f32 %v2510_v53, %v3277_v46  ;;  %v1432_v55 = vpop.f32.mrb[9].mxu1  ;;  %1734 = vrot.lane.b32.xlu1 %v1502_v51, %s2818_s28 }
 0x304   : > { %v1433_v8 = vadd.f32 %v3277_v46, %v1432_v55  ;;  %1732 = vrot.lane.b32.xlu0 %v1501_v52, %s2818_s28  ;;  %2537 = vmatprep.mubr.msk.f32.mxu1 %vm1278_vm5, %v1501_v52 }
 0x305   : > { %v1504_v9 = vmax.f32 %v1438_v54, 0.0  ;;  %2538 = vmatmul.mubr.msk.f32.vlgmr.msra.gmra.mrb[22].mxu1 %vm1278_vm5, %v1502_v51 }
 0x306   : > { %v1503_v10 = vmax.f32 %v1433_v8, 0.0  ;;  %v2513_v56 = vpop.f32.mrb[10].mxu1 }
 0x307   : > { %v1448_v11 = vadd.f32 %v2513_v56, %v3277_v46  ;;  %v1442_v57 = vpop.f32.mrb[11].mxu1  ;;  %1738 = vrot.lane.b32.xlu1 %v1504_v9, %s2818_s28 }
 0x308   : > { %v1443_v12 = vadd.f32 %v3277_v46, %v1442_v57  ;;  %1736 = vrot.lane.b32.xlu0 %v1503_v10, %s2818_s28  ;;  %2540 = vmatprep.mubr.msk.f32.mxu1 %vm1278_vm5, %v1503_v10 }
 0x309   : > { %v1506_v13 = vmax.f32 %v1448_v11, 0.0  ;;  %2541 = vmatmul.mubr.msk.f32.gmra.mrb[24].mxu1 %vm1278_vm5, %v1504_v9 }
 0x30a   : > { %v1505_v58 = vmax.f32 %v1443_v12, 0.0  ;;  %v2516_v14 = vpop.f32.mrb[12].mxu1 }
 0x30b   : > { %v1458_v15 = vadd.f32 %v2516_v14, %v3277_v46  ;;  %v1452_v59 = vpop.f32.mrb[13].mxu1  ;;  %1742 = vrot.lane.b32.xlu1 %v1506_v13, %s2818_s28 }
 0x30c   : > { %v1453_v16 = vadd.f32 %v3277_v46, %v1452_v59  ;;  %1740 = vrot.lane.b32.xlu0 %v1505_v58, %s2818_s28  ;;  %2543 = vmatprep.mubr.msk.f32.mxu1 %vm1278_vm5, %v1505_v58 }
 0x30d   : > { %v1508_v17 = vmax.f32 %v1458_v15, 0.0  ;;  %2544 = vmatmul.mubr.msk.f32.gmra.mrb[26].mxu1 %vm1278_vm5, %v1506_v13 }
 0x30e   : > { %v1507_v18 = vmax.f32 %v1453_v16, 0.0  ;;  %v2519_v60 = vpop.f32.mrb[14].mxu1 }
 0x30f   : > { %v1468_v19 = vadd.f32 %v2519_v60, %v3277_v46  ;;  %1746 = vrot.lane.b32.xlu1 %v1508_v17, %s2818_s28  ;;  %v1462_v61 = vpop.f32.mrb[15].mxu1 }
 0x310   : > { %v1463_v20 = vadd.f32 %v3277_v46, %v1462_v61  ;;  %1744 = vrot.lane.b32.xlu0 %v1507_v18, %s2818_s28  ;;  %2546 = vmatprep.mubr.msk.f32.mxu1 %vm1278_vm5, %v1507_v18 }
 0x311   : > { %v1510_v21 = vmax.f32 %v1468_v19, 0.0  ;;  %2547 = vmatmul.mubr.msk.f32.gmra.mrb[28].mxu1 %vm1278_vm5, %v1508_v17 }
 0x312   : > { %v1509_v22 = vmax.f32 %v1463_v20, 0.0  ;;  %v2522_v62 = vpop.f32.mrb[16].mxu1 }
 0x313   : > { %v1478_v23 = vadd.f32 %v2522_v62, %v3277_v46  ;;  %1750 = vrot.lane.b32.xlu1 %v1510_v21, %s2818_s28  ;;  %v1472_v63 = vpop.f32.mrb[17].mxu1 }
 0x314   : > { %v1473_v24 = vadd.f32 %v3277_v46, %v1472_v63  ;;  %1748 = vrot.lane.b32.xlu0 %v1509_v22, %s2818_s28  ;;  %2549 = vmatprep.mubr.msk.f32.mxu1 %vm1278_vm5, %v1509_v22 }
 0x315   : > { %v1512_v25 = vmax.f32 %v1478_v23, 0.0  ;;  %2550 = vmatmul.mubr.msk.f32.gmra.mrb[30].mxu1 %vm1278_vm5, %v1510_v21 }
 0x316   : > { %v1511_v26 = vmax.f32 %v1473_v24, 0.0  ;;  %v2525_v0 = vpop.f32.mrb[18].mxu1  ;;  %v3362_v24 = vshrl.u32 %v618_v37, 7 }
 0x317   : > { %v1488_v27 = vadd.f32 %v2525_v0, %v3277_v46  ;;  %1754 = vrot.lane.b32.xlu1 %v1512_v25, %s2818_s28  ;;  %v1482_v3 = vpop.f32.mrb[19].mxu1  ;;  %v3371_v0 = vld [vmem:[%s541_s30] ss:$0 sm:$0xff] }
 0x318   : > { %v1483_v1 = vadd.f32 %v3277_v46, %v1482_v3  ;;  %1752 = vrot.lane.b32.xlu0 %v1511_v26, %s2818_s28  ;;  %2552 = vmatprep.mubr.msk.f32.mxu1 %vm1278_vm5, %v1511_v26  ;;  %vm1955_vm1 = vcmp.eq.s32.totalorder %v3371_v0, %v3362_v24  ;;  %v2819_v3 = vmov 1.0   ;;  %v3378_v37 = vadd.s32 8, %v3362_v24 }
 0x319   : > { %v1514_v28 = vmax.f32 %v1488_v27, 0.0  ;;  %2553 = vmatmul.mubr.msk.f32.gmra.mrb[32].mxu1 %vm1278_vm5, %v1512_v25 }
 0x31a   : > { %v1513_v29 = vmax.f32 %v1483_v1, 0.0  ;;  %vm1957_vm6 = vcmp.eq.s32.totalorder %v3371_v0, %v3378_v37 }
 0x31b   : > { %1758 = vrot.lane.b32.xlu1 %v1514_v28, %s2818_s28 }
 0x31c   : > { %1756 = vrot.lane.b32.xlu0 %v1513_v29, %s2818_s28  ;;  %2555 = vmatprep.mubr.msk.f32.mxu1 %vm1278_vm5, %v1513_v29 }
 0x31d   : > { %v2528_v30 = vpop.f32.mrb[20].mxu1  ;;  %2556 = vmatmul.mubr.msk.f32.gmra.mrb[34].mxu1 %vm1278_vm5, %v1514_v28 }
 0x31e   : > { %v1498_v2 = vadd.f32 %v2528_v30, %v3277_v46  ;;  %v1492_v31 = vpop.f32.mrb[21].mxu1 }
 0x31f   : > { %v1493_v32 = vadd.f32 %v3277_v46, %v1492_v31 }
 0x320   : > { %v1516_v33 = vmax.f32 %v1498_v2, 0.0 }
 0x321   : > { %v1515_v34 = vmax.f32 %v1493_v32, 0.0  ;;  %v2278_v32 = vld [vmem:[%s3469_s11] ss:$0 sm:$0xff] }
 0x322   : > { %1762 = vrot.lane.b32.xlu1 %v1516_v33, %s2818_s28 }
 0x323   : > { %1760 = vrot.lane.b32.xlu0 %v1515_v34, %s2818_s28  ;;  %2558 = vmatprep.mubr.msk.f32.mxu1 %vm1278_vm5, %v1515_v34  ;;  %s3491_s28 = smov %s3490_s23 }
 0x324   : > { %2559 = vmatmul.mubr.msk.f32.gmra.mrb[36].mxu1 %vm1278_vm5, %v1516_v33 }
 0x325   : > { %2301 = vmatprep.mubr.msk.f32.mxu1 %vm1955_vm1, %v2819_v3 }
 0x375   : > { %v1735_v5 = vpop.permute.xlu1 %1734 }
 0x376   : > { %v1733_v35 = vpop.permute.xlu0 %1732 }
 0x377   : > { %2569 = vmatprep.mubr.msk.f32.mxu0 %vm1278_vm5, %v1733_v35 }
 0x378   : > { %2570 = vmatmul.mubr.msk.f32.vlgmr.msra.gmra.mrb[26].mxu0 %vm1278_vm5, %v1735_v5 }
 0x379   : > { %v1739_v36 = vpop.permute.xlu1 %1738 }
 0x37a   : > { %v1737_v39 = vpop.permute.xlu0 %1736 }
 0x37b   : > { %2572 = vmatprep.mubr.msk.f32.mxu0 %vm1278_vm5, %v1737_v39 }
 0x37c   : > { %2573 = vmatmul.mubr.msk.f32.gmra.mrb[28].mxu0 %vm1278_vm5, %v1739_v36 }
 0x37d   : > { %v1743_v4 = vpop.permute.xlu1 %1742 }
 0x37e   : > { %v1741_v40 = vpop.permute.xlu0 %1740 }
 0x37f   : > { %2575 = vmatprep.mubr.msk.f32.mxu0 %vm1278_vm5, %v1741_v40 }
 0x380   : > { %2576 = vmatmul.mubr.msk.f32.gmra.mrb[30].mxu0 %vm1278_vm5, %v1743_v4 }
 0x381   : > { %v1747_v7 = vpop.permute.xlu1 %1746 }
 0x382   : > { %v1745_v42 = vpop.permute.xlu0 %1744 }
 0x383   : > { %2578 = vmatprep.mubr.msk.f32.mxu0 %vm1278_vm5, %v1745_v42 }
 0x384   : > { %2579 = vmatmul.mubr.msk.f32.gmra.mrb[32].mxu0 %vm1278_vm5, %v1747_v7 }
 0x385   : > { %v1751_v6 = vpop.permute.xlu1 %1750 }
 0x386   : > { %v1749_v43 = vpop.permute.xlu0 %1748 }
 0x387   : > { %2581 = vmatprep.mubr.msk.f32.mxu0 %vm1278_vm5, %v1749_v43 }
 0x388   : > { %2582 = vmatmul.mubr.msk.f32.gmra.mrb[34].mxu0 %vm1278_vm5, %v1751_v6 }
 0x389   : > { %v1755_v44 = vpop.permute.xlu1 %1754 }
 0x38a   : > { %v1753_v38 = vpop.permute.xlu0 %1752 }
 0x38b   : > { %2584 = vmatprep.mubr.msk.f32.mxu0 %vm1278_vm5, %v1753_v38 }
 0x38c   : > { %2585 = vmatmul.mubr.msk.f32.gmra.mrb[36].mxu0 %vm1278_vm5, %v1755_v44 }
 0x38d   : > { %v1759_v41 = vpop.permute.xlu1 %1758 }
 0x38e   : > { %v1757_v45 = vpop.permute.xlu0 %1756 }
 0x38f   : > { %2587 = vmatprep.mubr.msk.f32.mxu0 %vm1278_vm5, %v1757_v45 }
 0x390   : > { %2588 = vmatmul.mubr.msk.f32.gmra.mrb[38].mxu0 %vm1278_vm5, %v1759_v41 }
 0x394   : > { %v1763_v47 = vpop.permute.xlu1 %1762 }
 0x395   : > { %v1761_v46 = vpop.permute.xlu0 %1760 }
 0x396   : > { %2590 = vmatprep.mubr.msk.f32.mxu0 %vm1278_vm5, %v1761_v46 }
 0x397   : > { %2591 = vmatmul.mubr.msk.f32.gmra.mrb[40].mxu0 %vm1278_vm5, %v1763_v47 }
 0x3d8   : > { %v2539_v49 = vpop.f32.mrb[22].mxu1 }
 0x3d9   : > { %v1648_v50 = vadd.f32 %v2539_v49, %v2261_v48  ;;  %v1642_v51 = vpop.f32.mrb[23].mxu1 }
 0x3da   : > { %v1643_v52 = vadd.f32 %v2261_v48, %v1642_v51 }
 0x3dc   : > { %v2623_v53 = vpack.c.bf16 %v1648_v50, %v1643_v52  ;;  %v2542_v54 = vpop.f32.mrb[24].mxu1 }
 0x3dd   : > { %v1658_v55 = vadd.f32 %v2542_v54, %v2261_v48  ;;  %v1652_v8 = vpop.f32.mrb[25].mxu1 }
 0x3de   : > { %v1653_v9 = vadd.f32 %v2261_v48, %v1652_v8 }
 0x3e0   : > { %v2627_v10 = vpack.c.bf16 %v1658_v55, %v1653_v9  ;;  %v2545_v56 = vpop.f32.mrb[26].mxu1 }
 0x3e1   : > { %v1668_v11 = vadd.f32 %v2545_v56, %v2261_v48  ;;  %v1662_v57 = vpop.f32.mrb[27].mxu1 }
 0x3e2   : > { %v1663_v12 = vadd.f32 %v2261_v48, %v1662_v57 }
 0x3e4   : > { %v2631_v13 = vpack.c.bf16 %v1668_v11, %v1663_v12  ;;  %v2548_v58 = vpop.f32.mrb[28].mxu1 }
 0x3e5   : > { %v3346_v14 = vadd.f32 %v2548_v58, %v2261_v48  ;;  %v1672_v15 = vpop.f32.mrb[29].mxu1 }
 0x3e6   : > { %v1673_v59 = vadd.f32 %v2261_v48, %v1672_v15 }
 0x3e8   : > { %v2635_v16 = vpack.c.bf16 %v3346_v14, %v1673_v59  ;;  %v2551_v17 = vpop.f32.mrb[30].mxu1 }
 0x3e9   : > { %v3349_v18 = vadd.f32 %v2551_v17, %v2261_v48  ;;  %v1682_v60 = vpop.f32.mrb[31].mxu1 }
 0x3ea   : > { %v3351_v19 = vadd.f32 %v2261_v48, %v1682_v60 }
 0x3ec   : > { %v2639_v61 = vpack.c.bf16 %v3349_v18, %v3351_v19  ;;  %v2554_v20 = vpop.f32.mrb[32].mxu1  ;;  %v2295_v18 = vld [vmem:[%s548_s29] ss:$0 sm:$0xff] }
 0x3ed   : > { %v3355_v21 = vadd.f32 %v2554_v20, %v2261_v48  ;;  %v1692_v22 = vpop.f32.mrb[33].mxu1  ;;  %vm1954_vm7 = vcmp.eq.s32.totalorder %v2295_v18, %v3362_v24  ;;  %vm1956_vm8 = vcmp.eq.s32.totalorder %v2295_v18, %v3378_v37 }
 0x3ee   : > { %v3357_v62 = vadd.f32 %v2261_v48, %v1692_v22 }
 0x3f0   : > { %v2643_v23 = vpack.c.bf16 %v3355_v21, %v3357_v62  ;;  %v2557_v63 = vpop.f32.mrb[34].mxu1 }
 0x3f1   : > { %v3364_v25 = vadd.f32 %v2557_v63, %v2261_v48  ;;  %v1702_v26 = vpop.f32.mrb[35].mxu1 }
 0x3f2   : > { %v1703_v27 = vadd.f32 %v2261_v48, %v1702_v26 }
 0x3f4   : > { %v2647_v1 = vpack.c.bf16 %v3364_v25, %v1703_v27 }
 0x3f7   : > { %v2560_v28 = vpop.f32.mrb[36].mxu1 }
 0x3f8   : > { %v1718_v29 = vadd.f32 %v2560_v28, %v2261_v48  ;;  %v1712_v30 = vpop.f32.mrb[37].mxu1 }
 0x3f9   : > { %v1713_v2 = vadd.f32 %v2261_v48, %v1712_v30 }
 0x3fb   : > { %v2651_v31 = vpack.c.bf16 %v1718_v29, %v1713_v2 }
 0x44b   : > { %v2571_v33 = vpop.f32.mrb[26].mxu0 }
 0x44c   : > { %v1868_v34 = vadd.f32 %v2571_v33, %v2278_v32  ;;  %v1862_v5 = vpop.f32.mrb[27].mxu0 }
 0x44d   : > { %v1863_v35 = vadd.f32 %v2278_v32, %v1862_v5 }
 0x44f   : > { %v2621_v36 = vpack.c.bf16 %v1868_v34, %v1863_v35  ;;  %v2574_v39 = vpop.f32.mrb[28].mxu0 }
 0x450   : > { %v1878_v4 = vadd.f32 %v2574_v39, %v2278_v32  ;;  %v1872_v40 = vpop.f32.mrb[29].mxu0 }
 0x451   : > { %v1873_v7 = vadd.f32 %v2278_v32, %v1872_v40  ;;  %2622 = vmatprep.subr.bf16.mxu1 %v2621_v36 }
 0x452   : > { %2624 = vmatpush3.bf16.msra.mxu1 %v2623_v53 }
 0x453   : > { %v2625_v42 = vpack.c.bf16 %v1878_v4, %v1873_v7  ;;  %v2577_v6 = vpop.f32.mrb[30].mxu0 }
 0x454   : > { %v1888_v43 = vadd.f32 %v2577_v6, %v2278_v32  ;;  %v1882_v44 = vpop.f32.mrb[31].mxu0 }
 0x455   : > { %v1883_v38 = vadd.f32 %v2278_v32, %v1882_v44  ;;  %2626 = vmatprep.subr.bf16.mxu1 %v2625_v42 }
 0x456   : > { %2628 = vmatpush3.bf16.msra.mxu1 %v2627_v10 }
 0x457   : > { %v2629_v45 = vpack.c.bf16 %v1888_v43, %v1883_v38  ;;  %v2580_v41 = vpop.f32.mrb[32].mxu0 }
 0x458   : > { %v1898_v46 = vadd.f32 %v2580_v41, %v2278_v32  ;;  %v1892_v47 = vpop.f32.mrb[33].mxu0 }
 0x459   : > { %v1893_v48 = vadd.f32 %v2278_v32, %v1892_v47  ;;  %2630 = vmatprep.subr.bf16.mxu1 %v2629_v45 }
 0x45a   : > { %2632 = vmatpush3.bf16.msra.mxu1 %v2631_v13 }
 0x45b   : > { %v2633_v49 = vpack.c.bf16 %v1898_v46, %v1893_v48  ;;  %v2583_v50 = vpop.f32.mrb[34].mxu0 }
 0x45c   : > { %v1908_v51 = vadd.f32 %v2583_v50, %v2278_v32  ;;  %v1902_v52 = vpop.f32.mrb[35].mxu0 }
 0x45d   : > { %v1903_v54 = vadd.f32 %v2278_v32, %v1902_v52  ;;  %2634 = vmatprep.subr.bf16.mxu1 %v2633_v49 }
 0x45e   : > { %2636 = vmatpush3.bf16.msra.mxu1 %v2635_v16 }
 0x45f   : > { %v2637_v53 = vpack.c.bf16 %v1908_v51, %v1903_v54  ;;  %v2586_v55 = vpop.f32.mrb[36].mxu0 }
 0x460   : > { %v1918_v8 = vadd.f32 %v2586_v55, %v2278_v32  ;;  %v1912_v9 = vpop.f32.mrb[37].mxu0 }
 0x461   : > { %v1913_v56 = vadd.f32 %v2278_v32, %v1912_v9  ;;  %2638 = vmatprep.subr.bf16.mxu1 %v2637_v53 }
 0x462   : > { %2640 = vmatpush3.bf16.msra.mxu1 %v2639_v61  ;;  %v2041_v61 = vld [vmem:[#allocation2] sm:$0xff] }
 0x463   : > { %v2641_v10 = vpack.c.bf16 %v1918_v8, %v1913_v56  ;;  %v2589_v11 = vpop.f32.mrb[38].mxu0 }
 0x464   : > { %v1928_v57 = vadd.f32 %v2589_v11, %v2278_v32  ;;  %v1922_v12 = vpop.f32.mrb[39].mxu0 }
 0x465   : > { %v1923_v13 = vadd.f32 %v2278_v32, %v1922_v12  ;;  %2642 = vmatprep.subr.bf16.mxu1 %v2641_v10 }
 0x466   : > { %2644 = vmatpush3.bf16.msra.mxu1 %v2643_v23  ;;  %v2042_v23 = vld [vmem:[#allocation2 + $0x8] sm:$0xff] }
 0x467   : > { %v2645_v58 = vpack.c.bf16 %v1928_v57, %v1923_v13 }
 0x469   : > { %2646 = vmatprep.subr.bf16.mxu1 %v2645_v58 }
 0x46a   : > { %v2592_v14 = vpop.f32.mrb[40].mxu0  ;;  %2648 = vmatpush3.bf16.msra.mxu1 %v2647_v1 }
 0x46b   : > { %v1938_v15 = vadd.f32 %v2592_v14, %v2278_v32  ;;  %v1932_v59 = vpop.f32.mrb[41].mxu0 }
 0x46c   : > { %v1933_v16 = vadd.f32 %v2278_v32, %v1932_v59 }
 0x46e   : > { %v2649_v17 = vpack.c.bf16 %v1938_v15, %v1933_v16 }
 0x470   : > { %2650 = vmatprep.subr.bf16.mxu1 %v2649_v17 }
 0x471   : > { %2652 = vmatpush3.bf16.msra.mxu1 %v2651_v31 }
 0x474   : > { %2302 = vmatmul.mubr.msk.f32.vlgmr.msra.gmra.mrb[38].mxu1 %vm1954_vm7, %v2819_v3 }
 0x475   : > { %2303 = vmatprep.mubr.msk.f32.mxu1 %vm1957_vm6, %v2819_v3 }
 0x478   : > { %2304 = vmatmul.mubr.msk.f32.gmra.mrb[40].mxu1 %vm1956_vm8, %v2819_v3 }
 0x547   : > { %v2437_v60 = vpop.f32.mrb[38].mxu1 }
 0x548   : > { %v2438_v19 = vpop.f32.mrb[39].mxu1 }
 0x549   : > { %v2439_v20 = vadd.f32 %v2438_v19, %v2437_v60 }
 0x54b   : > { %v2043_v21 = vadd.f32 %v2439_v20, %v2041_v61  ;;  %v2440_v22 = vpop.f32.mrb[40].mxu1 }
 0x54c   : > { %v2441_v62 = vpop.f32.mrb[41].mxu1 }
 0x54d   : > { %2045 = vst.msk [vmem:[#allocation2] sm:$0xff] %vm1278_vm5, %v2043_v21  ;;  %v2442_v63 = vadd.f32 %v2441_v62, %v2440_v22 }
 0x54f   : > { %v2044_v24 = vadd.f32 %v2442_v63, %v2042_v23 }
 0x551   : > { %2046 = vst.msk [vmem:[#allocation2 + $0x8] sm:$0xff] %vm1278_vm5, %v2044_v24 }
 0x552   : > { %2738 = shalt.err (!%p2735_p4)
}
 0x553   : > { %s2739_s27 = scalar_lea.hbm %s3406_s25, 256  ;;  %s2743_s13 = scalar_lea.hbm %s3491_s28, 512 }
 0x554   : > { %p2740_p5 = scmp.ne.s32.totalorder %s3406_s25, %s2739_s27  ;;  %p2744_p9 = scmp.lt.u32.totalorder %s3406_s25, %s3491_s28 }
 0x555   : > { %p2745_p10 = scmp.lt.u32.totalorder %s2743_s13, %s2739_s27  ;;  %p2747_p12 = scmp.lt.u32.totalorder %s2739_s27, %s3406_s25 }
 0x556   : > { %p2741_p7 = pnand %p2740_p5, %p2930_p6 }
 0x557   : > { %p2746_p11 = por %p2745_p10, %p2744_p9 }
 0x558   : > { %p2742_p8 = pneg %p2741_p7 }
 0x559   : > { %p2748_p13 = por %p2747_p12, %p2746_p11 }
 0x55b   : > { %p2749_p0 = pnand %p2748_p13, %p2742_p8 }
 0x55d   : > { %2752 = shalt.err (!%p2749_p0)
}
 0x55e   : > { %s2821_s19 = smov 128   ;;  %s2822_s21 = smov 8  }
 0x55f   : > { %2655 = dma.vmem_to_hbm [thread:$0]  (%p2930_p6), %s3408_s17, 256, %s3406_s25, [#allocation3], %s2821_s19, %s2821_s19, %s2822_s21  }
 0x560   : > { %2782 = dma.done.wait (%p2930_p6), [#allocation3], 256  }
 0x561   : > { %2784 = vsyncadd (%p2930_p6), [#allocation3], 4294967040 }
 0x562 PF: > { %s3492_s14 = sld [smem:[#allocation8_spill]]  ;;  %s3493_s21 = sld [smem:[#allocation5_spill]] }
 0x563   : > { %s3494_s22 = sld [smem:[#allocation12_spill]]  ;;  %s3495_s23 = sld [smem:[#allocation6_spill]] }
 0x564   : > { %s3496_s24 = sld [smem:[#allocation7_spill]]  ;;  %s3497_s25 = sld [smem:[#allocation9_spill]] }
 0x565   : > { %s3498_s26 = sld [smem:[#allocation11_spill]] }
 0x568   : > { %s23_s27 = sadd.s32 1, %s3492_s14  }
 0x569   : > { %p20_p1 = scmp.ge.s32.totalorder %s23_s27, 6  }
 0x56b   :  { %22 = sbr.rel (!%p20_p1) target bundleno = 6 (0x6), region = 112 }
 0x572   :  { %2072 = vsyncpa [#allocation3], 1 }
 0x573   :  { %2074 = vsyncpa [#allocation3 + $0x1], 1 }

// kernel: tpu_custom_call.1
= control target key start
LH: loop header
LB: loop body
LE: loop exit
PB: predicated region body
PF: predicated region fallthrough
CT: control target
= control target key end

     0   :  { %s3544_s0 = inlined_call_operand.vmem [shape: s32[512,1], index: 0, kind: input, shape index: {}]   ;;  %s3545_s1 = inlined_call_operand.vmem [shape: s32[512,1], index: 1, kind: input, shape index: {}]   ;;  %s3546_s2 = inlined_call_operand.vmem [shape: s32[1,512], index: 2, kind: input, shape index: {}]   ;;  %s3547_s3 = inlined_call_operand.vmem [shape: s32[1,512], index: 3, kind: input, shape index: {}]   ;;  %s3548_s4 = inlined_call_operand.vmem [shape: f32[16,16], index: 4, kind: input, shape index: {}]   ;;  %s3549_s5 = inlined_call_operand.vmem [shape: f32[512,8], index: 5, kind: input, shape index: {}]   ;;  %s3550_s6 = inlined_call_operand.vmem [shape: f32[40,64], index: 6, kind: input, shape index: {}]   ;;  %s3551_s7 = inlined_call_operand.vmem [shape: f32[1,64], index: 7, kind: input, shape index: {}]   ;;  %s3552_s8 = inlined_call_operand.vmem [shape: f32[32,32], index: 8, kind: input, shape index: {}]   ;;  %s3553_s9 = inlined_call_operand.vmem [shape: f32[1,32], index: 9, kind: input, shape index: {}]   ;;  %s3554_s10 = inlined_call_operand.vmem [shape: f32[32,32], index: 10, kind: input, shape index: {}]   ;;  %s3555_s11 = inlined_call_operand.vmem [shape: f32[1,32], index: 11, kind: input, shape index: {}]   ;;  %s3556_s12 = inlined_call_operand.hbm [shape: f32[2,16,32], index: 12, kind: output, shape index: {}]  }
   0x1   :  { %3571 = sst [smem:[#allocation17_spill]] %s3556_s12 }
   0x2   :  { %17 = vsyncpa [#allocation3], 0 }
   0x3   :  { %19 = vsyncpa [#allocation3 + $0x1], 0  ;;  %s2940_s21 = smov 0   ;;  %s2942_s22 = smov 0  }
   0x4   :  { %s2944_s23 = smov 0   ;;  %s2946_s24 = smov 0  }
   0x5   :  { %s2948_s25 = smov 0   ;;  %s2950_s26 = smov 0  }
   0x6   :  { %s2952_s27 = smov 0   ;;  %s2954_s28 = smov 0  }
   0x7 LB: > { %3572 = sst [smem:[#allocation5_spill]] %s2835_s21  ;;  %s2183_s29 = sadd.s32 4294967295, %s2863_s28   ;;  %s2863_s28 = sphi %s2954_s28, %s25_s28   ;;  %s2859_s27 = sphi %s2952_s27, %s3601_s27   ;;  %s2855_s26 = sphi %s2950_s26, %s3600_s26   ;;  %s2851_s25 = sphi %s2948_s25, %s3599_s25   ;;  %s2847_s24 = sphi %s2946_s24, %s3598_s24   ;;  %s2843_s23 = sphi %s2944_s23, %s3597_s23   ;;  %s2839_s22 = sphi %s2942_s22, %s3596_s22   ;;  %s2835_s21 = sphi %s2940_s21, %s3595_s21  }
   0x8   : > { %3573 = sst [smem:[#allocation6_spill]] %s2839_s22  ;;  %s2184_s30 = sadd.s32 4294967294, %s2863_s28  }
   0x9   : > { %3574 = sst [smem:[#allocation7_spill]] %s2843_s23  ;;  %s34_s13 = sadd.s32 1, %s2855_s26 }
   0xa   : > { %3575 = sst [smem:[#allocation8_spill]] %s2851_s25  ;;  %p35_p0 = scmp.ge.s32.totalorder %s34_s13, 2 }
   0xb   : > { %3576 = sst [smem:[#allocation9_spill]] %s2855_s26  ;;  %s37_s14 = sadd.s32 1, %s2859_s27 }
   0xc   : > { %3577 = sst [smem:[#allocation10_spill]] %s2859_s27  ;;  %p351_p1 = scmp.ne.s32.totalorder %s2843_s23, %s2839_s22 }
   0xd   : > { %3578 = sst [smem:[#allocation11_spill]] %s2863_s28  ;;  %p352_p2 = scmp.eq.s32.totalorder %s2183_s29, 3 }
   0xe   : > { %s3603_s13 = smov (%p35_p0, %s34_s13), 0  ;;  %s3605_s14 = smov (!%p35_p0, %s37_s14), %s2859_s27 }
   0xf   : > { %3579 = sst [smem:[#allocation12_spill]] %s3603_s13  ;;  %p2989_p3 = por %p352_p2, %p351_p1 }
  0x10   : > { %p357_p4 = scmp.ne.s32.totalorder %s2839_s22, %s2835_s21  ;;  %p39_p5 = scmp.ge.s32.totalorder %s3605_s14, 2 }
  0x11   : > { %s3580_s15 = scalar_select %p2989_p3, 1, 0 }
  0x12   : > { %p358_p6 = scmp.eq.s32.totalorder %s2184_s30, 3  ;;  %p2197_p7 = scmp.ge.s32.totalorder %s2863_s28, 1 }
  0x13   : > { %3581 = sst [smem:[#allocation13_spill]] %s3580_s15  ;;  %p456_p8 = scmp.lt.s32.totalorder %s2863_s28, 5 }
  0x14   : > { %s3607_s14 = smov (%p39_p5, %s3605_s14), 0  ;;  %p2999_p9 = por %p358_p6, %p357_p4 }
  0x15   : > { %3582 = sst [smem:[#allocation14_spill]] %s3607_s14  ;;  %p457_p10 = pnand %p2197_p7, %p456_p8 }
  0x16   : > { %s3583_s16 = scalar_select %p2999_p9, 1, 0 }
  0x17   : > { %s338_s17 = ssub.s32 %s2859_s27, %s3607_s14  ;;  %s341_s18 = sadd.s32 1, %s2843_s23 }
  0x18   : > { %3584 = sst [smem:[#allocation15_spill]] %s3583_s16  ;;  %p339_p11 = scmp.eq.s32.totalorder %s338_s17, 0 }
  0x19   : > { %460 = sbr.rel (%p457_p10) target bundleno = 1384 (0x568), region = 68  ;;  %s3562_s20 = sand.u32 (!%p457_p10), 1, %s2839_s22  }
  0x1a   : > { %s3007_s19 = scalar_select %p339_p11, %s2843_s23, %s341_s18  }
  0x1b   : > { %s2199_s29 = sshll.u32 (!%p457_p10), %s2851_s25, 1  ;;  %s2198_s30 = sshll.u32 (!%p457_p10), %s3562_s20, 4 }
  0x1c   : > { %3585 = sst [smem:[#allocation16_spill]] %s3007_s19  ;;  %s525_s13 = sadd.s32 (!%p457_p10), %s2847_s24, %s2199_s29 }
  0x1d   : > { %s2200_s26 = sshll.u32 (!%p457_p10), %s525_s13, 4  ;;  %p546_p13 = scmp.lt.s32.totalorder (!%p457_p10), %s525_s13, 3 }
  0x1e   : > { %p527_p12 = scmp.lt.s32.totalorder (!%p457_p10), %s2200_s26, 63  ;;  %s3039_s14 = scalar_lea.vmem (!%p457_p10), [#allocation2], %s2198_s30 }
  0x1f   : > { %p2210_p0 = scmp.ne.s32.totalorder (!%p457_p10), %s2847_s24, 0 }
  0x20   : > { %s3609_s26 = smov (!%p527_p12, %s2200_s26), 63  ;;  %s3611_s13 = smov (!%p546_p13, %s525_s13), 3 }
  0x21   : > { %s2201_s17 = sshll.u32 %s3609_s26, 3  ;;  %s548_s21 = scalar_lea.vmem %s3546_s2, %s3611_s13  ;;  %vm572_vm0 = vcmask (!%p2210_p0), 261120   ;;  %v2865_v0 = vmov (!%p2210_p0), 0.0  }
  0x22   : > { %s3019_s27 = scalar_lea.vmem %s3544_s0, %s2201_s17  ;;  %s3024_s16 = scalar_lea.vmem %s3545_s1, %s2201_s17  ;;  %573 = vst.msk [vmem:[%s3039_s14] sm:$0xff] (!%p2210_p0), %vm572_vm0, %v2865_v0  ;;  %574 = vst.msk [vmem:[%s3039_s14 + $0x8] sm:$0xff] (!%p2210_p0), %vm572_vm0, %v2865_v0 }
  0x23   : > { %s555_s15 = scalar_lea.vmem %s3547_s3, %s3611_s13  ;;  %s3037_s25 = scalar_lea.vmem %s3549_s5, %s2201_s17 }
  0x24   : > { %571 = sbr.rel (%p2210_p0) target bundleno = 43 (0x2b), region = 72 }
  0x2b PF: > { %v595_v1 = vld [vmem:[%s3019_s27 + $0x10] sm:$0xff]  ;;  %v593_v2 = vld [vmem:[%s3019_s27] sm:$0xff]  ;;  %v2866_v3 = vmov 0   ;;  %v596_v4 = vld [vmem:[%s3019_s27 + $0x18] sm:$0xff]  ;;  %v625_v37 = vlaneseq  ;;  %vm819_vm1 = vcmask 130048   ;;  %v2867_v41 = vmov 0.0  }
  0x2c   : > { %2768 = vset.pattern.permute.xlu1 %v2866_v3  ;;  %2767 = vset.pattern.permute.xlu0 %v2866_v3  ;;  %v594_v5 = vld [vmem:[%s3019_s27 + $0x8] sm:$0xff]  ;;  %v597_v7 = vld [vmem:[%s3019_s27 + $0x20] sm:$0xff]  ;;  %v600_v9 = vld [vmem:[%s3019_s27 + $0x38] sm:$0xff]  ;;  %s2869_s22 = smov 16   ;;  %s3586_s17 = sld [smem:[#allocation8_spill]] }
  0x2d   : > { %634 = vperm.xlu1 %2768, %v595_v1   ;;  %628 = vperm.xlu0 %2767, %v593_v2   ;;  %v598_v6 = vld [vmem:[%s3019_s27 + $0x28] sm:$0xff]  ;;  %v575_v8 = vld [vmem:[%s3548_s4] sm:$0xff]  ;;  %v599_v10 = vld [vmem:[%s3019_s27 + $0x30] sm:$0xff]  ;;  %v3083_v38 = vand.u32 127, %v625_v37  ;;  %s3587_s13 = sld [smem:[#allocation6_spill]]  ;;  %s2068_s12 = sshll.u32 %s3039_s14, 4  ;;  %s3486_s12 = int_to_ptr.vmem [resolvable:$true] %s2068_s12 }
  0x2e   : > { %v576_v11 = vld [vmem:[%s3548_s4 + $0x8] sm:$0xff]  ;;  %v601_v14 = vld [vmem:[%s3019_s27 + $0x40] sm:$0xff]  ;;  %v604_v15 = vld [vmem:[%s3019_s27 + $0x58] sm:$0xff]  ;;  %s3589_s24 = sld [smem:[#allocation17_spill]]  ;;  %s2769_s19 = scalar_lea.vmem %s3486_s12, 256 }
  0x2f   : > { %v2625_v12 = vpack.c.bf16 %v576_v11, %v575_v8  ;;  %v602_v13 = vld [vmem:[%s3019_s27 + $0x48] sm:$0xff]  ;;  %v603_v16 = vld [vmem:[%s3019_s27 + $0x50] sm:$0xff]  ;;  %v605_v18 = vld [vmem:[%s3019_s27 + $0x60] sm:$0xff]  ;;  %p2770_p1 = scmp.ne.s32.totalorder %s3486_s12, %s2769_s19  ;;  %s2872_s20 = smov [#allocation2]  }
  0x30   : > { %v606_v17 = vld [vmem:[%s3019_s27 + $0x68] sm:$0xff]  ;;  %v608_v19 = vld [vmem:[%s3019_s27 + $0x78] sm:$0xff]  ;;  %v607_v20 = vld [vmem:[%s3019_s27 + $0x70] sm:$0xff]  ;;  %s2868_s27 = smov 32  }
  0x31   : > { %637 = vperm.xlu1 %2768, %v596_v4   ;;  %631 = vperm.xlu0 %2767, %v594_v5   ;;  %v610_v21 = vld [vmem:[%s3024_s16 + $0x8] sm:$0xff]  ;;  %v609_v22 = vld [vmem:[%s3024_s16] sm:$0xff]  ;;  %v612_v23 = vld [vmem:[%s3024_s16 + $0x18] sm:$0xff]  ;;  %p2771_p2 = pnand %p2770_p1, %p2989_p3 }
  0x32   : > { %2626 = vmatprep.subr.bf16.mxu0 %v2625_v12  ;;  %2685 = vmatprep.subr.bf16.mxu1 %v2625_v12  ;;  %v611_v24 = vld [vmem:[%s3024_s16 + $0x10] sm:$0xff]  ;;  %v614_v25 = vld [vmem:[%s3024_s16 + $0x28] sm:$0xff]  ;;  %v613_v26 = vld [vmem:[%s3024_s16 + $0x20] sm:$0xff]  ;;  %s2341_s26 = sshll.u32 %s3586_s17, 8 }
  0x33   : > { %2628 = vmatpush3.bf16.msra.mxu0 %v2625_v12  ;;  %2686 = vmatpush3.bf16.msra.mxu1 %v2625_v12  ;;  %v616_v27 = vld [vmem:[%s3024_s16 + $0x38] sm:$0xff]  ;;  %v615_v28 = vld [vmem:[%s3024_s16 + $0x30] sm:$0xff]  ;;  %v618_v29 = vld [vmem:[%s3024_s16 + $0x48] sm:$0xff]  ;;  %p2772_p4 = pneg %p2771_p2 }
  0x34   : > { %v617_v30 = vld [vmem:[%s3024_s16 + $0x40] sm:$0xff]  ;;  %v620_v31 = vld [vmem:[%s3024_s16 + $0x58] sm:$0xff]  ;;  %v619_v32 = vld [vmem:[%s3024_s16 + $0x50] sm:$0xff]  ;;  %s3484_s28 = scalar_lea.hbm %s3589_s24, %s2341_s26 }
  0x35   : > { %643 = vperm.xlu1 %2768, %v598_v6   ;;  %640 = vperm.xlu0 %2767, %v597_v7   ;;  %v622_v33 = vld [vmem:[%s3024_s16 + $0x68] sm:$0xff]  ;;  %v621_v34 = vld [vmem:[%s3024_s16 + $0x60] sm:$0xff]  ;;  %v624_v35 = vld [vmem:[%s3024_s16 + $0x78] sm:$0xff] }
  0x36   : > { %v623_v36 = vld [vmem:[%s3024_s16 + $0x70] sm:$0xff]  ;;  %s2870_s16 = smov 96  }
  0x39   : > { %649 = vperm.xlu1 %2768, %v600_v9   ;;  %646 = vperm.xlu0 %2767, %v599_v10  }
  0x3d   : > { %655 = vperm.xlu1 %2768, %v602_v13   ;;  %652 = vperm.xlu0 %2767, %v601_v14  }
  0x41   : > { %661 = vperm.xlu1 %2768, %v604_v15   ;;  %658 = vperm.xlu0 %2767, %v603_v16  }
  0x45   : > { %667 = vperm.xlu1 %2768, %v606_v17   ;;  %664 = vperm.xlu0 %2767, %v605_v18  }
  0x49   : > { %673 = vperm.xlu1 %2768, %v608_v19   ;;  %670 = vperm.xlu0 %2767, %v607_v20  }
  0x4d   : > { %679 = vperm.xlu1 %2768, %v610_v21   ;;  %676 = vperm.xlu0 %2767, %v609_v22  }
  0x51   : > { %685 = vperm.xlu1 %2768, %v612_v23   ;;  %682 = vperm.xlu0 %2767, %v611_v24  }
  0x55   : > { %691 = vperm.xlu1 %2768, %v614_v25   ;;  %688 = vperm.xlu0 %2767, %v613_v26  }
  0x59   : > { %697 = vperm.xlu1 %2768, %v616_v27   ;;  %694 = vperm.xlu0 %2767, %v615_v28  }
  0x5d   : > { %703 = vperm.xlu1 %2768, %v618_v29   ;;  %700 = vperm.xlu0 %2767, %v617_v30  }
  0x61   : > { %709 = vperm.xlu1 %2768, %v620_v31   ;;  %706 = vperm.xlu0 %2767, %v619_v32  }
  0x65   : > { %715 = vperm.xlu1 %2768, %v622_v33   ;;  %712 = vperm.xlu0 %2767, %v621_v34  }
  0x69   : > { %721 = vperm.xlu1 %2768, %v624_v35   ;;  %718 = vperm.xlu0 %2767, %v623_v36  }
  0xac   : > { %v635_v39 = vpop.permute.xlu1 %634  ;;  %v629_v40 = vpop.permute.xlu0 %628 }
  0xad   : > { %vm723_vm2 = vcmp.eq.s32.totalorder %v629_v40, %v3083_v38  ;;  %vm725_vm3 = vcmp.eq.s32.totalorder %v635_v39, %v3083_v38 }
  0xae   : > { %v2211_v42 = vsel %vm723_vm2, 1.0, %v2867_v41  ;;  %v2213_v46 = vsel %vm725_vm3, 1.0, %v2867_v41 }
  0xaf   : > { %2479 = vmatprep.mubr.msk.f32.mxu0 %vm819_vm1, %v2211_v42 }
  0xb0   : > { %v638_v43 = vpop.permute.xlu1 %637  ;;  %v632_v44 = vpop.permute.xlu0 %631 }
  0xb1   : > { %vm724_vm4 = vcmp.eq.s32.totalorder %v632_v44, %v3083_v38  ;;  %vm726_vm5 = vcmp.eq.s32.totalorder %v638_v43, %v3083_v38  ;;  %v578_v43 = vld [vmem:[%s3037_s25 + $0x8] sm:$0xff]  ;;  %v577_v44 = vld [vmem:[%s3037_s25] sm:$0xff] }
  0xb2   : > { %v2212_v45 = vsel %vm724_vm4, 1.0, %v2867_v41  ;;  %v2214_v49 = vsel %vm726_vm5, 1.0, %v2867_v41  ;;  %1223 = vrot.lane.b32.xlu1 %v578_v43, %s2868_s27  ;;  %1221 = vrot.lane.b32.xlu0 %v577_v44, %s2868_s27 }
  0xb3   : > { %2480 = vmatmul.mubr.msk.f32.vlgmr.msra.gmra.mrb[0].mxu0 %vm819_vm1, %v2212_v45  ;;  %v579_v45 = vld [vmem:[%s3037_s25 + $0x10] sm:$0xff] }
  0xb4   : > { %v644_v47 = vpop.permute.xlu1 %643  ;;  %v641_v48 = vpop.permute.xlu0 %640  ;;  %2482 = vmatprep.mubr.msk.f32.mxu0 %vm819_vm1, %v2213_v46  ;;  %v581_v46 = vld [vmem:[%s3037_s25 + $0x20] sm:$0xff] }
  0xb5   : > { %vm727_vm6 = vcmp.eq.s32.totalorder %v641_v48, %v3083_v38  ;;  %vm728_vm7 = vcmp.eq.s32.totalorder %v644_v47, %v3083_v38  ;;  %v584_v47 = vld [vmem:[%s3037_s25 + $0x38] sm:$0xff]  ;;  %v583_v48 = vld [vmem:[%s3037_s25 + $0x30] sm:$0xff] }
  0xb6   : > { %v2215_v50 = vsel %vm727_vm6, 1.0, %v2867_v41  ;;  %v2216_v53 = vsel %vm728_vm7, 1.0, %v2867_v41  ;;  %1225 = vrot.lane.b32.xlu0 %v579_v45, %s2868_s27 }
  0xb7   : > { %2483 = vmatmul.mubr.msk.f32.gmra.mrb[2].mxu0 %vm819_vm1, %v2214_v49  ;;  %v586_v49 = vld [vmem:[%s3037_s25 + $0x48] sm:$0xff] }
  0xb8   : > { %v650_v51 = vpop.permute.xlu1 %649  ;;  %v647_v52 = vpop.permute.xlu0 %646  ;;  %2485 = vmatprep.mubr.msk.f32.mxu0 %vm819_vm1, %v2215_v50  ;;  %v585_v50 = vld [vmem:[%s3037_s25 + $0x40] sm:$0xff] }
  0xb9   : > { %vm729_vm8 = vcmp.eq.s32.totalorder %v647_v52, %v3083_v38  ;;  %vm730_vm9 = vcmp.eq.s32.totalorder %v650_v51, %v3083_v38  ;;  %v588_v51 = vld [vmem:[%s3037_s25 + $0x58] sm:$0xff]  ;;  %v587_v52 = vld [vmem:[%s3037_s25 + $0x50] sm:$0xff] }
  0xba   : > { %v2217_v54 = vsel %vm729_vm8, 1.0, %v2867_v41  ;;  %v2218_v57 = vsel %vm730_vm9, 1.0, %v2867_v41  ;;  %1229 = vrot.lane.b32.xlu0 %v581_v46, %s2868_s27 }
  0xbb   : > { %2486 = vmatmul.mubr.msk.f32.gmra.mrb[4].mxu0 %vm819_vm1, %v2216_v53  ;;  %v1302_v53 = vld [vmem:[%s3550_s6] sm:$0xff] }
  0xbc   : > { %v656_v55 = vpop.permute.xlu1 %655  ;;  %v653_v56 = vpop.permute.xlu0 %652  ;;  %2488 = vmatprep.mubr.msk.f32.mxu0 %vm819_vm1, %v2217_v54  ;;  %v1303_v54 = vld [vmem:[%s3550_s6 + $0x8] sm:$0xff] }
  0xbd   : > { %vm731_vm10 = vcmp.eq.s32.totalorder %v653_v56, %v3083_v38  ;;  %vm732_vm11 = vcmp.eq.s32.totalorder %v656_v55, %v3083_v38  ;;  %v2629_v55 = vpack.c.bf16 %v1303_v54, %v1302_v53 }
  0xbe   : > { %v2219_v58 = vsel %vm731_vm10, 1.0, %v2867_v41  ;;  %v2220_v61 = vsel %vm732_vm11, 1.0, %v2867_v41  ;;  %1233 = vrot.lane.b32.xlu0 %v583_v48, %s2868_s27 }
  0xbf   : > { %2489 = vmatmul.mubr.msk.f32.gmra.mrb[6].mxu0 %vm819_vm1, %v2218_v57  ;;  %2630 = vmatprep.subr.bf16.mxu1 %v2629_v55 }
  0xc0   : > { %v662_v59 = vpop.permute.xlu1 %661  ;;  %v659_v60 = vpop.permute.xlu0 %658  ;;  %2491 = vmatprep.mubr.msk.f32.mxu0 %vm819_vm1, %v2219_v58 }
  0xc1   : > { %vm733_vm12 = vcmp.eq.s32.totalorder %v659_v60, %v3083_v38  ;;  %vm734_vm13 = vcmp.eq.s32.totalorder %v662_v59, %v3083_v38 }
  0xc2   : > { %v2221_v62 = vsel %vm733_vm12, 1.0, %v2867_v41  ;;  %v2222_v1 = vsel %vm734_vm13, 1.0, %v2867_v41  ;;  %1237 = vrot.lane.b32.xlu0 %v585_v50, %s2868_s27 }
  0xc3   : > { %2492 = vmatmul.mubr.msk.f32.gmra.mrb[8].mxu0 %vm819_vm1, %v2220_v61 }
  0xc4   : > { %v668_v63 = vpop.permute.xlu1 %667  ;;  %v665_v0 = vpop.permute.xlu0 %664  ;;  %2494 = vmatprep.mubr.msk.f32.mxu0 %vm819_vm1, %v2221_v62 }
  0xc5   : > { %vm735_vm14 = vcmp.eq.s32.totalorder %v665_v0, %v3083_v38  ;;  %vm736_vm15 = vcmp.eq.s32.totalorder %v668_v63, %v3083_v38 }
  0xc6   : > { %v2223_v2 = vsel %vm735_vm14, 1.0, %v2867_v41  ;;  %v2224_v5 = vsel %vm736_vm15, 1.0, %v2867_v41  ;;  %1241 = vrot.lane.b32.xlu0 %v587_v52, %s2868_s27 }
  0xc7   : > { %2495 = vmatmul.mubr.msk.f32.gmra.mrb[10].mxu0 %vm819_vm1, %v2222_v1 }
  0xc8   : > { %v674_v3 = vpop.permute.xlu1 %673  ;;  %v671_v4 = vpop.permute.xlu0 %670  ;;  %2497 = vmatprep.mubr.msk.f32.mxu0 %vm819_vm1, %v2223_v2 }
  0xc9   : > { %vm737_vm0 = vcmp.eq.s32.totalorder %v671_v4, %v3083_v38  ;;  %vm738_vm2 = vcmp.eq.s32.totalorder %v674_v3, %v3083_v38 }
  0xca   : > { %v2225_v6 = vsel %vm737_vm0, 1.0, %v2867_v41  ;;  %v2226_v9 = vsel %vm738_vm2, 1.0, %v2867_v41 }
  0xcb   : > { %2498 = vmatmul.mubr.msk.f32.gmra.mrb[12].mxu0 %vm819_vm1, %v2224_v5 }
  0xcc   : > { %v680_v7 = vpop.permute.xlu1 %679  ;;  %v677_v8 = vpop.permute.xlu0 %676  ;;  %2500 = vmatprep.mubr.msk.f32.mxu0 %vm819_vm1, %v2225_v6 }
  0xcd   : > { %vm739_vm3 = vcmp.eq.s32.totalorder %v677_v8, %v3083_v38  ;;  %vm740_vm4 = vcmp.eq.s32.totalorder %v680_v7, %v3083_v38 }
  0xce   : > { %v2227_v10 = vsel %vm739_vm3, 1.0, %v2867_v41  ;;  %v2228_v13 = vsel %vm740_vm4, 1.0, %v2867_v41  ;;  %vm1314_vm4 = vcmask 326656  }
  0xcf   : > { %2501 = vmatmul.mubr.msk.f32.gmra.mrb[14].mxu0 %vm819_vm1, %v2226_v9 }
  0xd0   : > { %v686_v11 = vpop.permute.xlu1 %685  ;;  %v683_v12 = vpop.permute.xlu0 %682  ;;  %2503 = vmatprep.mubr.msk.f32.mxu0 %vm819_vm1, %v2227_v10 }
  0xd1   : > { %vm741_vm5 = vcmp.eq.s32.totalorder %v683_v12, %v3083_v38  ;;  %vm742_vm6 = vcmp.eq.s32.totalorder %v686_v11, %v3083_v38  ;;  %v1304_v11 = vld [vmem:[%s3550_s6 + $0x10] sm:$0xff]  ;;  %v1305_v12 = vld [vmem:[%s3550_s6 + $0x18] sm:$0xff] }
  0xd2   : > { %v2229_v14 = vsel %vm741_vm5, 1.0, %v2867_v41  ;;  %v2230_v17 = vsel %vm742_vm6, 1.0, %v2867_v41  ;;  %vm1285_vm5 = vcmask 261120  }
  0xd3   : > { %2504 = vmatmul.mubr.msk.f32.gmra.mrb[16].mxu0 %vm819_vm1, %v2228_v13 }
  0xd4   : > { %v692_v15 = vpop.permute.xlu1 %691  ;;  %v689_v16 = vpop.permute.xlu0 %688  ;;  %2506 = vmatprep.mubr.msk.f32.mxu0 %vm819_vm1, %v2229_v14  ;;  %v2633_v14 = vpack.c.bf16 %v1305_v12, %v1304_v11 }
  0xd5   : > { %vm743_vm7 = vcmp.eq.s32.totalorder %v689_v16, %v3083_v38  ;;  %vm744_vm8 = vcmp.eq.s32.totalorder %v692_v15, %v3083_v38 }
  0xd6   : > { %v2231_v18 = vsel %vm743_vm7, 1.0, %v2867_v41  ;;  %v2232_v21 = vsel %vm744_vm8, 1.0, %v2867_v41 }
  0xd7   : > { %2507 = vmatmul.mubr.msk.f32.gmra.mrb[18].mxu0 %vm819_vm1, %v2230_v17  ;;  %v1306_v17 = vld [vmem:[%s3550_s6 + $0x20] sm:$0xff] }
  0xd8   : > { %v698_v19 = vpop.permute.xlu1 %697  ;;  %v695_v20 = vpop.permute.xlu0 %694  ;;  %2509 = vmatprep.mubr.msk.f32.mxu0 %vm819_vm1, %v2231_v18 }
  0xd9   : > { %vm745_vm9 = vcmp.eq.s32.totalorder %v695_v20, %v3083_v38  ;;  %vm746_vm10 = vcmp.eq.s32.totalorder %v698_v19, %v3083_v38 }
  0xda   : > { %v2233_v22 = vsel %vm745_vm9, 1.0, %v2867_v41  ;;  %v2234_v25 = vsel %vm746_vm10, 1.0, %v2867_v41 }
  0xdb   : > { %2510 = vmatmul.mubr.msk.f32.gmra.mrb[20].mxu0 %vm819_vm1, %v2232_v21 }
  0xdc   : > { %v704_v23 = vpop.permute.xlu1 %703  ;;  %v701_v24 = vpop.permute.xlu0 %700  ;;  %2512 = vmatprep.mubr.msk.f32.mxu0 %vm819_vm1, %v2233_v22 }
  0xdd   : > { %vm747_vm11 = vcmp.eq.s32.totalorder %v701_v24, %v3083_v38  ;;  %vm748_vm12 = vcmp.eq.s32.totalorder %v704_v23, %v3083_v38 }
  0xde   : > { %v2235_v26 = vsel %vm747_vm11, 1.0, %v2867_v41  ;;  %v2236_v29 = vsel %vm748_vm12, 1.0, %v2867_v41 }
  0xdf   : > { %2513 = vmatmul.mubr.msk.f32.gmra.mrb[22].mxu0 %vm819_vm1, %v2234_v25 }
  0xe0   : > { %v710_v27 = vpop.permute.xlu1 %709  ;;  %v707_v28 = vpop.permute.xlu0 %706  ;;  %2515 = vmatprep.mubr.msk.f32.mxu0 %vm819_vm1, %v2235_v26 }
  0xe1   : > { %vm750_vm13 = vcmp.eq.s32.totalorder %v710_v27, %v3083_v38  ;;  %vm749_vm14 = vcmp.eq.s32.totalorder %v707_v28, %v3083_v38  ;;  %v590_v28 = vld [vmem:[%s3037_s25 + $0x68] sm:$0xff] }
  0xe2   : > { %v2238_v30 = vsel %vm750_vm13, 1.0, %v2867_v41  ;;  %v2237_v31 = vsel %vm749_vm14, 1.0, %v2867_v41 }
  0xe3   : > { %2516 = vmatmul.mubr.msk.f32.gmra.mrb[24].mxu0 %vm819_vm1, %v2236_v29  ;;  %2518 = vmatprep.mubr.msk.f32.mxu1 %vm819_vm1, %v2237_v31  ;;  %v589_v29 = vld [vmem:[%s3037_s25 + $0x60] sm:$0xff]  ;;  %v1525_v31 = vld [vmem:[%s3552_s8 + $0x8] sm:$0xff] }
  0xe4   : > { %v716_v32 = vpop.permute.xlu1 %715  ;;  %v713_v33 = vpop.permute.xlu0 %712  ;;  %2519 = vmatmul.mubr.msk.f32.vlgmr.msra.gmra.mrb[0].mxu1 %vm819_vm1, %v2238_v30  ;;  %v1524_v30 = vld [vmem:[%s3552_s8] sm:$0xff] }
  0xe5   : > { %vm752_vm15 = vcmp.eq.s32.totalorder %v716_v32, %v3083_v38  ;;  %vm751_vm0 = vcmp.eq.s32.totalorder %v713_v33, %v3083_v38  ;;  %2632 = vmatpush3.bf16.msra.mxu1 %v2629_v55  ;;  %v2637_v32 = vpack.c.bf16 %v1525_v31, %v1524_v30  ;;  %v592_v33 = vld [vmem:[%s3037_s25 + $0x78] sm:$0xff] }
  0xe6   : > { %v2240_v34 = vsel %vm752_vm15, 1.0, %v2867_v41  ;;  %v2239_v35 = vsel %vm751_vm0, 1.0, %v2867_v41  ;;  %2634 = vmatprep.subr.bf16.mxu1 %v2633_v14 }
  0xe7   : > { %2521 = vmatprep.mubr.msk.f32.mxu1 %vm819_vm1, %v2239_v35 }
  0xe8   : > { %v722_v36 = vpop.permute.xlu1 %721  ;;  %v719_v39 = vpop.permute.xlu0 %718  ;;  %2522 = vmatmul.mubr.msk.f32.gmra.mrb[2].mxu1 %vm819_vm1, %v2240_v34  ;;  %v591_v34 = vld [vmem:[%s3037_s25 + $0x70] sm:$0xff] }
  0xe9   : > { %vm754_vm2 = vcmp.eq.s32.totalorder %v722_v36, %v3083_v38  ;;  %vm753_vm3 = vcmp.eq.s32.totalorder %v719_v39, %v3083_v38  ;;  %v580_v38 = vld [vmem:[%s3037_s25 + $0x18] sm:$0xff]  ;;  %2636 = vmatpush3.bf16.msra.mxu1 %v2633_v14 }
  0xea   : > { %v2242_v40 = vsel %vm754_vm2, 1.0, %v2867_v41  ;;  %v2241_v42 = vsel %vm753_vm3, 1.0, %v2867_v41  ;;  %1227 = vrot.lane.b32.xlu1 %v580_v38, %s2868_s27  ;;  %v582_v41 = vld [vmem:[%s3037_s25 + $0x28] sm:$0xff]  ;;  %2535 = vmatprep.subr.mxu1 %v1306_v17  ;;  %s3591_s25 = sand.u32 1, %s3587_s13  }
  0xeb   : > { %2524 = vmatprep.mubr.msk.f32.mxu1 %vm819_vm1, %v2241_v42 }
  0xec   : > { %2525 = vmatmul.mubr.msk.f32.gmra.mrb[4].mxu1 %vm819_vm1, %v2242_v40 }
  0xed   : > { %2536 = vmatpush3.msra.mxu1 %v1306_v17 }
  0xee   : > { %1231 = vrot.lane.b32.xlu1 %v582_v41, %s2868_s27  ;;  %2638 = vmatprep.subr.bf16.mxu1 %v2637_v32 }
  0xf2   : > { %1235 = vrot.lane.b32.xlu1 %v584_v47, %s2868_s27 }
  0xf6   : > { %1239 = vrot.lane.b32.xlu1 %v586_v49, %s2868_s27 }
  0xfa   : > { %1243 = vrot.lane.b32.xlu1 %v588_v51, %s2868_s27 }
 0x124   : > { %v1224_v35 = vpop.permute.xlu1 %1223  ;;  %v1222_v36 = vpop.permute.xlu0 %1221 }
 0x128   : > { %v1226_v40 = vpop.permute.xlu0 %1225 }
 0x12c   : > { %v1230_v43 = vpop.permute.xlu0 %1229 }
 0x130   : > { %v1234_v38 = vpop.permute.xlu0 %1233 }
 0x134   : > { %v1238_v41 = vpop.permute.xlu0 %1237 }
 0x138   : > { %v1242_v47 = vpop.permute.xlu0 %1241 }
 0x15c   : > { %v1228_v39 = vpop.permute.xlu1 %1227 }
 0x160   : > { %v1232_v42 = vpop.permute.xlu1 %1231 }
 0x164   : > { %v1236_v44 = vpop.permute.xlu1 %1235 }
 0x168   : > { %v1240_v45 = vpop.permute.xlu1 %1239 }
 0x16c   : > { %v1244_v46 = vpop.permute.xlu1 %1243 }
 0x186   : > { %v3211_v56 = vpop.f32.mrb[0].mxu0 }
 0x187   : > { %v3213_v57 = vpop.f32.mrb[1].mxu0 }
 0x18a   : > { %v3215_v58 = vpop.f32.mrb[2].mxu0 }
 0x18b   : > { %v3217_v59 = vpop.f32.mrb[3].mxu0 }
 0x18e   : > { %v3219_v60 = vpop.f32.mrb[4].mxu0 }
 0x18f   : > { %v3221_v61 = vpop.f32.mrb[5].mxu0 }
 0x192   : > { %v3223_v62 = vpop.f32.mrb[6].mxu0 }
 0x193   : > { %v3225_v63 = vpop.f32.mrb[7].mxu0 }
 0x196   : > { %v3227_v0 = vpop.f32.mrb[8].mxu0 }
 0x197   : > { %v3229_v1 = vpop.f32.mrb[9].mxu0 }
 0x19a   : > { %v3231_v2 = vpop.f32.mrb[10].mxu0 }
 0x19b   : > { %v3233_v3 = vpop.f32.mrb[11].mxu0 }
 0x19e   : > { %v3235_v4 = vpop.f32.mrb[12].mxu0 }
 0x19f   : > { %v3237_v5 = vpop.f32.mrb[13].mxu0 }
 0x1a2   : > { %v3239_v6 = vpop.f32.mrb[14].mxu0 }
 0x1a3   : > { %v3241_v7 = vpop.f32.mrb[15].mxu0 }
 0x1a6   : > { %v2505_v8 = vpop.f32.mrb[16].mxu0 }
 0x1a7   : > { %v1062_v9 = vpop.f32.mrb[17].mxu0 }
 0x1aa   : > { %v2508_v10 = vpop.f32.mrb[18].mxu0 }
 0x1ab   : > { %v1072_v13 = vpop.f32.mrb[19].mxu0 }
 0x1ae   : > { %v2511_v15 = vpop.f32.mrb[20].mxu0 }
 0x1af   : > { %v1082_v16 = vpop.f32.mrb[21].mxu0 }
 0x1b2   : > { %v2514_v18 = vpop.f32.mrb[22].mxu0 }
 0x1b3   : > { %v1092_v19 = vpop.f32.mrb[23].mxu0 }
 0x1b6   : > { %v2517_v20 = vpop.f32.mrb[24].mxu0 }
 0x1b7   : > { %v1102_v21 = vpop.f32.mrb[25].mxu0  ;;  %v2520_v22 = vpop.f32.mrb[0].mxu1 }
 0x1b8   : > { %1179 = vrot.lane.b32.xlu1 %v2520_v22, %s2869_s22  ;;  %v1112_v23 = vpop.f32.mrb[1].mxu1 }
 0x1b9   : > { %1177 = vrot.lane.b32.xlu0 %v1112_v23, %s2869_s22 }
 0x1bb   : > { %v2523_v24 = vpop.f32.mrb[2].mxu1 }
 0x1bc   : > { %v1122_v25 = vpop.f32.mrb[3].mxu1  ;;  %1159 = vrot.lane.b32.xlu1 %v2505_v8, %s2869_s22 }
 0x1bd   : > { %1157 = vrot.lane.b32.xlu0 %v1062_v9, %s2869_s22 }
 0x1bf   : > { %v2526_v26 = vpop.f32.mrb[4].mxu1 }
 0x1c0   : > { %v1132_v27 = vpop.f32.mrb[5].mxu1  ;;  %1163 = vrot.lane.b32.xlu1 %v2508_v10, %s2869_s22 }
 0x1c1   : > { %1161 = vrot.lane.b32.xlu0 %v1072_v13, %s2869_s22 }
 0x1c4   : > { %1167 = vrot.lane.b32.xlu1 %v2511_v15, %s2869_s22 }
 0x1c5   : > { %1165 = vrot.lane.b32.xlu0 %v1082_v16, %s2869_s22 }
 0x1c8   : > { %1171 = vrot.lane.b32.xlu1 %v2514_v18, %s2869_s22 }
 0x1c9   : > { %1169 = vrot.lane.b32.xlu0 %v1092_v19, %s2869_s22 }
 0x1cc   : > { %1175 = vrot.lane.b32.xlu1 %v2517_v20, %s2869_s22 }
 0x1cd   : > { %1173 = vrot.lane.b32.xlu0 %v1102_v21, %s2869_s22 }
 0x1d0   : > { %1183 = vrot.lane.b32.xlu1 %v2523_v24, %s2869_s22 }
 0x1d1   : > { %1181 = vrot.lane.b32.xlu0 %v1122_v25, %s2869_s22 }
 0x1d4   : > { %1247 = vrot.lane.b32.xlu1 %v590_v28, %s2868_s27 }
 0x1d5   : > { %1245 = vrot.lane.b32.xlu0 %v589_v29, %s2868_s27 }
 0x1d8   : > { %1187 = vrot.lane.b32.xlu1 %v2526_v26, %s2869_s22 }
 0x1d9   : > { %1185 = vrot.lane.b32.xlu0 %v1132_v27, %s2869_s22 }
 0x1dc   : > { %1251 = vrot.lane.b32.xlu1 %v592_v33, %s2868_s27 }
 0x1dd   : > { %1249 = vrot.lane.b32.xlu0 %v591_v34, %s2868_s27  ;;  %s3492_s27 = scalar_lea.sflag [#allocation3], %s3591_s25 }
 0x22a   : > { %v1180_v48 = vpop.permute.xlu1 %1179 }
 0x22b   : > { %v1178_v49 = vpop.permute.xlu0 %1177  ;;  %v1280_v26 = vsel %vm819_vm1, %v3231_v2, %v1180_v48 }
 0x22e   : > { %v1160_v50 = vpop.permute.xlu1 %1159 }
 0x22f   : > { %v1270_v51 = vsel %vm819_vm1, %v3211_v56, %v1160_v50  ;;  %v1158_v52 = vpop.permute.xlu0 %1157 }
 0x230   : > { %v1269_v53 = vsel %vm819_vm1, %v3213_v57, %v1158_v52  ;;  %v1287_v55 = vsel %vm1285_vm5, %v1270_v51, %v1224_v35 }
 0x231   : > { %v1286_v54 = vsel %vm1285_vm5, %v1269_v53, %v1222_v36 }
 0x232   : > { %2537 = vmatprep.mubr.msk.f32.mxu1 %vm1314_vm4, %v1286_v54  ;;  %v1164_v8 = vpop.permute.xlu1 %1163 }
 0x233   : > { %v1272_v9 = vsel %vm819_vm1, %v3215_v58, %v1164_v8  ;;  %2538 = vmatmul.mubr.msk.f32.vlgmr.msra.gmra.mrb[6].mxu1 %vm1314_vm4, %v1287_v55  ;;  %v1162_v10 = vpop.permute.xlu0 %1161 }
 0x234   : > { %v1271_v56 = vsel %vm819_vm1, %v3217_v59, %v1162_v10  ;;  %2640 = vmatpush3.bf16.msra.mxu1 %v2637_v32  ;;  %v1289_v12 = vsel %vm1285_vm5, %v1272_v9, %v1228_v39 }
 0x235   : > { %v1288_v11 = vsel %vm1285_vm5, %v1271_v56, %v1226_v40  ;;  %v1526_v40 = vld [vmem:[%s3552_s8 + $0x10] sm:$0xff] }
 0x236   : > { %2540 = vmatprep.mubr.msk.f32.mxu1 %vm1314_vm4, %v1288_v11  ;;  %v1168_v57 = vpop.permute.xlu1 %1167 }
 0x237   : > { %v1274_v13 = vsel %vm819_vm1, %v3219_v60, %v1168_v57  ;;  %2541 = vmatmul.mubr.msk.f32.gmra.mrb[8].mxu1 %vm1314_vm4, %v1289_v12  ;;  %v1166_v58 = vpop.permute.xlu0 %1165 }
 0x238   : > { %v1273_v14 = vsel %vm819_vm1, %v3221_v61, %v1166_v58  ;;  %v1291_v16 = vsel %vm1285_vm5, %v1274_v13, %v1232_v42 }
 0x239   : > { %v1290_v15 = vsel %vm1285_vm5, %v1273_v14, %v1230_v43  ;;  %v1729_v43 = vld [vmem:[%s3554_s10 + $0x8] sm:$0xff] }
 0x23a   : > { %2543 = vmatprep.mubr.msk.f32.mxu1 %vm1314_vm4, %v1290_v15  ;;  %v1172_v59 = vpop.permute.xlu1 %1171 }
 0x23b   : > { %v1276_v17 = vsel %vm819_vm1, %v3223_v62, %v1172_v59  ;;  %2544 = vmatmul.mubr.msk.f32.gmra.mrb[10].mxu1 %vm1314_vm4, %v1291_v16  ;;  %v1170_v18 = vpop.permute.xlu0 %1169  ;;  %v1279_v62 = vsel %vm819_vm1, %v3233_v3, %v1178_v49 }
 0x23c   : > { %v1275_v60 = vsel %vm819_vm1, %v3225_v63, %v1170_v18  ;;  %v1293_v20 = vsel %vm1285_vm5, %v1276_v17, %v1236_v44  ;;  %v1296_v27 = vsel %vm1285_vm5, %v1279_v62, %v1242_v47  ;;  %v1730_v44 = vld [vmem:[%s3554_s10 + $0x10] sm:$0xff] }
 0x23d   : > { %v1292_v19 = vsel %vm1285_vm5, %v1275_v60, %v1234_v38 }
 0x23e   : > { %2546 = vmatprep.mubr.msk.f32.mxu1 %vm1314_vm4, %v1292_v19  ;;  %v1176_v61 = vpop.permute.xlu1 %1175 }
 0x23f   : > { %v1278_v21 = vsel %vm819_vm1, %v3227_v0, %v1176_v61  ;;  %2547 = vmatmul.mubr.msk.f32.gmra.mrb[12].mxu1 %vm1314_vm4, %v1293_v20  ;;  %v1174_v22 = vpop.permute.xlu0 %1173 }
 0x240   : > { %v1277_v23 = vsel %vm819_vm1, %v3229_v1, %v1174_v22  ;;  %v1295_v25 = vsel %vm1285_vm5, %v1278_v21, %v1240_v45  ;;  %v1297_v1 = vsel %vm1285_vm5, %v1280_v26, %v1244_v46  ;;  %v1731_v45 = vld [vmem:[%s3554_s10 + $0x18] sm:$0xff]  ;;  %v3351_v46 = vld [vmem:[%s3551_s7] ss:$0 sm:$0xff] }
 0x241   : > { %v1294_v63 = vsel %vm1285_vm5, %v1277_v23, %v1238_v41  ;;  %v2649_v41 = vpack.c.bf16 %v1731_v45, %v1730_v44 }
 0x242   : > { %v1184_v24 = vpop.permute.xlu1 %1183  ;;  %2549 = vmatprep.mubr.msk.f32.mxu1 %vm1314_vm4, %v1294_v63 }
 0x243   : > { %2550 = vmatmul.mubr.msk.f32.gmra.mrb[14].mxu1 %vm1314_vm4, %v1295_v25  ;;  %v1182_v0 = vpop.permute.xlu0 %1181  ;;  %v1282_v2 = vsel %vm819_vm1, %v3235_v4, %v1184_v24 }
 0x244   : > { %2552 = vmatprep.mubr.msk.f32.mxu1 %vm1314_vm4, %v1296_v27  ;;  %v1281_v28 = vsel %vm819_vm1, %v3237_v5, %v1182_v0 }
 0x246   : > { %v1248_v3 = vpop.permute.xlu1 %1247 }
 0x247   : > { %2553 = vmatmul.mubr.msk.f32.gmra.mrb[16].mxu1 %vm1314_vm4, %v1297_v1  ;;  %v1246_v29 = vpop.permute.xlu0 %1245  ;;  %v1299_v31 = vsel %vm1285_vm5, %v1282_v2, %v1248_v3 }
 0x248   : > { %v1298_v30 = vsel %vm1285_vm5, %v1281_v28, %v1246_v29 }
 0x249   : > { %2555 = vmatprep.mubr.msk.f32.mxu1 %vm1314_vm4, %v1298_v30 }
 0x24a   : > { %v1188_v32 = vpop.permute.xlu1 %1187 }
 0x24b   : > { %2556 = vmatmul.mubr.msk.f32.gmra.mrb[18].mxu1 %vm1314_vm4, %v1299_v31  ;;  %v1186_v33 = vpop.permute.xlu0 %1185  ;;  %v1284_v36 = vsel %vm819_vm1, %v3239_v6, %v1188_v32  ;;  %v1728_v6 = vld [vmem:[%s3554_s10] sm:$0xff] }
 0x24c   : > { %v1283_v5 = vsel %vm819_vm1, %v3241_v7, %v1186_v33  ;;  %v1527_v7 = vld [vmem:[%s3552_s8 + $0x18] sm:$0xff]  ;;  %v2645_v38 = vpack.c.bf16 %v1729_v43, %v1728_v6 }
 0x24d   : > { %v2641_v42 = vpack.c.bf16 %v1527_v7, %v1526_v40 }
 0x24e   : > { %v1252_v34 = vpop.permute.xlu1 %1251  ;;  %2646 = vmatprep.subr.bf16.mxu0 %v2645_v38 }
 0x24f   : > { %v1250_v35 = vpop.permute.xlu0 %1249  ;;  %v1301_v4 = vsel %vm1285_vm5, %v1284_v36, %v1252_v34  ;;  %2642 = vmatprep.subr.bf16.mxu1 %v2641_v42  ;;  %2648 = vmatpush3.bf16.msra.mxu0 %v2645_v38 }
 0x250   : > { %v1300_v39 = vsel %vm1285_vm5, %v1283_v5, %v1250_v35  ;;  %2644 = vmatpush3.bf16.msra.mxu1 %v2641_v42  ;;  %2650 = vmatprep.subr.bf16.mxu0 %v2649_v41 }
 0x251   : > { %2558 = vmatprep.mubr.msk.f32.mxu1 %vm1314_vm4, %v1300_v39 }
 0x252   : > { %2559 = vmatmul.mubr.msk.f32.gmra.mrb[20].mxu1 %vm1314_vm4, %v1301_v4 }
 0x253   : > { %2652 = vmatpush3.bf16.msra.mxu0 %v2649_v41 }
 0x306   : > { %v2539_v47 = vpop.f32.mrb[6].mxu1 }
 0x307   : > { %v1435_v48 = vadd.f32 %v2539_v47, %v3351_v46  ;;  %v1429_v49 = vpop.f32.mrb[7].mxu1 }
 0x308   : > { %v1430_v50 = vadd.f32 %v3351_v46, %v1429_v49 }
 0x309   : > { %v1509_v51 = vmax.f32 %v1435_v48, 0.0  ;;  %v2292_v48 = vld [vmem:[%s3553_s9] ss:$0 sm:$0xff] }
 0x30a   : > { %v1508_v52 = vmax.f32 %v1430_v50, 0.0  ;;  %v2542_v53 = vpop.f32.mrb[8].mxu1 }
 0x30b   : > { %v1445_v54 = vadd.f32 %v2542_v53, %v3351_v46  ;;  %v1439_v55 = vpop.f32.mrb[9].mxu1  ;;  %1741 = vrot.lane.b32.xlu1 %v1509_v51, %s2870_s16 }
 0x30c   : > { %v1440_v8 = vadd.f32 %v3351_v46, %v1439_v55  ;;  %1739 = vrot.lane.b32.xlu0 %v1508_v52, %s2870_s16  ;;  %2569 = vmatprep.mubr.msk.f32.mxu1 %vm1285_vm5, %v1508_v52 }
 0x30d   : > { %v1511_v9 = vmax.f32 %v1445_v54, 0.0  ;;  %2570 = vmatmul.mubr.msk.f32.vlgmr.msra.gmra.mrb[22].mxu1 %vm1285_vm5, %v1509_v51 }
 0x30e   : > { %v1510_v10 = vmax.f32 %v1440_v8, 0.0  ;;  %v2545_v56 = vpop.f32.mrb[10].mxu1 }
 0x30f   : > { %v1455_v11 = vadd.f32 %v2545_v56, %v3351_v46  ;;  %v1449_v57 = vpop.f32.mrb[11].mxu1  ;;  %1745 = vrot.lane.b32.xlu1 %v1511_v9, %s2870_s16 }
 0x310   : > { %v1450_v12 = vadd.f32 %v3351_v46, %v1449_v57  ;;  %1743 = vrot.lane.b32.xlu0 %v1510_v10, %s2870_s16  ;;  %2572 = vmatprep.mubr.msk.f32.mxu1 %vm1285_vm5, %v1510_v10 }
 0x311   : > { %v1513_v13 = vmax.f32 %v1455_v11, 0.0  ;;  %2573 = vmatmul.mubr.msk.f32.gmra.mrb[24].mxu1 %vm1285_vm5, %v1511_v9 }
 0x312   : > { %v1512_v58 = vmax.f32 %v1450_v12, 0.0  ;;  %v2548_v14 = vpop.f32.mrb[12].mxu1 }
 0x313   : > { %v1465_v15 = vadd.f32 %v2548_v14, %v3351_v46  ;;  %v1459_v59 = vpop.f32.mrb[13].mxu1  ;;  %1749 = vrot.lane.b32.xlu1 %v1513_v13, %s2870_s16 }
 0x314   : > { %v1460_v16 = vadd.f32 %v3351_v46, %v1459_v59  ;;  %1747 = vrot.lane.b32.xlu0 %v1512_v58, %s2870_s16  ;;  %2575 = vmatprep.mubr.msk.f32.mxu1 %vm1285_vm5, %v1512_v58 }
 0x315   : > { %v1515_v17 = vmax.f32 %v1465_v15, 0.0  ;;  %2576 = vmatmul.mubr.msk.f32.gmra.mrb[26].mxu1 %vm1285_vm5, %v1513_v13 }
 0x316   : > { %v1514_v18 = vmax.f32 %v1460_v16, 0.0  ;;  %v2551_v60 = vpop.f32.mrb[14].mxu1 }
 0x317   : > { %v1475_v19 = vadd.f32 %v2551_v60, %v3351_v46  ;;  %1753 = vrot.lane.b32.xlu1 %v1515_v17, %s2870_s16  ;;  %v1469_v61 = vpop.f32.mrb[15].mxu1 }
 0x318   : > { %v1470_v20 = vadd.f32 %v3351_v46, %v1469_v61  ;;  %1751 = vrot.lane.b32.xlu0 %v1514_v18, %s2870_s16  ;;  %2578 = vmatprep.mubr.msk.f32.mxu1 %vm1285_vm5, %v1514_v18 }
 0x319   : > { %v1517_v21 = vmax.f32 %v1475_v19, 0.0  ;;  %2579 = vmatmul.mubr.msk.f32.gmra.mrb[28].mxu1 %vm1285_vm5, %v1515_v17 }
 0x31a   : > { %v1516_v22 = vmax.f32 %v1470_v20, 0.0  ;;  %v2554_v62 = vpop.f32.mrb[16].mxu1 }
 0x31b   : > { %v1485_v23 = vadd.f32 %v2554_v62, %v3351_v46  ;;  %1757 = vrot.lane.b32.xlu1 %v1517_v21, %s2870_s16  ;;  %v1479_v63 = vpop.f32.mrb[17].mxu1 }
 0x31c   : > { %v1480_v24 = vadd.f32 %v3351_v46, %v1479_v63  ;;  %1755 = vrot.lane.b32.xlu0 %v1516_v22, %s2870_s16  ;;  %2581 = vmatprep.mubr.msk.f32.mxu1 %vm1285_vm5, %v1516_v22 }
 0x31d   : > { %v1519_v25 = vmax.f32 %v1485_v23, 0.0  ;;  %2582 = vmatmul.mubr.msk.f32.gmra.mrb[30].mxu1 %vm1285_vm5, %v1517_v21 }
 0x31e   : > { %v1518_v26 = vmax.f32 %v1480_v24, 0.0  ;;  %v2557_v0 = vpop.f32.mrb[18].mxu1  ;;  %v3436_v24 = vshrl.u32 %v625_v37, 7 }
 0x31f   : > { %v1495_v27 = vadd.f32 %v2557_v0, %v3351_v46  ;;  %1761 = vrot.lane.b32.xlu1 %v1519_v25, %s2870_s16  ;;  %v1489_v3 = vpop.f32.mrb[19].mxu1  ;;  %v3445_v0 = vld [vmem:[%s548_s21] ss:$0 sm:$0xff]  ;;  %s2773_s21 = sshll.u32 %s2872_s20, 4  ;;  %s2774_s21 = int_to_ptr.vmem [resolvable:$false] %s2773_s21 }
 0x320   : > { %v1490_v1 = vadd.f32 %v3351_v46, %v1489_v3  ;;  %1759 = vrot.lane.b32.xlu0 %v1518_v26, %s2870_s16  ;;  %2584 = vmatprep.mubr.msk.f32.mxu1 %vm1285_vm5, %v1518_v26  ;;  %vm1962_vm1 = vcmp.eq.s32.totalorder %v3445_v0, %v3436_v24  ;;  %v2871_v3 = vmov 1.0   ;;  %v3452_v37 = vadd.s32 8, %v3436_v24  ;;  %s2775_s30 = scalar_lea.vmem %s2774_s21, 512  ;;  %p2776_p5 = scmp.lt.s32.totalorder %s3486_s12, %s2774_s21 }
 0x321   : > { %v1521_v28 = vmax.f32 %v1495_v27, 0.0  ;;  %2585 = vmatmul.mubr.msk.f32.gmra.mrb[32].mxu1 %vm1285_vm5, %v1519_v25  ;;  %p2777_p6 = scmp.lt.s32.totalorder %s2775_s30, %s2769_s19 }
 0x322   : > { %v1520_v29 = vmax.f32 %v1490_v1, 0.0  ;;  %vm1964_vm6 = vcmp.eq.s32.totalorder %v3445_v0, %v3452_v37 }
 0x323   : > { %1765 = vrot.lane.b32.xlu1 %v1521_v28, %s2870_s16  ;;  %p2778_p7 = por %p2777_p6, %p2776_p5 }
 0x324   : > { %1763 = vrot.lane.b32.xlu0 %v1520_v29, %s2870_s16  ;;  %2587 = vmatprep.mubr.msk.f32.mxu1 %vm1285_vm5, %v1520_v29 }
 0x325   : > { %v2560_v30 = vpop.f32.mrb[20].mxu1  ;;  %2588 = vmatmul.mubr.msk.f32.gmra.mrb[34].mxu1 %vm1285_vm5, %v1521_v28  ;;  %p2779_p8 = pnand %p2778_p7, %p2772_p4 }
 0x326   : > { %v1505_v2 = vadd.f32 %v2560_v30, %v3351_v46  ;;  %v1499_v31 = vpop.f32.mrb[21].mxu1 }
 0x327   : > { %v1500_v32 = vadd.f32 %v3351_v46, %v1499_v31 }
 0x328   : > { %v1523_v33 = vmax.f32 %v1505_v2, 0.0 }
 0x329   : > { %v1522_v34 = vmax.f32 %v1500_v32, 0.0  ;;  %v2309_v32 = vld [vmem:[%s3555_s11] ss:$0 sm:$0xff] }
 0x32a   : > { %1769 = vrot.lane.b32.xlu1 %v1523_v33, %s2870_s16 }
 0x32b   : > { %1767 = vrot.lane.b32.xlu0 %v1522_v34, %s2870_s16  ;;  %2590 = vmatprep.mubr.msk.f32.mxu1 %vm1285_vm5, %v1522_v34  ;;  %s3590_s16 = smov %s3589_s24 }
 0x32c   : > { %2591 = vmatmul.mubr.msk.f32.gmra.mrb[36].mxu1 %vm1285_vm5, %v1523_v33 }
 0x32d   : > { %2332 = vmatprep.mubr.msk.f32.mxu1 %vm1962_vm1, %v2871_v3 }
 0x37d   : > { %v1742_v5 = vpop.permute.xlu1 %1741 }
 0x37e   : > { %v1740_v35 = vpop.permute.xlu0 %1739 }
 0x37f   : > { %2601 = vmatprep.mubr.msk.f32.mxu0 %vm1285_vm5, %v1740_v35 }
 0x380   : > { %2602 = vmatmul.mubr.msk.f32.vlgmr.msra.gmra.mrb[26].mxu0 %vm1285_vm5, %v1742_v5 }
 0x381   : > { %v1746_v36 = vpop.permute.xlu1 %1745 }
 0x382   : > { %v1744_v39 = vpop.permute.xlu0 %1743 }
 0x383   : > { %2604 = vmatprep.mubr.msk.f32.mxu0 %vm1285_vm5, %v1744_v39 }
 0x384   : > { %2605 = vmatmul.mubr.msk.f32.gmra.mrb[28].mxu0 %vm1285_vm5, %v1746_v36 }
 0x385   : > { %v1750_v4 = vpop.permute.xlu1 %1749 }
 0x386   : > { %v1748_v40 = vpop.permute.xlu0 %1747 }
 0x387   : > { %2607 = vmatprep.mubr.msk.f32.mxu0 %vm1285_vm5, %v1748_v40 }
 0x388   : > { %2608 = vmatmul.mubr.msk.f32.gmra.mrb[30].mxu0 %vm1285_vm5, %v1750_v4 }
 0x389   : > { %v1754_v7 = vpop.permute.xlu1 %1753 }
 0x38a   : > { %v1752_v42 = vpop.permute.xlu0 %1751 }
 0x38b   : > { %2610 = vmatprep.mubr.msk.f32.mxu0 %vm1285_vm5, %v1752_v42 }
 0x38c   : > { %2611 = vmatmul.mubr.msk.f32.gmra.mrb[32].mxu0 %vm1285_vm5, %v1754_v7 }
 0x38d   : > { %v1758_v6 = vpop.permute.xlu1 %1757 }
 0x38e   : > { %v1756_v43 = vpop.permute.xlu0 %1755 }
 0x38f   : > { %2613 = vmatprep.mubr.msk.f32.mxu0 %vm1285_vm5, %v1756_v43 }
 0x390   : > { %2614 = vmatmul.mubr.msk.f32.gmra.mrb[34].mxu0 %vm1285_vm5, %v1758_v6 }
 0x391   : > { %v1762_v44 = vpop.permute.xlu1 %1761 }
 0x392   : > { %v1760_v38 = vpop.permute.xlu0 %1759 }
 0x393   : > { %2616 = vmatprep.mubr.msk.f32.mxu0 %vm1285_vm5, %v1760_v38 }
 0x394   : > { %2617 = vmatmul.mubr.msk.f32.gmra.mrb[36].mxu0 %vm1285_vm5, %v1762_v44 }
 0x395   : > { %v1766_v41 = vpop.permute.xlu1 %1765 }
 0x396   : > { %v1764_v45 = vpop.permute.xlu0 %1763 }
 0x397   : > { %2619 = vmatprep.mubr.msk.f32.mxu0 %vm1285_vm5, %v1764_v45 }
 0x398   : > { %2620 = vmatmul.mubr.msk.f32.gmra.mrb[38].mxu0 %vm1285_vm5, %v1766_v41 }
 0x39c   : > { %v1770_v47 = vpop.permute.xlu1 %1769 }
 0x39d   : > { %v1768_v46 = vpop.permute.xlu0 %1767 }
 0x39e   : > { %2622 = vmatprep.mubr.msk.f32.mxu0 %vm1285_vm5, %v1768_v46 }
 0x39f   : > { %2623 = vmatmul.mubr.msk.f32.gmra.mrb[40].mxu0 %vm1285_vm5, %v1770_v47 }
 0x3e0   : > { %v2571_v49 = vpop.f32.mrb[22].mxu1 }
 0x3e1   : > { %v1655_v50 = vadd.f32 %v2571_v49, %v2292_v48  ;;  %v1649_v51 = vpop.f32.mrb[23].mxu1 }
 0x3e2   : > { %v1650_v52 = vadd.f32 %v2292_v48, %v1649_v51 }
 0x3e4   : > { %v2655_v53 = vpack.c.bf16 %v1655_v50, %v1650_v52  ;;  %v2574_v54 = vpop.f32.mrb[24].mxu1 }
 0x3e5   : > { %v1665_v55 = vadd.f32 %v2574_v54, %v2292_v48  ;;  %v1659_v8 = vpop.f32.mrb[25].mxu1 }
 0x3e6   : > { %v1660_v9 = vadd.f32 %v2292_v48, %v1659_v8 }
 0x3e8   : > { %v2659_v10 = vpack.c.bf16 %v1665_v55, %v1660_v9  ;;  %v2577_v56 = vpop.f32.mrb[26].mxu1 }
 0x3e9   : > { %v1675_v11 = vadd.f32 %v2577_v56, %v2292_v48  ;;  %v1669_v57 = vpop.f32.mrb[27].mxu1 }
 0x3ea   : > { %v1670_v12 = vadd.f32 %v2292_v48, %v1669_v57 }
 0x3ec   : > { %v2663_v13 = vpack.c.bf16 %v1675_v11, %v1670_v12  ;;  %v2580_v58 = vpop.f32.mrb[28].mxu1 }
 0x3ed   : > { %v3420_v14 = vadd.f32 %v2580_v58, %v2292_v48  ;;  %v1679_v15 = vpop.f32.mrb[29].mxu1 }
 0x3ee   : > { %v1680_v59 = vadd.f32 %v2292_v48, %v1679_v15 }
 0x3f0   : > { %v2667_v16 = vpack.c.bf16 %v3420_v14, %v1680_v59  ;;  %v2583_v17 = vpop.f32.mrb[30].mxu1 }
 0x3f1   : > { %v3423_v18 = vadd.f32 %v2583_v17, %v2292_v48  ;;  %v1689_v60 = vpop.f32.mrb[31].mxu1 }
 0x3f2   : > { %v3425_v19 = vadd.f32 %v2292_v48, %v1689_v60 }
 0x3f4   : > { %v2671_v61 = vpack.c.bf16 %v3423_v18, %v3425_v19  ;;  %v2586_v20 = vpop.f32.mrb[32].mxu1  ;;  %v2326_v18 = vld [vmem:[%s555_s15] ss:$0 sm:$0xff] }
 0x3f5   : > { %v3429_v21 = vadd.f32 %v2586_v20, %v2292_v48  ;;  %v1699_v22 = vpop.f32.mrb[33].mxu1  ;;  %vm1961_vm7 = vcmp.eq.s32.totalorder %v2326_v18, %v3436_v24  ;;  %vm1963_vm8 = vcmp.eq.s32.totalorder %v2326_v18, %v3452_v37 }
 0x3f6   : > { %v3431_v62 = vadd.f32 %v2292_v48, %v1699_v22 }
 0x3f8   : > { %v2675_v23 = vpack.c.bf16 %v3429_v21, %v3431_v62  ;;  %v2589_v63 = vpop.f32.mrb[34].mxu1 }
 0x3f9   : > { %v3438_v25 = vadd.f32 %v2589_v63, %v2292_v48  ;;  %v1709_v26 = vpop.f32.mrb[35].mxu1 }
 0x3fa   : > { %v1710_v27 = vadd.f32 %v2292_v48, %v1709_v26 }
 0x3fc   : > { %v2679_v1 = vpack.c.bf16 %v3438_v25, %v1710_v27 }
 0x3ff   : > { %v2592_v28 = vpop.f32.mrb[36].mxu1 }
 0x400   : > { %v1725_v29 = vadd.f32 %v2592_v28, %v2292_v48  ;;  %v1719_v30 = vpop.f32.mrb[37].mxu1 }
 0x401   : > { %v1720_v2 = vadd.f32 %v2292_v48, %v1719_v30 }
 0x403   : > { %v2683_v31 = vpack.c.bf16 %v1725_v29, %v1720_v2 }
 0x453   : > { %v2603_v33 = vpop.f32.mrb[26].mxu0 }
 0x454   : > { %v1875_v34 = vadd.f32 %v2603_v33, %v2309_v32  ;;  %v1869_v5 = vpop.f32.mrb[27].mxu0 }
 0x455   : > { %v1870_v35 = vadd.f32 %v2309_v32, %v1869_v5 }
 0x457   : > { %v2653_v36 = vpack.c.bf16 %v1875_v34, %v1870_v35  ;;  %v2606_v39 = vpop.f32.mrb[28].mxu0 }
 0x458   : > { %v1885_v4 = vadd.f32 %v2606_v39, %v2309_v32  ;;  %v1879_v40 = vpop.f32.mrb[29].mxu0 }
 0x459   : > { %v1880_v7 = vadd.f32 %v2309_v32, %v1879_v40  ;;  %2654 = vmatprep.subr.bf16.mxu1 %v2653_v36 }
 0x45a   : > { %2656 = vmatpush3.bf16.msra.mxu1 %v2655_v53 }
 0x45b   : > { %v2657_v42 = vpack.c.bf16 %v1885_v4, %v1880_v7  ;;  %v2609_v6 = vpop.f32.mrb[30].mxu0 }
 0x45c   : > { %v1895_v43 = vadd.f32 %v2609_v6, %v2309_v32  ;;  %v1889_v44 = vpop.f32.mrb[31].mxu0 }
 0x45d   : > { %v1890_v38 = vadd.f32 %v2309_v32, %v1889_v44  ;;  %2658 = vmatprep.subr.bf16.mxu1 %v2657_v42 }
 0x45e   : > { %2660 = vmatpush3.bf16.msra.mxu1 %v2659_v10 }
 0x45f   : > { %v2661_v45 = vpack.c.bf16 %v1895_v43, %v1890_v38  ;;  %v2612_v41 = vpop.f32.mrb[32].mxu0 }
 0x460   : > { %v1905_v46 = vadd.f32 %v2612_v41, %v2309_v32  ;;  %v1899_v47 = vpop.f32.mrb[33].mxu0 }
 0x461   : > { %v1900_v48 = vadd.f32 %v2309_v32, %v1899_v47  ;;  %2662 = vmatprep.subr.bf16.mxu1 %v2661_v45 }
 0x462   : > { %2664 = vmatpush3.bf16.msra.mxu1 %v2663_v13 }
 0x463   : > { %v2665_v49 = vpack.c.bf16 %v1905_v46, %v1900_v48  ;;  %v2615_v50 = vpop.f32.mrb[34].mxu0 }
 0x464   : > { %v1915_v51 = vadd.f32 %v2615_v50, %v2309_v32  ;;  %v1909_v52 = vpop.f32.mrb[35].mxu0 }
 0x465   : > { %v1910_v54 = vadd.f32 %v2309_v32, %v1909_v52  ;;  %2666 = vmatprep.subr.bf16.mxu1 %v2665_v49 }
 0x466   : > { %2668 = vmatpush3.bf16.msra.mxu1 %v2667_v16 }
 0x467   : > { %v2669_v53 = vpack.c.bf16 %v1915_v51, %v1910_v54  ;;  %v2618_v55 = vpop.f32.mrb[36].mxu0 }
 0x468   : > { %v1925_v8 = vadd.f32 %v2618_v55, %v2309_v32  ;;  %v1919_v9 = vpop.f32.mrb[37].mxu0 }
 0x469   : > { %v1920_v56 = vadd.f32 %v2309_v32, %v1919_v9  ;;  %2670 = vmatprep.subr.bf16.mxu1 %v2669_v53 }
 0x46a   : > { %2672 = vmatpush3.bf16.msra.mxu1 %v2671_v61  ;;  %v2048_v61 = vld [vmem:[%s3039_s14] sm:$0xff] }
 0x46b   : > { %v2673_v10 = vpack.c.bf16 %v1925_v8, %v1920_v56  ;;  %v2621_v11 = vpop.f32.mrb[38].mxu0 }
 0x46c   : > { %v1935_v57 = vadd.f32 %v2621_v11, %v2309_v32  ;;  %v1929_v12 = vpop.f32.mrb[39].mxu0 }
 0x46d   : > { %v1930_v13 = vadd.f32 %v2309_v32, %v1929_v12  ;;  %2674 = vmatprep.subr.bf16.mxu1 %v2673_v10 }
 0x46e   : > { %2676 = vmatpush3.bf16.msra.mxu1 %v2675_v23  ;;  %v2049_v23 = vld [vmem:[%s3039_s14 + $0x8] sm:$0xff] }
 0x46f   : > { %v2677_v58 = vpack.c.bf16 %v1935_v57, %v1930_v13 }
 0x471   : > { %2678 = vmatprep.subr.bf16.mxu1 %v2677_v58 }
 0x472   : > { %v2624_v14 = vpop.f32.mrb[40].mxu0  ;;  %2680 = vmatpush3.bf16.msra.mxu1 %v2679_v1 }
 0x473   : > { %v1945_v15 = vadd.f32 %v2624_v14, %v2309_v32  ;;  %v1939_v59 = vpop.f32.mrb[41].mxu0 }
 0x474   : > { %v1940_v16 = vadd.f32 %v2309_v32, %v1939_v59 }
 0x476   : > { %v2681_v17 = vpack.c.bf16 %v1945_v15, %v1940_v16 }
 0x478   : > { %2682 = vmatprep.subr.bf16.mxu1 %v2681_v17 }
 0x479   : > { %2684 = vmatpush3.bf16.msra.mxu1 %v2683_v31 }
 0x47c   : > { %2333 = vmatmul.mubr.msk.f32.vlgmr.msra.gmra.mrb[38].mxu1 %vm1961_vm7, %v2871_v3 }
 0x47d   : > { %2334 = vmatprep.mubr.msk.f32.mxu1 %vm1964_vm6, %v2871_v3 }
 0x480   : > { %2335 = vmatmul.mubr.msk.f32.gmra.mrb[40].mxu1 %vm1963_vm8, %v2871_v3 }
 0x54f   : > { %v2469_v60 = vpop.f32.mrb[38].mxu1 }
 0x550   : > { %v2470_v19 = vpop.f32.mrb[39].mxu1 }
 0x551   : > { %v2471_v20 = vadd.f32 %v2470_v19, %v2469_v60 }
 0x553   : > { %v2050_v21 = vadd.f32 %v2471_v20, %v2048_v61  ;;  %v2472_v22 = vpop.f32.mrb[40].mxu1 }
 0x554   : > { %v2473_v62 = vpop.f32.mrb[41].mxu1 }
 0x555   : > { %2052 = vst.msk [vmem:[%s3039_s14] sm:$0xff] %vm1285_vm5, %v2050_v21  ;;  %v2474_v63 = vadd.f32 %v2473_v62, %v2472_v22 }
 0x557   : > { %v2051_v24 = vadd.f32 %v2474_v63, %v2049_v23 }
 0x559   : > { %2053 = vst.msk [vmem:[%s3039_s14 + $0x8] sm:$0xff] %vm1285_vm5, %v2051_v24 }
 0x55a   : > { %2782 = shalt.err (!%p2779_p8)
}
 0x55b   : > { %s2783_s14 = scalar_lea.hbm %s3484_s28, 256  ;;  %s2787_s29 = scalar_lea.hbm %s3590_s16, 512 }
 0x55c   : > { %p2784_p10 = scmp.ne.s32.totalorder %s3484_s28, %s2783_s14  ;;  %p2788_p13 = scmp.lt.u32.totalorder %s3484_s28, %s3590_s16 }
 0x55d   : > { %p2789_p0 = scmp.lt.u32.totalorder %s2787_s29, %s2783_s14  ;;  %p2791_p2 = scmp.lt.u32.totalorder %s2783_s14, %s3484_s28 }
 0x55e   : > { %p2785_p11 = pnand %p2784_p10, %p2989_p3 }
 0x55f   : > { %p2790_p1 = por %p2789_p0, %p2788_p13 }
 0x560   : > { %p2786_p12 = pneg %p2785_p11 }
 0x561   : > { %p2792_p4 = por %p2791_p2, %p2790_p1 }
 0x563   : > { %p2793_p5 = pnand %p2792_p4, %p2786_p12 }
 0x565   : > { %2796 = shalt.err (!%p2793_p5)
}
 0x566   : > { %s2873_s22 = smov 128   ;;  %s2874_s23 = smov 8  }
 0x567   : > { %2687 = dma.vmem_to_hbm [thread:$0]  (%p2989_p3), %s3486_s12, 256, %s3484_s28, %s3492_s27, %s2873_s22, %s2873_s22, %s2874_s23  }
 0x568 PF: > { %s3592_s24 = sld [smem:[#allocation11_spill]]  ;;  %s3593_s25 = sld [smem:[#allocation5_spill]] }
 0x56e   : > { %p2693_p6 = scmp.ge.s32.totalorder %s3592_s24, 2  ;;  %s2083_s20 = sand.u32 1, %s3593_s25  }
 0x56f   : > { %s2084_s21 = scalar_lea.sflag [#allocation3], %s2083_s20 }
 0x570   : > { %p2690_p7 = pnand %p2693_p6, %p2999_p9 }
 0x572   : > { %2830 = dma.done.wait (!%p2690_p7), %s2084_s21, 256  }
 0x573   : > { %2832 = vsyncadd (!%p2690_p7), %s2084_s21, 4294967040  ;;  %s25_s28 = sadd.s32 1, %s3592_s24   ;;  %s3595_s21 = sld [smem:[#allocation6_spill]] }
 0x574   : > { %p22_p8 = scmp.ge.s32.totalorder %s25_s28, 6   ;;  %s3596_s22 = sld [smem:[#allocation7_spill]] }
 0x575   : > { %s3597_s23 = sld [smem:[#allocation16_spill]]  ;;  %s3598_s24 = sld [smem:[#allocation9_spill]] }
 0x576   : > { %s3599_s25 = sld [smem:[#allocation10_spill]]  ;;  %s3600_s26 = sld [smem:[#allocation12_spill]] }
 0x577   : > { %s3601_s27 = sld [smem:[#allocation14_spill]]  ;;  %24 = sbr.rel (!%p22_p8) target bundleno = 7 (0x7), region = 119 }
 0x57e   :  { %2089 = vsyncpa [#allocation3], 1 }
 0x57f   :  { %2091 = vsyncpa [#allocation3 + $0x1], 1 }

</bundles_post_ra>
